<compile_context>
chip_gen: v7x
topology: tpu7x:2x2x1
jax: 0.10.0
libtpu: 0.0.40
codegen_flags: <defaults>
</compile_context>

<pallas_src>
import functools

import jax
import jax.numpy as jnp
import numpy as np
from jax.experimental import pallas as pl
from jax.experimental.pallas import tpu as pltpu


def _psa_kernel(S, H, W, Cg, P, TB, cdt,
                x_ref, t0_ref, t1_ref, t2_ref, t3_ref,
                bias_ref, gw1_ref, w2l_ref, o_ref, xp_ref):
    """One grid step = TB batch elements: S banded-matmul convs + SE + softmax mix."""
    L = W * Cg
    t_refs = (t0_ref, t1_ref, t2_ref, t3_ref)

    # Stage the unpadded input into an H-padded VMEM scratch (halo rows = 0).
    zeros_halo = jnp.zeros((TB, S, P, L), cdt)
    xp_ref[:, :, :P, :] = zeros_halo
    xp_ref[:, :, P + H:, :] = zeros_halo
    xp_ref[:, :, P:P + H, :] = x_ref[...]

    ysums = []
    for s in range(S):                                   # static unroll over groups
        p = s + 1
        k = 2 * p + 1
        acc = jnp.zeros((TB * H, L), jnp.float32)
        for kh in range(k):                              # k matmuls, K = W*Cg
            r0 = P - p + kh                              # row offset into padded H
            rows = xp_ref[:, s, r0:r0 + H, :].reshape(TB * H, L)
            acc = acc + jnp.dot(rows, t_refs[s][kh],
                                preferred_element_type=jnp.float32)
        y = acc + bias_ref[s:s + 1, :]                   # (TB*H, L) f32
        y3 = y.reshape(TB, H, L)
        o_ref[:, s, :, :] = y3.astype(o_ref.dtype)       # write-through, unscaled
        ysums.append(jnp.sum(y3, axis=1))                # (TB, L), for the GAP

    # SE blocks, batched over the S groups (all f32):
    #   GAP -> 1x1 conv -> ReLU -> 1x1 conv -> sigmoid, then softmax over S.
    ysum = jnp.stack(ysums, axis=0)                                      # (S, TB, L)
    z = jnp.maximum(jnp.einsum('stl,slr->str', ysum, gw1_ref[...]), 0.0)  # (S, TB, Cr)
    se = jax.nn.sigmoid(jnp.einsum('str,srl->stl', z, w2l_ref[...]))      # (S, TB, L)
    attn = jax.nn.softmax(se, axis=0)                                     # over S

    # Second pass: rescale the stored conv outputs by the attention weights.
    for s in range(S):
        o_ref[:, s, :, :] = o_ref[:, s, :, :] * attn[s][:, None, :]


def _pick_tb(B, S, H, W, Cg, P, budget_bytes=8 << 20):
    """Largest divisor of B whose per-step blocks fit a conservative VMEM budget."""
    L = W * Cg
    per_b = (S * H * L * (2 + 4)) * 2 + S * (H + 2 * P) * L * 2
    tb = 1
    for cand in range(1, min(B, 8) + 1):
        if B % cand == 0 and cand * per_b <= budget_bytes:
            tb = cand
    return tb


@functools.partial(jax.jit, static_argnames=("S",))
def psa_pallas(x_nchw, conv_ws_oihw, conv_bs, w1s, w2s, S=4):
    """x_nchw: (B, C, H, W). Returns (B, C, H, W) matching the PyTorch PSA forward."""
    assert S == 4, "kernel signature is specialized to S=4"
    B, C, H, W = x_nchw.shape
    assert C % S == 0
    Cg = C // S
    P = S                                    # largest padding (group S-1 uses S)
    L = W * Cg
    cdt = jnp.bfloat16                       # MXU compute dtype (f32 accumulation)

    # ---- input: NCHW -> (B, S, H, W*Cg) bf16 (lane dim = W*Cg) ----
    xg = x_nchw.reshape(B, S, Cg, H, W).transpose(0, 1, 3, 4, 2)     # (B,S,H,W,Cg)
    x_in = xg.reshape(B, S, H, L).astype(cdt)

    # ---- conv weights -> banded block-Toeplitz matrices (k, W*Cg, W*Cg) ----
    def toeplitz(w_oihw, p):
        k = w_oihw.shape[-1]
        w_hwio = jnp.transpose(w_oihw, (2, 3, 1, 0))                 # (kh,kw,ci,co)
        sel = np.zeros((k, W, W), np.float32)                        # [kw, w_in, w_out]
        for kw in range(k):
            for wo in range(W):
                wi = wo + kw - p
                if 0 <= wi < W:
                    sel[kw, wi, wo] = 1.0
        t = jnp.einsum('hkio,kab->haibo', w_hwio, jnp.asarray(sel))  # (kh,wi,ci,wo,co)
        return t.reshape(k, L, L).astype(cdt)

    ts = [toeplitz(conv_ws_oihw[s], s + 1) for s in range(S)]

    # ---- bias / SE weights pre-expanded to the lane layout (kept in f32) ----
    bias_lane = jnp.stack([jnp.tile(b, W) for b in conv_bs], axis=0)            # (S, L)
    gw1 = jnp.stack([jnp.tile(w.T, (W, 1)) / float(H * W) for w in w1s], 0)     # (S, L, Cr)
    w2l = jnp.stack([jnp.tile(w.T, (1, W)) for w in w2s], axis=0)               # (S, Cr, L)

    TB = _pick_tb(B, S, H, W, Cg, P)

    def full_spec(shape):
        n = len(shape)
        return pl.BlockSpec(shape, lambda b, _n=n: (0,) * _n)

    kernel = functools.partial(_psa_kernel, S, H, W, Cg, P, TB, cdt)
    out = pl.pallas_call(
        kernel,
        out_shape=jax.ShapeDtypeStruct((B, S, H, L), x_nchw.dtype),
        grid=(B // TB,),
        in_specs=[
            pl.BlockSpec((TB, S, H, L), lambda b: (b, 0, 0, 0)),
            full_spec(ts[0].shape), full_spec(ts[1].shape),
            full_spec(ts[2].shape), full_spec(ts[3].shape),
            full_spec(bias_lane.shape), full_spec(gw1.shape), full_spec(w2l.shape),
        ],
        out_specs=pl.BlockSpec((TB, S, H, L), lambda b: (b, 0, 0, 0)),
        scratch_shapes=[pltpu.VMEM((TB, S, H + 2 * P, L), cdt)],
        compiler_params=pltpu.CompilerParams(dimension_semantics=("parallel",)),
    )(x_in, *ts, bias_lane, gw1, w2l)

    # (B, S, H, W*Cg) -> NCHW, channel order (group, in-group ch) == view(b,-1,h,w)
    return out.reshape(B, S, H, W, Cg).transpose(0, 1, 4, 2, 3).reshape(B, C, H, W)


def psa_ref(x, conv_ws, conv_bs, w1s, w2s, S):
    """Pure-JAX f32 reference (mirrors the PyTorch forward)."""
    B, C, H, W = x.shape
    Cg = C // S
    xg = x.reshape(B, S, Cg, H, W)
    ys, ses = [], []
    for s in range(S):
        p = s + 1
        y = jax.lax.conv_general_dilated(
            xg[:, s], conv_ws[s], (1, 1), ((p, p), (p, p)),
            dimension_numbers=("NCHW", "OIHW", "NCHW"))
        y = y + conv_bs[s][None, :, None, None]
        ys.append(y)
        gap = jnp.mean(y, axis=(2, 3))                       # (B, Cg)
        z = jnp.maximum(gap @ w1s[s].T, 0.0)                 # (B, Cr)
        ses.append(jax.nn.sigmoid(z @ w2s[s].T))             # (B, Cg)
    Y = jnp.stack(ys, axis=1)                                # (B,S,Cg,H,W)
    SE = jnp.stack(ses, axis=1)                              # (B,S,Cg)
    attn = jax.nn.softmax(SE, axis=1)[..., None, None]
    return (Y * attn).reshape(B, C, H, W)


if __name__ == "__main__":
    S, reduction = 4, 4
    C = 64                      # "channel" (must be divisible by S*reduction)
    Cg = C // S                 # 16
    Cr = C // (S * reduction)   # 4
    B, H, W = 2, 8, 8           # W*Cg = 128 -> fully lane-dense

    key = jax.random.PRNGKey(0)
    ks = jax.random.split(key, 1 + 4 * S)
    x = jax.random.normal(ks[0], (B, C, H, W), jnp.float32)

    conv_ws, conv_bs, w1s, w2s = [], [], [], []
    for s in range(S):
        k = 2 * (s + 1) + 1
        fan_in = Cg * k * k
        conv_ws.append(jax.random.normal(ks[1 + 4 * s], (Cg, Cg, k, k), jnp.float32)
                       * (2.0 / fan_in) ** 0.5)
        conv_bs.append(0.01 * jax.random.normal(ks[2 + 4 * s], (Cg,), jnp.float32))
        w1s.append(jax.random.normal(ks[3 + 4 * s], (Cr, Cg), jnp.float32)
                   * (2.0 / Cg) ** 0.5)
        w2s.append(jax.random.normal(ks[4 + 4 * s], (Cg, Cr), jnp.float32)
                   * (2.0 / Cr) ** 0.5)

    out = psa_pallas(x, conv_ws, conv_bs, w1s, w2s, S=S)
    out = jax.block_until_ready(out)
    assert out.shape == (B, C, H, W)

    ref = psa_ref(x, conv_ws, conv_bs, w1s, w2s, S)
    # tolerance loosened vs the pure-f32 version because the conv path now runs
    # in bf16 on the MXU (f32 accumulation); SE/softmax remain f32.
    np.testing.assert_allclose(np.asarray(out), np.asarray(ref), rtol=2e-2, atol=2e-2)

    print("KERNEL_OK")
</pallas_src>

<mosaic_0001>
module attributes {stable_mosaic.version = 11 : i64} {
  func.func @_psa_kernel(%arg0: i32, %arg1: memref<2x4x8x128xbf16, #tpu.memory_space<vmem>>, %arg2: memref<3x128x128xbf16, #tpu.memory_space<vmem>>, %arg3: memref<5x128x128xbf16, #tpu.memory_space<vmem>>, %arg4: memref<7x128x128xbf16, #tpu.memory_space<vmem>>, %arg5: memref<9x128x128xbf16, #tpu.memory_space<vmem>>, %arg6: memref<4x128xf32, #tpu.memory_space<vmem>>, %arg7: memref<4x128x4xf32, #tpu.memory_space<vmem>>, %arg8: memref<4x4x128xf32, #tpu.memory_space<vmem>>, %arg9: memref<2x4x8x128xf32, #tpu.memory_space<vmem>>, %arg10: memref<2x4x16x128xbf16, #tpu.memory_space<vmem>>) attributes {dimension_semantics = [#tpu.dimension_semantics<parallel>], iteration_bounds = array<i64: 1>, scalar_prefetch = 0 : i64, scratch_operands = 1 : i64, tpu.core_type = #tpu.core_type<tc>, window_params = [{transform_indices = @transform_0, window_bounds = array<i64: 2, 4, 8, 128>}, {pipeline_mode = #tpu.pipeline_mode<synchronous>, transform_indices = @transform_1, window_bounds = array<i64: 3, 128, 128>}, {pipeline_mode = #tpu.pipeline_mode<synchronous>, transform_indices = @transform_2, window_bounds = array<i64: 5, 128, 128>}, {pipeline_mode = #tpu.pipeline_mode<synchronous>, transform_indices = @transform_3, window_bounds = array<i64: 7, 128, 128>}, {pipeline_mode = #tpu.pipeline_mode<synchronous>, transform_indices = @transform_4, window_bounds = array<i64: 9, 128, 128>}, {pipeline_mode = #tpu.pipeline_mode<synchronous>, transform_indices = @transform_5, window_bounds = array<i64: 4, 128>}, {pipeline_mode = #tpu.pipeline_mode<synchronous>, transform_indices = @transform_6, window_bounds = array<i64: 4, 128, 4>}, {pipeline_mode = #tpu.pipeline_mode<synchronous>, transform_indices = @transform_7, window_bounds = array<i64: 4, 4, 128>}, {transform_indices = @transform_8, window_bounds = array<i64: 2, 4, 8, 128>}]} {
    %cst = arith.constant 0.000000e+00 : bf16
    %0 = vector.broadcast %cst : bf16 to vector<2x4x4x128xbf16>
    %c0 = arith.constant 0 : index
    %c0_0 = arith.constant 0 : index
    %c0_1 = arith.constant 0 : index
    %c0_2 = arith.constant 0 : index
    %1 = vector.load %arg10[%c0, %c0_0, %c0_1, %c0_2] : memref<2x4x16x128xbf16, #tpu.memory_space<vmem>>, vector<2x4x4x128xbf16>
    tpu.vector_store %arg10[%c0, %c0_0, %c0_1, %c0_2], %0 {strides = array<i32>} : memref<2x4x16x128xbf16, #tpu.memory_space<vmem>>, vector<2x4x4x128xbf16>,
    %c0_3 = arith.constant 0 : index
    %c0_4 = arith.constant 0 : index
    %c12 = arith.constant 12 : index
    %c0_5 = arith.constant 0 : index
    %2 = vector.load %arg10[%c0_3, %c0_4, %c12, %c0_5] : memref<2x4x16x128xbf16, #tpu.memory_space<vmem>>, vector<2x4x4x128xbf16>
    tpu.vector_store %arg10[%c0_3, %c0_4, %c12, %c0_5], %0 {strides = array<i32>} : memref<2x4x16x128xbf16, #tpu.memory_space<vmem>>, vector<2x4x4x128xbf16>,
    %c0_6 = arith.constant 0 : index
    %c0_7 = arith.constant 0 : index
    %c0_8 = arith.constant 0 : index
    %c0_9 = arith.constant 0 : index
    %3 = vector.load %arg1[%c0_6, %c0_7, %c0_8, %c0_9] : memref<2x4x8x128xbf16, #tpu.memory_space<vmem>>, vector<2x4x8x128xbf16>
    %c0_10 = arith.constant 0 : index
    %c0_11 = arith.constant 0 : index
    %c4 = arith.constant 4 : index
    %c0_12 = arith.constant 0 : index
    %4 = vector.load %arg10[%c0_10, %c0_11, %c4, %c0_12] : memref<2x4x16x128xbf16, #tpu.memory_space<vmem>>, vector<2x4x8x128xbf16>
    tpu.vector_store %arg10[%c0_10, %c0_11, %c4, %c0_12], %3 {strides = array<i32>} : memref<2x4x16x128xbf16, #tpu.memory_space<vmem>>, vector<2x4x8x128xbf16>,
    %cst_13 = arith.constant 0.000000e+00 : f32
    %5 = vector.broadcast %cst_13 : f32 to vector<16x128xf32>
    %c0_14 = arith.constant 0 : index
    %c0_15 = arith.constant 0 : index
    %c3 = arith.constant 3 : index
    %c0_16 = arith.constant 0 : index
    %6 = vector.load %arg10[%c0_14, %c0_15, %c3, %c0_16] : memref<2x4x16x128xbf16, #tpu.memory_space<vmem>>, vector<2x1x8x128xbf16>
    %7 = vector.shape_cast %6 : vector<2x1x8x128xbf16> to vector<2x8x128xbf16>
    %8 = vector.shape_cast %7 : vector<2x8x128xbf16> to vector<16x128xbf16>
    %c0_17 = arith.constant 0 : index
    %c0_18 = arith.constant 0 : index
    %c0_19 = arith.constant 0 : index
    %9 = vector.load %arg2[%c0_17, %c0_18, %c0_19] : memref<3x128x128xbf16, #tpu.memory_space<vmem>>, vector<1x128x128xbf16>
    %10 = vector.shape_cast %9 : vector<1x128x128xbf16> to vector<128x128xbf16>
    %cst_20 = arith.constant dense<0.000000e+00> : vector<16x128xf32>
    %11 = tpu.matmul %8, %10, %cst_20 {dimension_numbers = #tpu.dot_dimension_numbers<[1], [0], [0], [1], [0, 0, 1, 1], [], []>} : vector<16x128xbf16>, vector<128x128xbf16>, vector<16x128xf32> -> vector<16x128xf32>
    %12 = arith.addf %5, %11 : vector<16x128xf32>
    %c0_21 = arith.constant 0 : index
    %c0_22 = arith.constant 0 : index
    %c4_23 = arith.constant 4 : index
    %c0_24 = arith.constant 0 : index
    %13 = vector.load %arg10[%c0_21, %c0_22, %c4_23, %c0_24] : memref<2x4x16x128xbf16, #tpu.memory_space<vmem>>, vector<2x1x8x128xbf16>
    %14 = vector.shape_cast %13 : vector<2x1x8x128xbf16> to vector<2x8x128xbf16>
    %15 = vector.shape_cast %14 : vector<2x8x128xbf16> to vector<16x128xbf16>
    %c1 = arith.constant 1 : index
    %c0_25 = arith.constant 0 : index
    %c0_26 = arith.constant 0 : index
    %16 = vector.load %arg2[%c1, %c0_25, %c0_26] : memref<3x128x128xbf16, #tpu.memory_space<vmem>>, vector<1x128x128xbf16>
    %17 = vector.shape_cast %16 : vector<1x128x128xbf16> to vector<128x128xbf16>
    %cst_27 = arith.constant dense<0.000000e+00> : vector<16x128xf32>
    %18 = tpu.matmul %15, %17, %cst_27 {dimension_numbers = #tpu.dot_dimension_numbers<[1], [0], [0], [1], [0, 0, 1, 1], [], []>} : vector<16x128xbf16>, vector<128x128xbf16>, vector<16x128xf32> -> vector<16x128xf32>
    %19 = arith.addf %12, %18 : vector<16x128xf32>
    %c0_28 = arith.constant 0 : index
    %c0_29 = arith.constant 0 : index
    %c5 = arith.constant 5 : index
    %c0_30 = arith.constant 0 : index
    %20 = vector.load %arg10[%c0_28, %c0_29, %c5, %c0_30] : memref<2x4x16x128xbf16, #tpu.memory_space<vmem>>, vector<2x1x8x128xbf16>
    %21 = vector.shape_cast %20 : vector<2x1x8x128xbf16> to vector<2x8x128xbf16>
    %22 = vector.shape_cast %21 : vector<2x8x128xbf16> to vector<16x128xbf16>
    %c2 = arith.constant 2 : index
    %c0_31 = arith.constant 0 : index
    %c0_32 = arith.constant 0 : index
    %23 = vector.load %arg2[%c2, %c0_31, %c0_32] : memref<3x128x128xbf16, #tpu.memory_space<vmem>>, vector<1x128x128xbf16>
    %24 = vector.shape_cast %23 : vector<1x128x128xbf16> to vector<128x128xbf16>
    %cst_33 = arith.constant dense<0.000000e+00> : vector<16x128xf32>
    %25 = tpu.matmul %22, %24, %cst_33 {dimension_numbers = #tpu.dot_dimension_numbers<[1], [0], [0], [1], [0, 0, 1, 1], [], []>} : vector<16x128xbf16>, vector<128x128xbf16>, vector<16x128xf32> -> vector<16x128xf32>
    %26 = arith.addf %19, %25 : vector<16x128xf32>
    %c0_34 = arith.constant 0 : index
    %c0_35 = arith.constant 0 : index
    %27 = vector.load %arg6[%c0_34, %c0_35] : memref<4x128xf32, #tpu.memory_space<vmem>>, vector<1x128xf32>
    %28 = vector.broadcast %27 : vector<1x128xf32> to vector<16x128xf32>
    %29 = arith.addf %26, %28 : vector<16x128xf32>
    %30 = vector.shape_cast %29 : vector<16x128xf32> to vector<2x8x128xf32>
    %c0_36 = arith.constant 0 : index
    %c0_37 = arith.constant 0 : index
    %c0_38 = arith.constant 0 : index
    %c0_39 = arith.constant 0 : index
    %31 = vector.load %arg9[%c0_36, %c0_37, %c0_38, %c0_39] : memref<2x4x8x128xf32, #tpu.memory_space<vmem>>, vector<2x1x8x128xf32>
    %32 = vector.shape_cast %31 : vector<2x1x8x128xf32> to vector<2x8x128xf32>
    %33 = vector.shape_cast %30 : vector<2x8x128xf32> to vector<2x1x8x128xf32>
    tpu.vector_store %arg9[%c0_36, %c0_37, %c0_38, %c0_39], %33 {strides = array<i32>} : memref<2x4x8x128xf32, #tpu.memory_space<vmem>>, vector<2x1x8x128xf32>,
    %cst_40 = arith.constant dense<0.000000e+00> : vector<2x128xf32>
    %34 = vector.multi_reduction <add>, %30, %cst_40 [1] : vector<2x8x128xf32> to vector<2x128xf32>
    %cst_41 = arith.constant 0.000000e+00 : f32
    %35 = vector.broadcast %cst_41 : f32 to vector<16x128xf32>
    %c0_42 = arith.constant 0 : index
    %c1_43 = arith.constant 1 : index
    %c2_44 = arith.constant 2 : index
    %c0_45 = arith.constant 0 : index
    %36 = vector.load %arg10[%c0_42, %c1_43, %c2_44, %c0_45] : memref<2x4x16x128xbf16, #tpu.memory_space<vmem>>, vector<2x1x8x128xbf16>
    %37 = vector.shape_cast %36 : vector<2x1x8x128xbf16> to vector<2x8x128xbf16>
    %38 = vector.shape_cast %37 : vector<2x8x128xbf16> to vector<16x128xbf16>
    %c0_46 = arith.constant 0 : index
    %c0_47 = arith.constant 0 : index
    %c0_48 = arith.constant 0 : index
    %39 = vector.load %arg3[%c0_46, %c0_47, %c0_48] : memref<5x128x128xbf16, #tpu.memory_space<vmem>>, vector<1x128x128xbf16>
    %40 = vector.shape_cast %39 : vector<1x128x128xbf16> to vector<128x128xbf16>
    %cst_49 = arith.constant dense<0.000000e+00> : vector<16x128xf32>
    %41 = tpu.matmul %38, %40, %cst_49 {dimension_numbers = #tpu.dot_dimension_numbers<[1], [0], [0], [1], [0, 0, 1, 1], [], []>} : vector<16x128xbf16>, vector<128x128xbf16>, vector<16x128xf32> -> vector<16x128xf32>
    %42 = arith.addf %35, %41 : vector<16x128xf32>
    %c0_50 = arith.constant 0 : index
    %c1_51 = arith.constant 1 : index
    %c3_52 = arith.constant 3 : index
    %c0_53 = arith.constant 0 : index
    %43 = vector.load %arg10[%c0_50, %c1_51, %c3_52, %c0_53] : memref<2x4x16x128xbf16, #tpu.memory_space<vmem>>, vector<2x1x8x128xbf16>
    %44 = vector.shape_cast %43 : vector<2x1x8x128xbf16> to vector<2x8x128xbf16>
    %45 = vector.shape_cast %44 : vector<2x8x128xbf16> to vector<16x128xbf16>
    %c1_54 = arith.constant 1 : index
    %c0_55 = arith.constant 0 : index
    %c0_56 = arith.constant 0 : index
    %46 = vector.load %arg3[%c1_54, %c0_55, %c0_56] : memref<5x128x128xbf16, #tpu.memory_space<vmem>>, vector<1x128x128xbf16>
    %47 = vector.shape_cast %46 : vector<1x128x128xbf16> to vector<128x128xbf16>
    %cst_57 = arith.constant dense<0.000000e+00> : vector<16x128xf32>
    %48 = tpu.matmul %45, %47, %cst_57 {dimension_numbers = #tpu.dot_dimension_numbers<[1], [0], [0], [1], [0, 0, 1, 1], [], []>} : vector<16x128xbf16>, vector<128x128xbf16>, vector<16x128xf32> -> vector<16x128xf32>
    %49 = arith.addf %42, %48 : vector<16x128xf32>
    %c0_58 = arith.constant 0 : index
    %c1_59 = arith.constant 1 : index
    %c4_60 = arith.constant 4 : index
    %c0_61 = arith.constant 0 : index
    %50 = vector.load %arg10[%c0_58, %c1_59, %c4_60, %c0_61] : memref<2x4x16x128xbf16, #tpu.memory_space<vmem>>, vector<2x1x8x128xbf16>
    %51 = vector.shape_cast %50 : vector<2x1x8x128xbf16> to vector<2x8x128xbf16>
    %52 = vector.shape_cast %51 : vector<2x8x128xbf16> to vector<16x128xbf16>
    %c2_62 = arith.constant 2 : index
    %c0_63 = arith.constant 0 : index
    %c0_64 = arith.constant 0 : index
    %53 = vector.load %arg3[%c2_62, %c0_63, %c0_64] : memref<5x128x128xbf16, #tpu.memory_space<vmem>>, vector<1x128x128xbf16>
    %54 = vector.shape_cast %53 : vector<1x128x128xbf16> to vector<128x128xbf16>
    %cst_65 = arith.constant dense<0.000000e+00> : vector<16x128xf32>
    %55 = tpu.matmul %52, %54, %cst_65 {dimension_numbers = #tpu.dot_dimension_numbers<[1], [0], [0], [1], [0, 0, 1, 1], [], []>} : vector<16x128xbf16>, vector<128x128xbf16>, vector<16x128xf32> -> vector<16x128xf32>
    %56 = arith.addf %49, %55 : vector<16x128xf32>
    %c0_66 = arith.constant 0 : index
    %c1_67 = arith.constant 1 : index
    %c5_68 = arith.constant 5 : index
    %c0_69 = arith.constant 0 : index
    %57 = vector.load %arg10[%c0_66, %c1_67, %c5_68, %c0_69] : memref<2x4x16x128xbf16, #tpu.memory_space<vmem>>, vector<2x1x8x128xbf16>
    %58 = vector.shape_cast %57 : vector<2x1x8x128xbf16> to vector<2x8x128xbf16>
    %59 = vector.shape_cast %58 : vector<2x8x128xbf16> to vector<16x128xbf16>
    %c3_70 = arith.constant 3 : index
    %c0_71 = arith.constant 0 : index
    %c0_72 = arith.constant 0 : index
    %60 = vector.load %arg3[%c3_70, %c0_71, %c0_72] : memref<5x128x128xbf16, #tpu.memory_space<vmem>>, vector<1x128x128xbf16>
    %61 = vector.shape_cast %60 : vector<1x128x128xbf16> to vector<128x128xbf16>
    %cst_73 = arith.constant dense<0.000000e+00> : vector<16x128xf32>
    %62 = tpu.matmul %59, %61, %cst_73 {dimension_numbers = #tpu.dot_dimension_numbers<[1], [0], [0], [1], [0, 0, 1, 1], [], []>} : vector<16x128xbf16>, vector<128x128xbf16>, vector<16x128xf32> -> vector<16x128xf32>
    %63 = arith.addf %56, %62 : vector<16x128xf32>
    %c0_74 = arith.constant 0 : index
    %c1_75 = arith.constant 1 : index
    %c6 = arith.constant 6 : index
    %c0_76 = arith.constant 0 : index
    %64 = vector.load %arg10[%c0_74, %c1_75, %c6, %c0_76] : memref<2x4x16x128xbf16, #tpu.memory_space<vmem>>, vector<2x1x8x128xbf16>
    %65 = vector.shape_cast %64 : vector<2x1x8x128xbf16> to vector<2x8x128xbf16>
    %66 = vector.shape_cast %65 : vector<2x8x128xbf16> to vector<16x128xbf16>
    %c4_77 = arith.constant 4 : index
    %c0_78 = arith.constant 0 : index
    %c0_79 = arith.constant 0 : index
    %67 = vector.load %arg3[%c4_77, %c0_78, %c0_79] : memref<5x128x128xbf16, #tpu.memory_space<vmem>>, vector<1x128x128xbf16>
    %68 = vector.shape_cast %67 : vector<1x128x128xbf16> to vector<128x128xbf16>
    %cst_80 = arith.constant dense<0.000000e+00> : vector<16x128xf32>
    %69 = tpu.matmul %66, %68, %cst_80 {dimension_numbers = #tpu.dot_dimension_numbers<[1], [0], [0], [1], [0, 0, 1, 1], [], []>} : vector<16x128xbf16>, vector<128x128xbf16>, vector<16x128xf32> -> vector<16x128xf32>
    %70 = arith.addf %63, %69 : vector<16x128xf32>
    %c1_81 = arith.constant 1 : index
    %c0_82 = arith.constant 0 : index
    %71 = vector.load %arg6[%c1_81, %c0_82] : memref<4x128xf32, #tpu.memory_space<vmem>>, vector<1x128xf32>
    %72 = vector.broadcast %71 : vector<1x128xf32> to vector<16x128xf32>
    %73 = arith.addf %70, %72 : vector<16x128xf32>
    %74 = vector.shape_cast %73 : vector<16x128xf32> to vector<2x8x128xf32>
    %c0_83 = arith.constant 0 : index
    %c1_84 = arith.constant 1 : index
    %c0_85 = arith.constant 0 : index
    %c0_86 = arith.constant 0 : index
    %75 = vector.load %arg9[%c0_83, %c1_84, %c0_85, %c0_86] : memref<2x4x8x128xf32, #tpu.memory_space<vmem>>, vector<2x1x8x128xf32>
    %76 = vector.shape_cast %75 : vector<2x1x8x128xf32> to vector<2x8x128xf32>
    %77 = vector.shape_cast %74 : vector<2x8x128xf32> to vector<2x1x8x128xf32>
    tpu.vector_store %arg9[%c0_83, %c1_84, %c0_85, %c0_86], %77 {strides = array<i32>} : memref<2x4x8x128xf32, #tpu.memory_space<vmem>>, vector<2x1x8x128xf32>,
    %cst_87 = arith.constant dense<0.000000e+00> : vector<2x128xf32>
    %78 = vector.multi_reduction <add>, %74, %cst_87 [1] : vector<2x8x128xf32> to vector<2x128xf32>
    %cst_88 = arith.constant 0.000000e+00 : f32
    %79 = vector.broadcast %cst_88 : f32 to vector<16x128xf32>
    %c0_89 = arith.constant 0 : index
    %c2_90 = arith.constant 2 : index
    %c1_91 = arith.constant 1 : index
    %c0_92 = arith.constant 0 : index
    %80 = vector.load %arg10[%c0_89, %c2_90, %c1_91, %c0_92] : memref<2x4x16x128xbf16, #tpu.memory_space<vmem>>, vector<2x1x8x128xbf16>
    %81 = vector.shape_cast %80 : vector<2x1x8x128xbf16> to vector<2x8x128xbf16>
    %82 = vector.shape_cast %81 : vector<2x8x128xbf16> to vector<16x128xbf16>
    %c0_93 = arith.constant 0 : index
    %c0_94 = arith.constant 0 : index
    %c0_95 = arith.constant 0 : index
    %83 = vector.load %arg4[%c0_93, %c0_94, %c0_95] : memref<7x128x128xbf16, #tpu.memory_space<vmem>>, vector<1x128x128xbf16>
    %84 = vector.shape_cast %83 : vector<1x128x128xbf16> to vector<128x128xbf16>
    %cst_96 = arith.constant dense<0.000000e+00> : vector<16x128xf32>
    %85 = tpu.matmul %82, %84, %cst_96 {dimension_numbers = #tpu.dot_dimension_numbers<[1], [0], [0], [1], [0, 0, 1, 1], [], []>} : vector<16x128xbf16>, vector<128x128xbf16>, vector<16x128xf32> -> vector<16x128xf32>
    %86 = arith.addf %79, %85 : vector<16x128xf32>
    %c0_97 = arith.constant 0 : index
    %c2_98 = arith.constant 2 : index
    %c2_99 = arith.constant 2 : index
    %c0_100 = arith.constant 0 : index
    %87 = vector.load %arg10[%c0_97, %c2_98, %c2_99, %c0_100] : memref<2x4x16x128xbf16, #tpu.memory_space<vmem>>, vector<2x1x8x128xbf16>
    %88 = vector.shape_cast %87 : vector<2x1x8x128xbf16> to vector<2x8x128xbf16>
    %89 = vector.shape_cast %88 : vector<2x8x128xbf16> to vector<16x128xbf16>
    %c1_101 = arith.constant 1 : index
    %c0_102 = arith.constant 0 : index
    %c0_103 = arith.constant 0 : index
    %90 = vector.load %arg4[%c1_101, %c0_102, %c0_103] : memref<7x128x128xbf16, #tpu.memory_space<vmem>>, vector<1x128x128xbf16>
    %91 = vector.shape_cast %90 : vector<1x128x128xbf16> to vector<128x128xbf16>
    %cst_104 = arith.constant dense<0.000000e+00> : vector<16x128xf32>
    %92 = tpu.matmul %89, %91, %cst_104 {dimension_numbers = #tpu.dot_dimension_numbers<[1], [0], [0], [1], [0, 0, 1, 1], [], []>} : vector<16x128xbf16>, vector<128x128xbf16>, vector<16x128xf32> -> vector<16x128xf32>
    %93 = arith.addf %86, %92 : vector<16x128xf32>
    %c0_105 = arith.constant 0 : index
    %c2_106 = arith.constant 2 : index
    %c3_107 = arith.constant 3 : index
    %c0_108 = arith.constant 0 : index
    %94 = vector.load %arg10[%c0_105, %c2_106, %c3_107, %c0_108] : memref<2x4x16x128xbf16, #tpu.memory_space<vmem>>, vector<2x1x8x128xbf16>
    %95 = vector.shape_cast %94 : vector<2x1x8x128xbf16> to vector<2x8x128xbf16>
    %96 = vector.shape_cast %95 : vector<2x8x128xbf16> to vector<16x128xbf16>
    %c2_109 = arith.constant 2 : index
    %c0_110 = arith.constant 0 : index
    %c0_111 = arith.constant 0 : index
    %97 = vector.load %arg4[%c2_109, %c0_110, %c0_111] : memref<7x128x128xbf16, #tpu.memory_space<vmem>>, vector<1x128x128xbf16>
    %98 = vector.shape_cast %97 : vector<1x128x128xbf16> to vector<128x128xbf16>
    %cst_112 = arith.constant dense<0.000000e+00> : vector<16x128xf32>
    %99 = tpu.matmul %96, %98, %cst_112 {dimension_numbers = #tpu.dot_dimension_numbers<[1], [0], [0], [1], [0, 0, 1, 1], [], []>} : vector<16x128xbf16>, vector<128x128xbf16>, vector<16x128xf32> -> vector<16x128xf32>
    %100 = arith.addf %93, %99 : vector<16x128xf32>
    %c0_113 = arith.constant 0 : index
    %c2_114 = arith.constant 2 : index
    %c4_115 = arith.constant 4 : index
    %c0_116 = arith.constant 0 : index
    %101 = vector.load %arg10[%c0_113, %c2_114, %c4_115, %c0_116] : memref<2x4x16x128xbf16, #tpu.memory_space<vmem>>, vector<2x1x8x128xbf16>
    %102 = vector.shape_cast %101 : vector<2x1x8x128xbf16> to vector<2x8x128xbf16>
    %103 = vector.shape_cast %102 : vector<2x8x128xbf16> to vector<16x128xbf16>
    %c3_117 = arith.constant 3 : index
    %c0_118 = arith.constant 0 : index
    %c0_119 = arith.constant 0 : index
    %104 = vector.load %arg4[%c3_117, %c0_118, %c0_119] : memref<7x128x128xbf16, #tpu.memory_space<vmem>>, vector<1x128x128xbf16>
    %105 = vector.shape_cast %104 : vector<1x128x128xbf16> to vector<128x128xbf16>
    %cst_120 = arith.constant dense<0.000000e+00> : vector<16x128xf32>
    %106 = tpu.matmul %103, %105, %cst_120 {dimension_numbers = #tpu.dot_dimension_numbers<[1], [0], [0], [1], [0, 0, 1, 1], [], []>} : vector<16x128xbf16>, vector<128x128xbf16>, vector<16x128xf32> -> vector<16x128xf32>
    %107 = arith.addf %100, %106 : vector<16x128xf32>
    %c0_121 = arith.constant 0 : index
    %c2_122 = arith.constant 2 : index
    %c5_123 = arith.constant 5 : index
    %c0_124 = arith.constant 0 : index
    %108 = vector.load %arg10[%c0_121, %c2_122, %c5_123, %c0_124] : memref<2x4x16x128xbf16, #tpu.memory_space<vmem>>, vector<2x1x8x128xbf16>
    %109 = vector.shape_cast %108 : vector<2x1x8x128xbf16> to vector<2x8x128xbf16>
    %110 = vector.shape_cast %109 : vector<2x8x128xbf16> to vector<16x128xbf16>
    %c4_125 = arith.constant 4 : index
    %c0_126 = arith.constant 0 : index
    %c0_127 = arith.constant 0 : index
    %111 = vector.load %arg4[%c4_125, %c0_126, %c0_127] : memref<7x128x128xbf16, #tpu.memory_space<vmem>>, vector<1x128x128xbf16>
    %112 = vector.shape_cast %111 : vector<1x128x128xbf16> to vector<128x128xbf16>
    %cst_128 = arith.constant dense<0.000000e+00> : vector<16x128xf32>
    %113 = tpu.matmul %110, %112, %cst_128 {dimension_numbers = #tpu.dot_dimension_numbers<[1], [0], [0], [1], [0, 0, 1, 1], [], []>} : vector<16x128xbf16>, vector<128x128xbf16>, vector<16x128xf32> -> vector<16x128xf32>
    %114 = arith.addf %107, %113 : vector<16x128xf32>
    %c0_129 = arith.constant 0 : index
    %c2_130 = arith.constant 2 : index
    %c6_131 = arith.constant 6 : index
    %c0_132 = arith.constant 0 : index
    %115 = vector.load %arg10[%c0_129, %c2_130, %c6_131, %c0_132] : memref<2x4x16x128xbf16, #tpu.memory_space<vmem>>, vector<2x1x8x128xbf16>
    %116 = vector.shape_cast %115 : vector<2x1x8x128xbf16> to vector<2x8x128xbf16>
    %117 = vector.shape_cast %116 : vector<2x8x128xbf16> to vector<16x128xbf16>
    %c5_133 = arith.constant 5 : index
    %c0_134 = arith.constant 0 : index
    %c0_135 = arith.constant 0 : index
    %118 = vector.load %arg4[%c5_133, %c0_134, %c0_135] : memref<7x128x128xbf16, #tpu.memory_space<vmem>>, vector<1x128x128xbf16>
    %119 = vector.shape_cast %118 : vector<1x128x128xbf16> to vector<128x128xbf16>
    %cst_136 = arith.constant dense<0.000000e+00> : vector<16x128xf32>
    %120 = tpu.matmul %117, %119, %cst_136 {dimension_numbers = #tpu.dot_dimension_numbers<[1], [0], [0], [1], [0, 0, 1, 1], [], []>} : vector<16x128xbf16>, vector<128x128xbf16>, vector<16x128xf32> -> vector<16x128xf32>
    %121 = arith.addf %114, %120 : vector<16x128xf32>
    %c0_137 = arith.constant 0 : index
    %c2_138 = arith.constant 2 : index
    %c7 = arith.constant 7 : index
    %c0_139 = arith.constant 0 : index
    %122 = vector.load %arg10[%c0_137, %c2_138, %c7, %c0_139] : memref<2x4x16x128xbf16, #tpu.memory_space<vmem>>, vector<2x1x8x128xbf16>
    %123 = vector.shape_cast %122 : vector<2x1x8x128xbf16> to vector<2x8x128xbf16>
    %124 = vector.shape_cast %123 : vector<2x8x128xbf16> to vector<16x128xbf16>
    %c6_140 = arith.constant 6 : index
    %c0_141 = arith.constant 0 : index
    %c0_142 = arith.constant 0 : index
    %125 = vector.load %arg4[%c6_140, %c0_141, %c0_142] : memref<7x128x128xbf16, #tpu.memory_space<vmem>>, vector<1x128x128xbf16>
    %126 = vector.shape_cast %125 : vector<1x128x128xbf16> to vector<128x128xbf16>
    %cst_143 = arith.constant dense<0.000000e+00> : vector<16x128xf32>
    %127 = tpu.matmul %124, %126, %cst_143 {dimension_numbers = #tpu.dot_dimension_numbers<[1], [0], [0], [1], [0, 0, 1, 1], [], []>} : vector<16x128xbf16>, vector<128x128xbf16>, vector<16x128xf32> -> vector<16x128xf32>
    %128 = arith.addf %121, %127 : vector<16x128xf32>
    %c2_144 = arith.constant 2 : index
    %c0_145 = arith.constant 0 : index
    %129 = vector.load %arg6[%c2_144, %c0_145] : memref<4x128xf32, #tpu.memory_space<vmem>>, vector<1x128xf32>
    %130 = vector.broadcast %129 : vector<1x128xf32> to vector<16x128xf32>
    %131 = arith.addf %128, %130 : vector<16x128xf32>
    %132 = vector.shape_cast %131 : vector<16x128xf32> to vector<2x8x128xf32>
    %c0_146 = arith.constant 0 : index
    %c2_147 = arith.constant 2 : index
    %c0_148 = arith.constant 0 : index
    %c0_149 = arith.constant 0 : index
    %133 = vector.load %arg9[%c0_146, %c2_147, %c0_148, %c0_149] : memref<2x4x8x128xf32, #tpu.memory_space<vmem>>, vector<2x1x8x128xf32>
    %134 = vector.shape_cast %133 : vector<2x1x8x128xf32> to vector<2x8x128xf32>
    %135 = vector.shape_cast %132 : vector<2x8x128xf32> to vector<2x1x8x128xf32>
    tpu.vector_store %arg9[%c0_146, %c2_147, %c0_148, %c0_149], %135 {strides = array<i32>} : memref<2x4x8x128xf32, #tpu.memory_space<vmem>>, vector<2x1x8x128xf32>,
    %cst_150 = arith.constant dense<0.000000e+00> : vector<2x128xf32>
    %136 = vector.multi_reduction <add>, %132, %cst_150 [1] : vector<2x8x128xf32> to vector<2x128xf32>
    %cst_151 = arith.constant 0.000000e+00 : f32
    %137 = vector.broadcast %cst_151 : f32 to vector<16x128xf32>
    %c0_152 = arith.constant 0 : index
    %c3_153 = arith.constant 3 : index
    %c0_154 = arith.constant 0 : index
    %c0_155 = arith.constant 0 : index
    %138 = vector.load %arg10[%c0_152, %c3_153, %c0_154, %c0_155] : memref<2x4x16x128xbf16, #tpu.memory_space<vmem>>, vector<2x1x8x128xbf16>
    %139 = vector.shape_cast %138 : vector<2x1x8x128xbf16> to vector<2x8x128xbf16>
    %140 = vector.shape_cast %139 : vector<2x8x128xbf16> to vector<16x128xbf16>
    %c0_156 = arith.constant 0 : index
    %c0_157 = arith.constant 0 : index
    %c0_158 = arith.constant 0 : index
    %141 = vector.load %arg5[%c0_156, %c0_157, %c0_158] : memref<9x128x128xbf16, #tpu.memory_space<vmem>>, vector<1x128x128xbf16>
    %142 = vector.shape_cast %141 : vector<1x128x128xbf16> to vector<128x128xbf16>
    %cst_159 = arith.constant dense<0.000000e+00> : vector<16x128xf32>
    %143 = tpu.matmul %140, %142, %cst_159 {dimension_numbers = #tpu.dot_dimension_numbers<[1], [0], [0], [1], [0, 0, 1, 1], [], []>} : vector<16x128xbf16>, vector<128x128xbf16>, vector<16x128xf32> -> vector<16x128xf32>
    %144 = arith.addf %137, %143 : vector<16x128xf32>
    %c0_160 = arith.constant 0 : index
    %c3_161 = arith.constant 3 : index
    %c1_162 = arith.constant 1 : index
    %c0_163 = arith.constant 0 : index
    %145 = vector.load %arg10[%c0_160, %c3_161, %c1_162, %c0_163] : memref<2x4x16x128xbf16, #tpu.memory_space<vmem>>, vector<2x1x8x128xbf16>
    %146 = vector.shape_cast %145 : vector<2x1x8x128xbf16> to vector<2x8x128xbf16>
    %147 = vector.shape_cast %146 : vector<2x8x128xbf16> to vector<16x128xbf16>
    %c1_164 = arith.constant 1 : index
    %c0_165 = arith.constant 0 : index
    %c0_166 = arith.constant 0 : index
    %148 = vector.load %arg5[%c1_164, %c0_165, %c0_166] : memref<9x128x128xbf16, #tpu.memory_space<vmem>>, vector<1x128x128xbf16>
    %149 = vector.shape_cast %148 : vector<1x128x128xbf16> to vector<128x128xbf16>
    %cst_167 = arith.constant dense<0.000000e+00> : vector<16x128xf32>
    %150 = tpu.matmul %147, %149, %cst_167 {dimension_numbers = #tpu.dot_dimension_numbers<[1], [0], [0], [1], [0, 0, 1, 1], [], []>} : vector<16x128xbf16>, vector<128x128xbf16>, vector<16x128xf32> -> vector<16x128xf32>
    %151 = arith.addf %144, %150 : vector<16x128xf32>
    %c0_168 = arith.constant 0 : index
    %c3_169 = arith.constant 3 : index
    %c2_170 = arith.constant 2 : index
    %c0_171 = arith.constant 0 : index
    %152 = vector.load %arg10[%c0_168, %c3_169, %c2_170, %c0_171] : memref<2x4x16x128xbf16, #tpu.memory_space<vmem>>, vector<2x1x8x128xbf16>
    %153 = vector.shape_cast %152 : vector<2x1x8x128xbf16> to vector<2x8x128xbf16>
    %154 = vector.shape_cast %153 : vector<2x8x128xbf16> to vector<16x128xbf16>
    %c2_172 = arith.constant 2 : index
    %c0_173 = arith.constant 0 : index
    %c0_174 = arith.constant 0 : index
    %155 = vector.load %arg5[%c2_172, %c0_173, %c0_174] : memref<9x128x128xbf16, #tpu.memory_space<vmem>>, vector<1x128x128xbf16>
    %156 = vector.shape_cast %155 : vector<1x128x128xbf16> to vector<128x128xbf16>
    %cst_175 = arith.constant dense<0.000000e+00> : vector<16x128xf32>
    %157 = tpu.matmul %154, %156, %cst_175 {dimension_numbers = #tpu.dot_dimension_numbers<[1], [0], [0], [1], [0, 0, 1, 1], [], []>} : vector<16x128xbf16>, vector<128x128xbf16>, vector<16x128xf32> -> vector<16x128xf32>
    %158 = arith.addf %151, %157 : vector<16x128xf32>
    %c0_176 = arith.constant 0 : index
    %c3_177 = arith.constant 3 : index
    %c3_178 = arith.constant 3 : index
    %c0_179 = arith.constant 0 : index
    %159 = vector.load %arg10[%c0_176, %c3_177, %c3_178, %c0_179] : memref<2x4x16x128xbf16, #tpu.memory_space<vmem>>, vector<2x1x8x128xbf16>
    %160 = vector.shape_cast %159 : vector<2x1x8x128xbf16> to vector<2x8x128xbf16>
    %161 = vector.shape_cast %160 : vector<2x8x128xbf16> to vector<16x128xbf16>
    %c3_180 = arith.constant 3 : index
    %c0_181 = arith.constant 0 : index
    %c0_182 = arith.constant 0 : index
    %162 = vector.load %arg5[%c3_180, %c0_181, %c0_182] : memref<9x128x128xbf16, #tpu.memory_space<vmem>>, vector<1x128x128xbf16>
    %163 = vector.shape_cast %162 : vector<1x128x128xbf16> to vector<128x128xbf16>
    %cst_183 = arith.constant dense<0.000000e+00> : vector<16x128xf32>
    %164 = tpu.matmul %161, %163, %cst_183 {dimension_numbers = #tpu.dot_dimension_numbers<[1], [0], [0], [1], [0, 0, 1, 1], [], []>} : vector<16x128xbf16>, vector<128x128xbf16>, vector<16x128xf32> -> vector<16x128xf32>
    %165 = arith.addf %158, %164 : vector<16x128xf32>
    %c0_184 = arith.constant 0 : index
    %c3_185 = arith.constant 3 : index
    %c4_186 = arith.constant 4 : index
    %c0_187 = arith.constant 0 : index
    %166 = vector.load %arg10[%c0_184, %c3_185, %c4_186, %c0_187] : memref<2x4x16x128xbf16, #tpu.memory_space<vmem>>, vector<2x1x8x128xbf16>
    %167 = vector.shape_cast %166 : vector<2x1x8x128xbf16> to vector<2x8x128xbf16>
    %168 = vector.shape_cast %167 : vector<2x8x128xbf16> to vector<16x128xbf16>
    %c4_188 = arith.constant 4 : index
    %c0_189 = arith.constant 0 : index
    %c0_190 = arith.constant 0 : index
    %169 = vector.load %arg5[%c4_188, %c0_189, %c0_190] : memref<9x128x128xbf16, #tpu.memory_space<vmem>>, vector<1x128x128xbf16>
    %170 = vector.shape_cast %169 : vector<1x128x128xbf16> to vector<128x128xbf16>
    %cst_191 = arith.constant dense<0.000000e+00> : vector<16x128xf32>
    %171 = tpu.matmul %168, %170, %cst_191 {dimension_numbers = #tpu.dot_dimension_numbers<[1], [0], [0], [1], [0, 0, 1, 1], [], []>} : vector<16x128xbf16>, vector<128x128xbf16>, vector<16x128xf32> -> vector<16x128xf32>
    %172 = arith.addf %165, %171 : vector<16x128xf32>
    %c0_192 = arith.constant 0 : index
    %c3_193 = arith.constant 3 : index
    %c5_194 = arith.constant 5 : index
    %c0_195 = arith.constant 0 : index
    %173 = vector.load %arg10[%c0_192, %c3_193, %c5_194, %c0_195] : memref<2x4x16x128xbf16, #tpu.memory_space<vmem>>, vector<2x1x8x128xbf16>
    %174 = vector.shape_cast %173 : vector<2x1x8x128xbf16> to vector<2x8x128xbf16>
    %175 = vector.shape_cast %174 : vector<2x8x128xbf16> to vector<16x128xbf16>
    %c5_196 = arith.constant 5 : index
    %c0_197 = arith.constant 0 : index
    %c0_198 = arith.constant 0 : index
    %176 = vector.load %arg5[%c5_196, %c0_197, %c0_198] : memref<9x128x128xbf16, #tpu.memory_space<vmem>>, vector<1x128x128xbf16>
    %177 = vector.shape_cast %176 : vector<1x128x128xbf16> to vector<128x128xbf16>
    %cst_199 = arith.constant dense<0.000000e+00> : vector<16x128xf32>
    %178 = tpu.matmul %175, %177, %cst_199 {dimension_numbers = #tpu.dot_dimension_numbers<[1], [0], [0], [1], [0, 0, 1, 1], [], []>} : vector<16x128xbf16>, vector<128x128xbf16>, vector<16x128xf32> -> vector<16x128xf32>
    %179 = arith.addf %172, %178 : vector<16x128xf32>
    %c0_200 = arith.constant 0 : index
    %c3_201 = arith.constant 3 : index
    %c6_202 = arith.constant 6 : index
    %c0_203 = arith.constant 0 : index
    %180 = vector.load %arg10[%c0_200, %c3_201, %c6_202, %c0_203] : memref<2x4x16x128xbf16, #tpu.memory_space<vmem>>, vector<2x1x8x128xbf16>
    %181 = vector.shape_cast %180 : vector<2x1x8x128xbf16> to vector<2x8x128xbf16>
    %182 = vector.shape_cast %181 : vector<2x8x128xbf16> to vector<16x128xbf16>
    %c6_204 = arith.constant 6 : index
    %c0_205 = arith.constant 0 : index
    %c0_206 = arith.constant 0 : index
    %183 = vector.load %arg5[%c6_204, %c0_205, %c0_206] : memref<9x128x128xbf16, #tpu.memory_space<vmem>>, vector<1x128x128xbf16>
    %184 = vector.shape_cast %183 : vector<1x128x128xbf16> to vector<128x128xbf16>
    %cst_207 = arith.constant dense<0.000000e+00> : vector<16x128xf32>
    %185 = tpu.matmul %182, %184, %cst_207 {dimension_numbers = #tpu.dot_dimension_numbers<[1], [0], [0], [1], [0, 0, 1, 1], [], []>} : vector<16x128xbf16>, vector<128x128xbf16>, vector<16x128xf32> -> vector<16x128xf32>
    %186 = arith.addf %179, %185 : vector<16x128xf32>
    %c0_208 = arith.constant 0 : index
    %c3_209 = arith.constant 3 : index
    %c7_210 = arith.constant 7 : index
    %c0_211 = arith.constant 0 : index
    %187 = vector.load %arg10[%c0_208, %c3_209, %c7_210, %c0_211] : memref<2x4x16x128xbf16, #tpu.memory_space<vmem>>, vector<2x1x8x128xbf16>
    %188 = vector.shape_cast %187 : vector<2x1x8x128xbf16> to vector<2x8x128xbf16>
    %189 = vector.shape_cast %188 : vector<2x8x128xbf16> to vector<16x128xbf16>
    %c7_212 = arith.constant 7 : index
    %c0_213 = arith.constant 0 : index
    %c0_214 = arith.constant 0 : index
    %190 = vector.load %arg5[%c7_212, %c0_213, %c0_214] : memref<9x128x128xbf16, #tpu.memory_space<vmem>>, vector<1x128x128xbf16>
    %191 = vector.shape_cast %190 : vector<1x128x128xbf16> to vector<128x128xbf16>
    %cst_215 = arith.constant dense<0.000000e+00> : vector<16x128xf32>
    %192 = tpu.matmul %189, %191, %cst_215 {dimension_numbers = #tpu.dot_dimension_numbers<[1], [0], [0], [1], [0, 0, 1, 1], [], []>} : vector<16x128xbf16>, vector<128x128xbf16>, vector<16x128xf32> -> vector<16x128xf32>
    %193 = arith.addf %186, %192 : vector<16x128xf32>
    %c0_216 = arith.constant 0 : index
    %c3_217 = arith.constant 3 : index
    %c8 = arith.constant 8 : index
    %c0_218 = arith.constant 0 : index
    %194 = vector.load %arg10[%c0_216, %c3_217, %c8, %c0_218] : memref<2x4x16x128xbf16, #tpu.memory_space<vmem>>, vector<2x1x8x128xbf16>
    %195 = vector.shape_cast %194 : vector<2x1x8x128xbf16> to vector<2x8x128xbf16>
    %196 = vector.shape_cast %195 : vector<2x8x128xbf16> to vector<16x128xbf16>
    %c8_219 = arith.constant 8 : index
    %c0_220 = arith.constant 0 : index
    %c0_221 = arith.constant 0 : index
    %197 = vector.load %arg5[%c8_219, %c0_220, %c0_221] : memref<9x128x128xbf16, #tpu.memory_space<vmem>>, vector<1x128x128xbf16>
    %198 = vector.shape_cast %197 : vector<1x128x128xbf16> to vector<128x128xbf16>
    %cst_222 = arith.constant dense<0.000000e+00> : vector<16x128xf32>
    %199 = tpu.matmul %196, %198, %cst_222 {dimension_numbers = #tpu.dot_dimension_numbers<[1], [0], [0], [1], [0, 0, 1, 1], [], []>} : vector<16x128xbf16>, vector<128x128xbf16>, vector<16x128xf32> -> vector<16x128xf32>
    %200 = arith.addf %193, %199 : vector<16x128xf32>
    %c3_223 = arith.constant 3 : index
    %c0_224 = arith.constant 0 : index
    %201 = vector.load %arg6[%c3_223, %c0_224] : memref<4x128xf32, #tpu.memory_space<vmem>>, vector<1x128xf32>
    %202 = vector.broadcast %201 : vector<1x128xf32> to vector<16x128xf32>
    %203 = arith.addf %200, %202 : vector<16x128xf32>
    %204 = vector.shape_cast %203 : vector<16x128xf32> to vector<2x8x128xf32>
    %c0_225 = arith.constant 0 : index
    %c3_226 = arith.constant 3 : index
    %c0_227 = arith.constant 0 : index
    %c0_228 = arith.constant 0 : index
    %205 = vector.load %arg9[%c0_225, %c3_226, %c0_227, %c0_228] : memref<2x4x8x128xf32, #tpu.memory_space<vmem>>, vector<2x1x8x128xf32>
    %206 = vector.shape_cast %205 : vector<2x1x8x128xf32> to vector<2x8x128xf32>
    %207 = vector.shape_cast %204 : vector<2x8x128xf32> to vector<2x1x8x128xf32>
    tpu.vector_store %arg9[%c0_225, %c3_226, %c0_227, %c0_228], %207 {strides = array<i32>} : memref<2x4x8x128xf32, #tpu.memory_space<vmem>>, vector<2x1x8x128xf32>,
    %cst_229 = arith.constant dense<0.000000e+00> : vector<2x128xf32>
    %208 = vector.multi_reduction <add>, %204, %cst_229 [1] : vector<2x8x128xf32> to vector<2x128xf32>
    %209 = vector.shape_cast %34 : vector<2x128xf32> to vector<1x2x128xf32>
    %210 = vector.shape_cast %78 : vector<2x128xf32> to vector<1x2x128xf32>
    %211 = vector.shape_cast %136 : vector<2x128xf32> to vector<1x2x128xf32>
    %212 = vector.shape_cast %208 : vector<2x128xf32> to vector<1x2x128xf32>
    %213 = tpu.concatenate %209, %210, %211, %212 in 0 : vector<1x2x128xf32>, vector<1x2x128xf32>, vector<1x2x128xf32>, vector<1x2x128xf32> -> vector<4x2x128xf32>
    %c0_230 = arith.constant 0 : index
    %c0_231 = arith.constant 0 : index
    %c0_232 = arith.constant 0 : index
    %214 = vector.load %arg7[%c0_230, %c0_231, %c0_232] : memref<4x128x4xf32, #tpu.memory_space<vmem>>, vector<4x128x4xf32>
    "tpu.trace_start"() <{level = 10 : i32, message = "stl,slr->str"}> : () -> ()
    %cst_233 = arith.constant dense<0.000000e+00> : vector<4x2x4xf32>
    %215 = tpu.matmul %213, %214, %cst_233 {dimension_numbers = #tpu.dot_dimension_numbers<[2], [1], [1], [2], [0, 0, 0, 1, 1, 2], [0], [0]>} : vector<4x2x128xf32>, vector<4x128x4xf32>, vector<4x2x4xf32> -> vector<4x2x4xf32>
    "tpu.trace_stop"() : () -> ()
    %cst_234 = arith.constant 0.000000e+00 : f32
    %216 = vector.broadcast %cst_234 : f32 to vector<4x2x4xf32>
    %217 = arith.maximumf %215, %216 : vector<4x2x4xf32>
    %c0_235 = arith.constant 0 : index
    %c0_236 = arith.constant 0 : index
    %c0_237 = arith.constant 0 : index
    %218 = vector.load %arg8[%c0_235, %c0_236, %c0_237] : memref<4x4x128xf32, #tpu.memory_space<vmem>>, vector<4x4x128xf32>
    "tpu.trace_start"() <{level = 10 : i32, message = "str,srl->stl"}> : () -> ()
    %cst_238 = arith.constant dense<0.000000e+00> : vector<4x2x128xf32>
    %219 = tpu.matmul %217, %218, %cst_238 {dimension_numbers = #tpu.dot_dimension_numbers<[2], [1], [1], [2], [0, 0, 0, 1, 1, 2], [0], [0]>} : vector<4x2x4xf32>, vector<4x4x128xf32>, vector<4x2x128xf32> -> vector<4x2x128xf32>
    "tpu.trace_stop"() : () -> ()
    %220 = arith.negf %219 : vector<4x2x128xf32>
    %221 = math.exp %220 : vector<4x2x128xf32>
    %cst_239 = arith.constant 1.000000e+00 : f32
    %222 = vector.broadcast %cst_239 : f32 to vector<4x2x128xf32>
    %223 = arith.addf %222, %221 : vector<4x2x128xf32>
    %224 = arith.divf %222, %223 : vector<4x2x128xf32>
    %cst_240 = arith.constant dense<0xFF800000> : vector<2x128xf32>
    %225 = vector.multi_reduction <maximumf>, %224, %cst_240 [0] : vector<4x2x128xf32> to vector<2x128xf32>
    %cst_241 = arith.constant 0xFF800000 : f32
    %226 = vector.broadcast %cst_241 : f32 to vector<2x128xf32>
    %227 = arith.maximumf %226, %225 : vector<2x128xf32>
    %228 = vector.shape_cast %227 : vector<2x128xf32> to vector<1x2x128xf32>
    %229 = vector.broadcast %228 : vector<1x2x128xf32> to vector<4x2x128xf32>
    %230 = arith.subf %224, %229 : vector<4x2x128xf32>
    %231 = math.exp %230 : vector<4x2x128xf32>
    %cst_242 = arith.constant dense<0.000000e+00> : vector<2x128xf32>
    %232 = vector.multi_reduction <add>, %231, %cst_242 [0] : vector<4x2x128xf32> to vector<2x128xf32>
    %233 = vector.shape_cast %232 : vector<2x128xf32> to vector<1x2x128xf32>
    %234 = vector.broadcast %233 : vector<1x2x128xf32> to vector<4x2x128xf32>
    %235 = arith.divf %231, %234 : vector<4x2x128xf32>
    %c0_243 = arith.constant 0 : index
    %c0_244 = arith.constant 0 : index
    %c0_245 = arith.constant 0 : index
    %c0_246 = arith.constant 0 : index
    %236 = vector.load %arg9[%c0_243, %c0_244, %c0_245, %c0_246] : memref<2x4x8x128xf32, #tpu.memory_space<vmem>>, vector<2x1x8x128xf32>
    %237 = vector.shape_cast %236 : vector<2x1x8x128xf32> to vector<2x8x128xf32>
    %238 = vector.extract_strided_slice %235 {offsets = [0, 0, 0], sizes = [1, 2, 128], strides = [1, 1, 1]} : vector<4x2x128xf32> to vector<1x2x128xf32>
    %239 = vector.shape_cast %238 : vector<1x2x128xf32> to vector<2x128xf32>
    %240 = vector.shape_cast %239 : vector<2x128xf32> to vector<2x1x128xf32>
    %241 = vector.broadcast %240 : vector<2x1x128xf32> to vector<2x8x128xf32>
    %242 = arith.mulf %237, %241 : vector<2x8x128xf32>
    %c0_247 = arith.constant 0 : index
    %c0_248 = arith.constant 0 : index
    %c0_249 = arith.constant 0 : index
    %c0_250 = arith.constant 0 : index
    %243 = vector.load %arg9[%c0_247, %c0_248, %c0_249, %c0_250] : memref<2x4x8x128xf32, #tpu.memory_space<vmem>>, vector<2x1x8x128xf32>
    %244 = vector.shape_cast %243 : vector<2x1x8x128xf32> to vector<2x8x128xf32>
    %245 = vector.shape_cast %242 : vector<2x8x128xf32> to vector<2x1x8x128xf32>
    tpu.vector_store %arg9[%c0_247, %c0_248, %c0_249, %c0_250], %245 {strides = array<i32>} : memref<2x4x8x128xf32, #tpu.memory_space<vmem>>, vector<2x1x8x128xf32>,
    %c0_251 = arith.constant 0 : index
    %c1_252 = arith.constant 1 : index
    %c0_253 = arith.constant 0 : index
    %c0_254 = arith.constant 0 : index
    %246 = vector.load %arg9[%c0_251, %c1_252, %c0_253, %c0_254] : memref<2x4x8x128xf32, #tpu.memory_space<vmem>>, vector<2x1x8x128xf32>
    %247 = vector.shape_cast %246 : vector<2x1x8x128xf32> to vector<2x8x128xf32>
    %248 = vector.extract_strided_slice %235 {offsets = [1, 0, 0], sizes = [1, 2, 128], strides = [1, 1, 1]} : vector<4x2x128xf32> to vector<1x2x128xf32>
    %249 = vector.shape_cast %248 : vector<1x2x128xf32> to vector<2x128xf32>
    %250 = vector.shape_cast %249 : vector<2x128xf32> to vector<2x1x128xf32>
    %251 = vector.broadcast %250 : vector<2x1x128xf32> to vector<2x8x128xf32>
    %252 = arith.mulf %247, %251 : vector<2x8x128xf32>
    %c0_255 = arith.constant 0 : index
    %c1_256 = arith.constant 1 : index
    %c0_257 = arith.constant 0 : index
    %c0_258 = arith.constant 0 : index
    %253 = vector.load %arg9[%c0_255, %c1_256, %c0_257, %c0_258] : memref<2x4x8x128xf32, #tpu.memory_space<vmem>>, vector<2x1x8x128xf32>
    %254 = vector.shape_cast %253 : vector<2x1x8x128xf32> to vector<2x8x128xf32>
    %255 = vector.shape_cast %252 : vector<2x8x128xf32> to vector<2x1x8x128xf32>
    tpu.vector_store %arg9[%c0_255, %c1_256, %c0_257, %c0_258], %255 {strides = array<i32>} : memref<2x4x8x128xf32, #tpu.memory_space<vmem>>, vector<2x1x8x128xf32>,
    %c0_259 = arith.constant 0 : index
    %c2_260 = arith.constant 2 : index
    %c0_261 = arith.constant 0 : index
    %c0_262 = arith.constant 0 : index
    %256 = vector.load %arg9[%c0_259, %c2_260, %c0_261, %c0_262] : memref<2x4x8x128xf32, #tpu.memory_space<vmem>>, vector<2x1x8x128xf32>
    %257 = vector.shape_cast %256 : vector<2x1x8x128xf32> to vector<2x8x128xf32>
    %258 = vector.extract_strided_slice %235 {offsets = [2, 0, 0], sizes = [1, 2, 128], strides = [1, 1, 1]} : vector<4x2x128xf32> to vector<1x2x128xf32>
    %259 = vector.shape_cast %258 : vector<1x2x128xf32> to vector<2x128xf32>
    %260 = vector.shape_cast %259 : vector<2x128xf32> to vector<2x1x128xf32>
    %261 = vector.broadcast %260 : vector<2x1x128xf32> to vector<2x8x128xf32>
    %262 = arith.mulf %257, %261 : vector<2x8x128xf32>
    %c0_263 = arith.constant 0 : index
    %c2_264 = arith.constant 2 : index
    %c0_265 = arith.constant 0 : index
    %c0_266 = arith.constant 0 : index
    %263 = vector.load %arg9[%c0_263, %c2_264, %c0_265, %c0_266] : memref<2x4x8x128xf32, #tpu.memory_space<vmem>>, vector<2x1x8x128xf32>
    %264 = vector.shape_cast %263 : vector<2x1x8x128xf32> to vector<2x8x128xf32>
    %265 = vector.shape_cast %262 : vector<2x8x128xf32> to vector<2x1x8x128xf32>
    tpu.vector_store %arg9[%c0_263, %c2_264, %c0_265, %c0_266], %265 {strides = array<i32>} : memref<2x4x8x128xf32, #tpu.memory_space<vmem>>, vector<2x1x8x128xf32>,
    %c0_267 = arith.constant 0 : index
    %c3_268 = arith.constant 3 : index
    %c0_269 = arith.constant 0 : index
    %c0_270 = arith.constant 0 : index
    %266 = vector.load %arg9[%c0_267, %c3_268, %c0_269, %c0_270] : memref<2x4x8x128xf32, #tpu.memory_space<vmem>>, vector<2x1x8x128xf32>
    %267 = vector.shape_cast %266 : vector<2x1x8x128xf32> to vector<2x8x128xf32>
    %268 = vector.extract_strided_slice %235 {offsets = [3, 0, 0], sizes = [1, 2, 128], strides = [1, 1, 1]} : vector<4x2x128xf32> to vector<1x2x128xf32>
    %269 = vector.shape_cast %268 : vector<1x2x128xf32> to vector<2x128xf32>
    %270 = vector.shape_cast %269 : vector<2x128xf32> to vector<2x1x128xf32>
    %271 = vector.broadcast %270 : vector<2x1x128xf32> to vector<2x8x128xf32>
    %272 = arith.mulf %267, %271 : vector<2x8x128xf32>
    %c0_271 = arith.constant 0 : index
    %c3_272 = arith.constant 3 : index
    %c0_273 = arith.constant 0 : index
    %c0_274 = arith.constant 0 : index
    %273 = vector.load %arg9[%c0_271, %c3_272, %c0_273, %c0_274] : memref<2x4x8x128xf32, #tpu.memory_space<vmem>>, vector<2x1x8x128xf32>
    %274 = vector.shape_cast %273 : vector<2x1x8x128xf32> to vector<2x8x128xf32>
    %275 = vector.shape_cast %272 : vector<2x8x128xf32> to vector<2x1x8x128xf32>
    tpu.vector_store %arg9[%c0_271, %c3_272, %c0_273, %c0_274], %275 {strides = array<i32>} : memref<2x4x8x128xf32, #tpu.memory_space<vmem>>, vector<2x1x8x128xf32>,
    return
  }
  func.func @transform_0(%arg0: i32) -> (i32, i32, i32, i32) {
    %c0_i32 = arith.constant 0 : i32
    %c0_i32_0 = arith.constant 0 : i32
    %c0_i32_1 = arith.constant 0 : i32
    %c0_i32_2 = arith.constant 0 : i32
    return %arg0, %c0_i32, %c0_i32_0, %c0_i32_1 : i32, i32, i32, i32
  }
  func.func @transform_1(%arg0: i32) -> (i32, i32, i32) {
    %c0_i32 = arith.constant 0 : i32
    %c0_i32_0 = arith.constant 0 : i32
    %c0_i32_1 = arith.constant 0 : i32
    %c0_i32_2 = arith.constant 0 : i32
    return %c0_i32, %c0_i32_0, %c0_i32_1 : i32, i32, i32
  }
  func.func @transform_2(%arg0: i32) -> (i32, i32, i32) {
    %c0_i32 = arith.constant 0 : i32
    %c0_i32_0 = arith.constant 0 : i32
    %c0_i32_1 = arith.constant 0 : i32
    %c0_i32_2 = arith.constant 0 : i32
    return %c0_i32, %c0_i32_0, %c0_i32_1 : i32, i32, i32
  }
  func.func @transform_3(%arg0: i32) -> (i32, i32, i32) {
    %c0_i32 = arith.constant 0 : i32
    %c0_i32_0 = arith.constant 0 : i32
    %c0_i32_1 = arith.constant 0 : i32
    %c0_i32_2 = arith.constant 0 : i32
    return %c0_i32, %c0_i32_0, %c0_i32_1 : i32, i32, i32
  }
  func.func @transform_4(%arg0: i32) -> (i32, i32, i32) {
    %c0_i32 = arith.constant 0 : i32
    %c0_i32_0 = arith.constant 0 : i32
    %c0_i32_1 = arith.constant 0 : i32
    %c0_i32_2 = arith.constant 0 : i32
    return %c0_i32, %c0_i32_0, %c0_i32_1 : i32, i32, i32
  }
  func.func @transform_5(%arg0: i32) -> (i32, i32) {
    %c0_i32 = arith.constant 0 : i32
    %c0_i32_0 = arith.constant 0 : i32
    %c0_i32_1 = arith.constant 0 : i32
    return %c0_i32, %c0_i32_0 : i32, i32
  }
  func.func @transform_6(%arg0: i32) -> (i32, i32, i32) {
    %c0_i32 = arith.constant 0 : i32
    %c0_i32_0 = arith.constant 0 : i32
    %c0_i32_1 = arith.constant 0 : i32
    %c0_i32_2 = arith.constant 0 : i32
    return %c0_i32, %c0_i32_0, %c0_i32_1 : i32, i32, i32
  }
  func.func @transform_7(%arg0: i32) -> (i32, i32, i32) {
    %c0_i32 = arith.constant 0 : i32
    %c0_i32_0 = arith.constant 0 : i32
    %c0_i32_1 = arith.constant 0 : i32
    %c0_i32_2 = arith.constant 0 : i32
    return %c0_i32, %c0_i32_0, %c0_i32_1 : i32, i32, i32
  }
  func.func @transform_8(%arg0: i32) -> (i32, i32, i32, i32) {
    %c0_i32 = arith.constant 0 : i32
    %c0_i32_0 = arith.constant 0 : i32
    %c0_i32_1 = arith.constant 0 : i32
    %c0_i32_2 = arith.constant 0 : i32
    return %arg0, %c0_i32, %c0_i32_0, %c0_i32_1 : i32, i32, i32, i32
  }
}

</mosaic_0001>

<bundles_post_ra>
// kernel: tile.63
= control target key start
LH: loop header
LB: loop body
LE: loop exit
PB: predicated region body
PF: predicated region fallthrough
CT: control target
= control target key end

     0   :  { %s22_s0 = inlined_call_operand.vmem [shape: f32[16], index: 0, kind: input, shape index: {}]   ;;  %s23_s1 = inlined_call_operand.vmem [shape: f32[8,16], index: 1, kind: output, shape index: {}]  }
   0x1   :  { %v4_v0 = vld [vmem:[%s22_s0] ss:$0 sm:$0xff] }
   0x2   :  { %5 = vst [vmem:[%s23_s1] sm:$0xff] %v4_v0 }

// kernel: tile.76
= control target key start
LH: loop header
LB: loop body
LE: loop exit
PB: predicated region body
PF: predicated region fallthrough
CT: control target
= control target key end

     0   :  { %s67_s10 = smov 112   ;;  %s68_s11 = smov 80   ;;  %vm3_vm0 = vcmask 130048   ;;  %vm9_vm1 = vcmask 1048448   ;;  %vm15_vm2 = vcmask 917248   ;;  %vm21_vm3 = vcmask 786048   ;;  %s111_s0 = inlined_call_operand.vmem [shape: f32[8,16], index: 0, kind: input, shape index: {}]   ;;  %s112_s1 = inlined_call_operand.vmem [shape: f32[1,128], index: 1, kind: output, shape index: {}]  }
   0x1   :  { %v53_v0 = vld [vmem:[%s111_s0 + $0x7] sm:$0x1]   ;;  %v55_v1 = vld [vmem:[%s111_s0 + $0x5] sm:$0x1]   ;;  %v54_v2 = vld [vmem:[%s111_s0 + $0x6] sm:$0x1]  }
   0x2   :  { %7 = vrot.lane.b32.xlu0 %v53_v0, %s67_s10  ;;  %19 = vrot.lane.b32.xlu1 %v55_v1, %s68_s11  ;;  %v56_v3 = vld [vmem:[%s111_s0 + $0x4] sm:$0x1]   ;;  %v2_v4 = vld [vmem:[%s111_s0] sm:$0x1]   ;;  %s69_s18 = smov 96   ;;  %s70_s19 = smov 64  }
   0x3   :  { %4 = vst.msk [vmem:[#allocation0] sm:$0x1] %vm3_vm0, %v2_v4   ;;  %v57_v5 = vld [vmem:[%s111_s0 + $0x3] sm:$0x1]   ;;  %v58_v6 = vld [vmem:[%s111_s0 + $0x2] sm:$0x1]  }
   0x4   :  { %s71_s24 = smov 48   ;;  %s72_s25 = smov 32   ;;  %v59_v7 = vld [vmem:[%s111_s0 + $0x1] sm:$0x1]   ;;  %vm27_vm4 = vcmask 654848   ;;  %vm33_vm5 = vcmask 523648  }
   0x5   :  { %s73_s0 = smov 16   ;;  %vm39_vm6 = vcmask 392448   ;;  %vm45_vm7 = vcmask 261248  }
   0x6   :  { %13 = vrot.lane.b32.xlu0 %v54_v2, %s69_s18  ;;  %25 = vrot.lane.b32.xlu1 %v56_v3, %s70_s19 }
   0xa   :  { %31 = vrot.lane.b32.xlu0 %v57_v5, %s71_s24  ;;  %37 = vrot.lane.b32.xlu1 %v58_v6, %s72_s25 }
   0xe   :  { %43 = vrot.lane.b32.xlu0 %v59_v7, %s73_s0 }
  0x74   :  { %v8_v8 = vpop.permute.xlu0 %7   ;;  %v20_v9 = vpop.permute.xlu1 %19  }
  0x75   :  { %10 = vst.msk [vmem:[#allocation0] sm:$0x1] %vm9_vm1, %v8_v8  }
  0x78   :  { %v14_v10 = vpop.permute.xlu0 %13   ;;  %v26_v11 = vpop.permute.xlu1 %25  }
  0x79   :  { %16 = vst.msk [vmem:[#allocation0] sm:$0x1] %vm15_vm2, %v14_v10  }
  0x7a   :  { %22 = vst.msk [vmem:[#allocation0] sm:$0x1] %vm21_vm3, %v20_v9  }
  0x7b   :  { %28 = vst.msk [vmem:[#allocation0] sm:$0x1] %vm27_vm4, %v26_v11  }
  0x7c   :  { %v32_v12 = vpop.permute.xlu0 %31   ;;  %v38_v13 = vpop.permute.xlu1 %37  }
  0x7d   :  { %34 = vst.msk [vmem:[#allocation0] sm:$0x1] %vm33_vm5, %v32_v12  }
  0x7e   :  { %40 = vst.msk [vmem:[#allocation0] sm:$0x1] %vm39_vm6, %v38_v13  }
  0x80   :  { %v44_v14 = vpop.permute.xlu0 %43  }
  0x81   :  { %46 = vst.msk [vmem:[#allocation0] sm:$0x1] %vm45_vm7, %v44_v14  }
  0x88   :  { %v50_v15 = vld [vmem:[#allocation0] sm:$0x1] }
  0x89   :  { %52 = vst [vmem:[%s112_s1] sm:$0x1] %v50_v15 }

// kernel: psa_pallas.1
= control target key start
LH: loop header
LB: loop body
LE: loop exit
PB: predicated region body
PF: predicated region fallthrough
CT: control target
= control target key end

     0   :  { %v6561_v0 = vmov 0.0   ;;  %vm6562_vm0 = vmmov 0   ;;  %v6563_v3 = vmov 0   ;;  %vm181_vm1 = vcmask 1041408   ;;  %s7957_s1 = inlined_call_operand.vmem [shape: bf16[3,128,128], index: 1, kind: input, shape index: {}]   ;;  %s7958_s0 = inlined_call_operand.vmem [shape: bf16[2,4,8,128], index: 0, kind: input, shape index: {}]   ;;  %s7959_s2 = inlined_call_operand.vmem [shape: bf16[5,128,128], index: 2, kind: input, shape index: {}]   ;;  %s7960_s3 = inlined_call_operand.vmem [shape: bf16[7,128,128], index: 3, kind: input, shape index: {}]   ;;  %s7961_s4 = inlined_call_operand.vmem [shape: bf16[9,128,128], index: 4, kind: input, shape index: {}]   ;;  %s7962_s6 = inlined_call_operand.vmem [shape: f32[4,128,4], index: 6, kind: input, shape index: {}]   ;;  %s7963_s5 = inlined_call_operand.vmem [shape: f32[4,128], index: 5, kind: input, shape index: {}]   ;;  %s7964_s7 = inlined_call_operand.vmem [shape: f32[4,4,128], index: 7, kind: input, shape index: {}]   ;;  %s7965_s8 = inlined_call_operand.vmem [shape: f32[2,4,8,128], index: 8, kind: output, shape index: {}]  }
   0x1   :  { %5506 = vmatprep.subr.bf16.mxu0 %v6561_v0  ;;  %5526 = vmatprep.subr.bf16.mxu1 %v6561_v0  ;;  %v6247_v1 = vld [vmem:[%s7957_s1 + $0x40] sm:$0xff]   ;;  %30 = vst [vmem:[#allocation2] sm:$0x3] %v6563_v3  ;;  %34 = vst [vmem:[#allocation2 + $0x20] sm:$0x3] %v6563_v3  ;;  %v6249_v4 = vld [vmem:[%s7957_s1 + $0x48] sm:$0xff]  }
   0x2   :  { %v6248_v2 = vld [vmem:[%s7957_s1] sm:$0xff]   ;;  %5522 = vmatprep.mubr.msk.bf16.mxu0 %vm6562_vm0, %v6561_v0  ;;  %5542 = vmatprep.mubr.msk.bf16.mxu1 %vm6562_vm0, %v6561_v0  ;;  %31 = vst [vmem:[#allocation2 + $0x8] sm:$0x3] %v6563_v3  ;;  %32 = vst [vmem:[#allocation2 + $0x10] sm:$0x3] %v6563_v3  ;;  %v6250_v5 = vld [vmem:[%s7957_s1 + $0x8] sm:$0xff]  }
   0x3   :  { %33 = vst [vmem:[#allocation2 + $0x18] sm:$0x3] %v6563_v3  ;;  %35 = vst [vmem:[#allocation2 + $0x28] sm:$0x3] %v6563_v3  ;;  %5507 = vmatpush3.bf16.msra.mxu0 %v6247_v1  ;;  %5527 = vmatpush3.bf16.msra.mxu1 %v6248_v2  ;;  %v6251_v6 = vld [vmem:[%s7957_s1 + $0x50] sm:$0xff]   ;;  %v6253_v8 = vld [vmem:[%s7957_s1 + $0x58] sm:$0xff]  }
   0x4   :  { %36 = vst [vmem:[#allocation2 + $0x30] sm:$0x3] %v6563_v3  ;;  %37 = vst [vmem:[#allocation2 + $0x38] sm:$0x3] %v6563_v3  ;;  %5508 = vmatprep.subr.bf16.mxu0 %v6561_v0  ;;  %5528 = vmatprep.subr.bf16.mxu1 %v6561_v0  ;;  %v6252_v7 = vld [vmem:[%s7957_s1 + $0x10] sm:$0xff]   ;;  %v6254_v9 = vld [vmem:[%s7957_s1 + $0x18] sm:$0xff]  }
   0x5   :  { %38 = vst [vmem:[#allocation2] sm:$0xc0] %v6563_v3  ;;  %39 = vst [vmem:[#allocation2 + $0x8] sm:$0xc0] %v6563_v3  ;;  %v6255_v10 = vld [vmem:[%s7957_s1 + $0x60] sm:$0xff]   ;;  %v6257_v14 = vld [vmem:[%s7957_s1 + $0x68] sm:$0xff]  }
   0x6   :  { %40 = vst [vmem:[#allocation2 + $0x10] sm:$0xc0] %v6563_v3  ;;  %41 = vst [vmem:[#allocation2 + $0x18] sm:$0xc0] %v6563_v3  ;;  %v6256_v11 = vld [vmem:[%s7957_s1 + $0x20] sm:$0xff]   ;;  %v6258_v16 = vld [vmem:[%s7957_s1 + $0x28] sm:$0xff]  }
   0x7   :  { %42 = vst [vmem:[#allocation2 + $0x20] sm:$0xc0] %v6563_v3  ;;  %43 = vst [vmem:[#allocation2 + $0x28] sm:$0xc0] %v6563_v3  ;;  %5509 = vmatpush3.bf16.msra.mxu0 %v6249_v4  ;;  %5529 = vmatpush3.bf16.msra.mxu1 %v6250_v5  ;;  %v6263_v12 = vld [vmem:[%s7958_s0] ss:$0 sps:$4 sm:$0xff]  }
   0x8   :  { %44 = vst [vmem:[#allocation2 + $0x30] sm:$0xc0] %v6563_v3  ;;  %45 = vst [vmem:[#allocation2 + $0x38] sm:$0xc0] %v6563_v3  ;;  %5510 = vmatprep.subr.bf16.mxu0 %v6561_v0  ;;  %5530 = vmatprep.subr.bf16.mxu1 %v6561_v0  ;;  %v6264_v13 = vld [vmem:[%s7958_s0 + $0x10] ss:$0 sps:$4 sm:$0xff]  }
   0x9   :  { %v78_v15 = vrot.slane %v6263_v12, 6  ;;  %v82_v17 = vrot.slane %v6264_v13, 6  ;;  %v6259_v18 = vld [vmem:[%s7957_s1 + $0x70] sm:$0xff]   ;;  %v6261_v20 = vld [vmem:[%s7957_s1 + $0x78] sm:$0xff]   ;;  %vm182_vm2 = vcmask 1045508   ;;  %v6273_v51 = vld [vmem:[%s7957_s1 + $0x80] sm:$0xff]  }
   0xa   :  { %v6260_v19 = vld [vmem:[%s7957_s1 + $0x30] sm:$0xff]   ;;  %v6262_v21 = vld [vmem:[%s7957_s1 + $0x38] sm:$0xff]   ;;  %vm114_vm3 = vsmask.f32 2304  ;;  %vm115_vm4 = vsmask.f32 6416  ;;  %vm6687_vm5 = vmor %vm181_vm1, %vm182_vm2 }
   0xb   :  { %5511 = vmatpush3.bf16.msra.mxu0 %v6251_v6  ;;  %5531 = vmatpush3.bf16.msra.mxu1 %v6252_v7  ;;  %94 = vst [vmem:[#allocation2] sm:$0x3c] %v78_v15  ;;  %98 = vst [vmem:[#allocation2 + $0x20] sm:$0x3c] %v82_v17  ;;  %v6275_v1 = vld [vmem:[%s7957_s1 + $0x88] sm:$0xff]   ;;  %vm592_vm10 = vcmask 1042432  }
   0xc   :  { %5512 = vmatprep.subr.bf16.mxu0 %v6561_v0  ;;  %5532 = vmatprep.subr.bf16.mxu1 %v6561_v0  ;;  %vm6702_vm6 = vmor %vm114_vm3, %vm115_vm4  ;;  %v6293_v13 = vld [vmem:[%s7958_s0 + $0x4] ss:$0 sps:$4 sm:$0xff]   ;;  %vm407_vm7 = vsmask.f32 1280  ;;  %vm408_vm8 = vsmask.f32 5392 }
   0xd   :  { %vm6765_vm9 = vmor %vm407_vm7, %vm408_vm8  ;;  %vm593_vm11 = vcmask 1046532   ;;  %vm1174_vm13 = vcmask 1040384   ;;  %vm1175_vm14 = vcmask 1044484   ;;  %vm1332_vm2 = vsmask.f32 3328  ;;  %v6492_v32 = vld [vmem:[%s7961_s4 + $0x180] sm:$0xff]  }
   0xe   :  { %vm6845_vm12 = vmor %vm592_vm10, %vm593_vm11  ;;  %vm1333_vm3 = vsmask.f32 7440  ;;  %vm2198_vm7 = vsmask.f32 256  ;;  %vm2199_vm8 = vsmask.f32 4368 }
   0xf   :  { %5513 = vmatpush3.bf16.msra.mxu0 %v6253_v8  ;;  %5533 = vmatpush3.bf16.msra.mxu1 %v6254_v9  ;;  %v6274_v8 = vld [vmem:[%s7959_s2 + $0x40] sm:$0xff]   ;;  %vm6950_vm15 = vmor %vm1174_vm13, %vm1175_vm14 }
  0x10   :  { %5514 = vmatprep.subr.bf16.mxu0 %v6561_v0  ;;  %5534 = vmatprep.subr.bf16.mxu1 %v6561_v0  ;;  %vm7031_vm4 = vmor %vm1332_vm2, %vm1333_vm3 }
  0x11   :  { %vm7249_vm10 = vmor %vm2198_vm7, %vm2199_vm8 }
  0x12   :  { %v169_v22 = vld [vmem:[#allocation2] sm:$0x3c] }
  0x13   :  { %5515 = vmatpush3.bf16.msra.mxu0 %v6255_v10  ;;  %5535 = vmatpush3.bf16.msra.mxu1 %v6256_v11  ;;  %v102_v23 = vld [vmem:[#allocation2] sm:$0x3e]  ;;  %v4536_v25 = vcombine.low %v169_v22, %v169_v22  ;;  %v4537_v26 = vcombine.high %v169_v22, %v169_v22  ;;  %v6277_v11 = vld [vmem:[%s7957_s1 + $0x90] sm:$0xff]  }
  0x14   :  { %5516 = vmatprep.subr.bf16.mxu0 %v6561_v0  ;;  %5536 = vmatprep.subr.bf16.mxu1 %v6561_v0  ;;  %v170_v24 = vld [vmem:[#allocation2 + $0x20] sm:$0x3c]  ;;  %v4532_v28 = vcombine.low %v102_v23, %v102_v23  ;;  %v4533_v29 = vcombine.high %v102_v23, %v102_v23 }
  0x15   :  { %v103_v27 = vld [vmem:[#allocation2 + $0x20] sm:$0x3e]  ;;  %v4538_v30 = vcombine.low %v170_v24, %v170_v24  ;;  %v4539_v31 = vcombine.high %v170_v24, %v170_v24  ;;  %v4540_v35 = vrot.slane %v4536_v25, 10  ;;  %v186_v36 = vrot.slane %v4537_v26, 6 }
  0x16   :  { %v4534_v33 = vcombine.low %v103_v27, %v103_v27  ;;  %v4535_v34 = vcombine.high %v103_v27, %v103_v27  ;;  %v118_v37 = vshrl.u32 %v4532_v28, 16  ;;  %v121_v38 = vshll.u32 %v4532_v28, 16  ;;  %v395_v2 = vld [vmem:[#allocation2] sm:$0x7c] }
  0x17   :  { %5517 = vmatpush3.bf16.msra.mxu0 %v6257_v14  ;;  %5537 = vmatpush3.bf16.msra.mxu1 %v6258_v16  ;;  %v4541_v39 = vrot.slane %v4538_v30, 10  ;;  %v190_v40 = vrot.slane %v4539_v31, 6  ;;  %v127_v41 = vshrl.u32 %v4533_v29, 16  ;;  %v130_v42 = vshll.u32 %v4533_v29, 16  ;;  %v396_v3 = vld [vmem:[#allocation2 + $0x20] sm:$0x7c] }
  0x18   :  { %5518 = vmatprep.subr.bf16.mxu0 %v6561_v0  ;;  %5538 = vmatprep.subr.bf16.mxu1 %v6561_v0  ;;  %v187_v43 = vsel %vm6687_vm5, %v4540_v35, %v186_v36  ;;  %v120_v44 = vrot.slane %v118_v37, 5  ;;  %v123_v45 = vrot.slane %v121_v38, 6  ;;  %v136_v46 = vshrl.u32 %v4534_v33, 16  ;;  %v6294_v14 = vld [vmem:[%s7958_s0 + $0x14] ss:$0 sps:$4 sm:$0xff]   ;;  %v6281_v30 = vld [vmem:[%s7957_s1 + $0xa0] sm:$0xff]  }
  0x19   :  { %v191_v47 = vsel %vm6687_vm5, %v4541_v39, %v190_v40  ;;  %v129_v48 = vrot.slane %v127_v41, 5  ;;  %v132_v49 = vrot.slane %v130_v42, 6  ;;  %v139_v50 = vshll.u32 %v4534_v33, 16  ;;  %v6278_v29 = vld [vmem:[%s7959_s2 + $0x50] sm:$0xff]   ;;  %v6280_v36 = vld [vmem:[%s7959_s2 + $0x58] sm:$0xff]   ;;  %v6283_v37 = vld [vmem:[%s7957_s1 + $0xa8] sm:$0xff]  }
  0x1a   :  { %v4558_v52 = vcombine.low %v187_v43, %v191_v47  ;;  %v124_v53 = vor.u32 %v123_v45, %v120_v44  ;;  %v138_v54 = vrot.slane %v136_v46, 5  ;;  %v145_v55 = vshrl.u32 %v4535_v34, 16  ;;  %v6282_v46 = vld [vmem:[%s7959_s2 + $0x60] sm:$0xff]   ;;  %v6285_v47 = vld [vmem:[%s7957_s1 + $0xb0] sm:$0xff]  }
  0x1b   :  { %5519 = vmatpush3.bf16.msra.mxu0 %v6259_v18  ;;  %5539 = vmatpush3.bf16.msra.mxu1 %v6260_v19  ;;  %v133_v56 = vor.u32 %v132_v49, %v129_v48  ;;  %v141_v57 = vrot.slane %v139_v50, 6  ;;  %v148_v58 = vshll.u32 %v4535_v34, 16  ;;  %v4576_v7 = vcombine.low %v395_v2, %v395_v2 }
  0x1c   :  { %5520 = vmatprep.subr.bf16.mxu0 %v6561_v0  ;;  %5540 = vmatprep.subr.bf16.mxu1 %v6561_v0  ;;  %v125_v60 = vrot.slane %v124_v53, 4  ;;  %v147_v61 = vrot.slane %v145_v55, 5  ;;  %v4578_v9 = vcombine.low %v396_v3, %v396_v3  ;;  %v4577_v12 = vcombine.high %v395_v2, %v395_v2 }
  0x1d   :  { %v142_v62 = vor.u32 %v141_v57, %v138_v54  ;;  %v150_v63 = vrot.slane %v148_v58, 6  ;;  %v411_v16 = vshrl.u32 %v4576_v7, 16  ;;  %v414_v17 = vshll.u32 %v4576_v7, 16 }
  0x1e   :  { %v134_v4 = vsel %vm6702_vm6, %v125_v60, %v133_v56  ;;  %v4579_v18 = vcombine.high %v396_v3, %v396_v3  ;;  %v429_v19 = vshrl.u32 %v4578_v9, 16  ;;  %v432_v22 = vshll.u32 %v4578_v9, 16  ;;  %v6284_v3 = vld [vmem:[%s7959_s2 + $0x68] sm:$0xff]  }
  0x1f   :  { %5521 = vmatpush3.bf16.msra.mxu0 %v6261_v20  ;;  %5541 = vmatpush3.bf16.msra.mxu1 %v6262_v21  ;;  %v143_v5 = vrot.slane %v142_v62, 4  ;;  %v151_v6 = vor.u32 %v150_v63, %v147_v61  ;;  %v6276_v20 = vld [vmem:[%s7959_s2 + $0x48] sm:$0xff]   ;;  %v6279_v21 = vld [vmem:[%s7957_s1 + $0x98] sm:$0xff]   ;;  %v420_v23 = vshrl.u32 %v4577_v12, 16  ;;  %v423_v24 = vshll.u32 %v4577_v12, 16 }
  0x20   :  { %5546 = vmatprep.subr.bf16.mxu0 %v6561_v0  ;;  %5566 = vmatprep.subr.bf16.mxu1 %v6561_v0  ;;  %v79_v25 = vrot.slane %v6293_v13, 6  ;;  %v83_v26 = vrot.slane %v6294_v14, 6  ;;  %v413_v27 = vrot.slane %v411_v16, 6  ;;  %v416_v28 = vrot.slane %v414_v17, 7 }
  0x21   :  { %v152_v10 = vsel %vm6702_vm6, %v143_v5, %v151_v6  ;;  %v431_v31 = vrot.slane %v429_v19, 6  ;;  %v438_v33 = vshrl.u32 %v4579_v18, 16  ;;  %v434_v34 = vrot.slane %v432_v22, 7 }
  0x22   :  { %5523 = vmatmul.mubr.bf16.vlgmr.msra.gmra.mrb[0].mxu0 %v4558_v52  ;;  %v4567_v15 = vcombine.low %v134_v4, %v152_v10  ;;  %95 = vst [vmem:[#allocation2 + $0x8] sm:$0x3c] %v79_v25  ;;  %99 = vst [vmem:[#allocation2 + $0x28] sm:$0x3c] %v83_v26  ;;  %v441_v35 = vshll.u32 %v4579_v18, 16  ;;  %v422_v38 = vrot.slane %v420_v23, 6  ;;  %v417_v40 = vor.u32 %v416_v28, %v413_v27 }
  0x23   :  { %5547 = vmatpush3.bf16.msra.mxu0 %v6273_v51  ;;  %5562 = vmatprep.mubr.msk.bf16.mxu0 %vm6562_vm0, %v6561_v0  ;;  %v425_v39 = vrot.slane %v423_v24, 7  ;;  %v435_v41 = vor.u32 %v434_v34, %v431_v31  ;;  %v440_v42 = vrot.slane %v438_v33, 6  ;;  %v6287_v4 = vld [vmem:[%s7957_s1 + $0xb8] sm:$0xff]   ;;  %v6286_v18 = vld [vmem:[%s7959_s2 + $0x70] sm:$0xff]   ;;  %v6299_v23 = vld [vmem:[%s7959_s2] sm:$0xff]  }
  0x24   :  { %5548 = vmatprep.subr.bf16.mxu0 %v6561_v0  ;;  %5543 = vmatmul.mubr.bf16.vlgmr.msra.gmra.mrb[0].mxu1 %v4567_v15  ;;  %v443_v43 = vrot.slane %v441_v35, 7  ;;  %v418_v52 = vrot.slane %v417_v40, 4  ;;  %v6288_v24 = vld [vmem:[%s7959_s2 + $0x78] sm:$0xff]   ;;  %v6301_v27 = vld [vmem:[%s7959_s2 + $0x8] sm:$0xff]   ;;  %v6304_v34 = vld [vmem:[%s7959_s2 + $0x90] sm:$0xff]  }
  0x25   :  { %5567 = vmatpush3.bf16.msra.mxu1 %v6274_v8  ;;  %5582 = vmatprep.mubr.msk.bf16.mxu1 %vm6562_vm0, %v6561_v0  ;;  %v426_v53 = vor.u32 %v425_v39, %v422_v38  ;;  %v436_v54 = vrot.slane %v435_v41, 4  ;;  %v6302_v31 = vld [vmem:[%s7959_s2 + $0x88] sm:$0xff]   ;;  %v6305_v33 = vld [vmem:[%s7959_s2 + $0x18] sm:$0xff]   ;;  %v6307_v35 = vld [vmem:[%s7959_s2 + $0x20] sm:$0xff]  }
  0x26   :  { %5568 = vmatprep.subr.bf16.mxu1 %v6561_v0  ;;  %v444_v55 = vor.u32 %v443_v43, %v440_v42  ;;  %v6306_v39 = vld [vmem:[%s7959_s2 + $0x98] sm:$0xff]   ;;  %v6309_v40 = vld [vmem:[%s7959_s2 + $0x28] sm:$0xff]  }
  0x27   :  { %5549 = vmatpush3.bf16.msra.mxu0 %v6275_v1  ;;  %v427_v13 = vsel %vm6765_vm9, %v418_v52, %v426_v53  ;;  %v6310_v53 = vld [vmem:[%s7959_s2 + $0xa8] sm:$0xff]   ;;  %v6468_v52 = vld [vmem:[%s7961_s4 + $0x100] sm:$0xff]  }
  0x28   :  { %5550 = vmatprep.subr.bf16.mxu0 %v6561_v0  ;;  %v445_v14 = vsel %vm6765_vm9, %v436_v54, %v444_v55 }
  0x29   :  { %5569 = vmatpush3.bf16.msra.mxu1 %v6276_v20  ;;  %v619_v44 = vld [vmem:[#allocation2 + $0x8] sm:$0x3e]  ;;  %v4596_v17 = vcombine.low %v427_v13, %v445_v14  ;;  %v6363_v13 = vld [vmem:[%s7958_s0 + $0x8] ss:$0 sps:$4 sm:$0xff]   ;;  %v6364_v14 = vld [vmem:[%s7958_s0 + $0x18] ss:$0 sps:$4 sm:$0xff]  }
  0x2a   :  { %5570 = vmatprep.subr.bf16.mxu1 %v6561_v0  ;;  %v620_v45 = vld [vmem:[#allocation2 + $0x28] sm:$0x3e]  ;;  %v4612_v48 = vcombine.low %v619_v44, %v619_v44  ;;  %v4613_v49 = vcombine.high %v619_v44, %v619_v44  ;;  %v6308_v44 = vld [vmem:[%s7959_s2 + $0xa0] sm:$0xff]  }
  0x2b   :  { %5551 = vmatpush3.bf16.msra.mxu0 %v6277_v11  ;;  %v4614_v50 = vcombine.low %v620_v45, %v620_v45  ;;  %v4615_v51 = vcombine.high %v620_v45, %v620_v45  ;;  %v6311_v45 = vld [vmem:[%s7959_s2 + $0x30] sm:$0xff]  }
  0x2c   :  { %5552 = vmatprep.subr.bf16.mxu0 %v6561_v0  ;;  %v632_v56 = vshrl.u32 %v4612_v48, 16  ;;  %v635_v57 = vshll.u32 %v4612_v48, 16  ;;  %v641_v58 = vshrl.u32 %v4613_v49, 16  ;;  %v644_v60 = vshll.u32 %v4613_v49, 16 }
  0x2d   :  { %5571 = vmatpush3.bf16.msra.mxu1 %v6278_v29  ;;  %v650_v62 = vshrl.u32 %v4614_v50, 16  ;;  %v653_v63 = vshll.u32 %v4614_v50, 16  ;;  %v659_v1 = vshrl.u32 %v4615_v51, 16  ;;  %v662_v2 = vshll.u32 %v4615_v51, 16  ;;  %v6300_v29 = vld [vmem:[%s7959_s2 + $0x80] sm:$0xff]  }
  0x2e   :  { %5572 = vmatprep.subr.bf16.mxu1 %v6561_v0  ;;  %v634_v5 = vrot.slane %v632_v56, 5  ;;  %v637_v6 = vrot.slane %v635_v57, 6  ;;  %v643_v7 = vrot.slane %v641_v58, 5  ;;  %v646_v8 = vrot.slane %v644_v60, 6  ;;  %v6313_v57 = vld [vmem:[%s7959_s2 + $0x38] sm:$0xff]  }
  0x2f   :  { %5553 = vmatpush3.bf16.msra.mxu0 %v6279_v21  ;;  %v652_v9 = vrot.slane %v650_v62, 5  ;;  %v655_v10 = vrot.slane %v653_v63, 6  ;;  %v661_v11 = vrot.slane %v659_v1, 5  ;;  %v664_v12 = vrot.slane %v662_v2, 6  ;;  %v6312_v63 = vld [vmem:[%s7959_s2 + $0xb0] sm:$0xff]   ;;  %v6323_v1 = vld [vmem:[%s7959_s2 + $0xc0] sm:$0xff]  }
  0x30   :  { %5554 = vmatprep.subr.bf16.mxu0 %v6561_v0  ;;  %v638_v15 = vor.u32 %v637_v6, %v634_v5  ;;  %v647_v20 = vor.u32 %v646_v8, %v643_v7  ;;  %v6314_v7 = vld [vmem:[%s7959_s2 + $0xb8] sm:$0xff]   ;;  %v6325_v8 = vld [vmem:[%s7959_s2 + $0xc8] sm:$0xff]  }
  0x31   :  { %5573 = vmatpush3.bf16.msra.mxu1 %v6280_v36  ;;  %v656_v16 = vor.u32 %v655_v10, %v652_v9  ;;  %v665_v22 = vor.u32 %v664_v12, %v661_v11  ;;  %v580_v36 = vld [vmem:[#allocation2 + $0x8] sm:$0x1e] }
  0x32   :  { %5574 = vmatprep.subr.bf16.mxu1 %v6561_v0  ;;  %v639_v19 = vrot.slane %v638_v15, 4  ;;  %v4606_v38 = vcombine.low %v580_v36, %v580_v36  ;;  %v4607_v41 = vcombine.high %v580_v36, %v580_v36  ;;  %v1002_v9 = vld [vmem:[#allocation2 + $0x8] sm:$0x7c] }
  0x33   :  { %5555 = vmatpush3.bf16.msra.mxu0 %v6281_v30  ;;  %v657_v21 = vrot.slane %v656_v16, 4  ;;  %v6303_v30 = vld [vmem:[%s7959_s2 + $0x10] sm:$0xff]   ;;  %v1003_v10 = vld [vmem:[#allocation2 + $0x28] sm:$0x7c]  ;;  %v4681_v15 = vcombine.low %v1002_v9, %v1002_v9  ;;  %v80_v16 = vrot.slane %v6363_v13, 6  ;;  %v6338_v13 = vld [vmem:[%s7959_s2 + $0x138] sm:$0xff]  }
  0x34   :  { %5556 = vmatprep.subr.bf16.mxu0 %v6561_v0  ;;  %v648_v25 = vsel %vm6702_vm6, %v639_v19, %v647_v20  ;;  %v4610_v48 = vrot.slane %v4606_v38, 9  ;;  %v597_v49 = vrot.slane %v4607_v41, 5  ;;  %v6324_v19 = vld [vmem:[%s7959_s2 + $0x100] sm:$0xff]   ;;  %v4683_v20 = vcombine.low %v1003_v10, %v1003_v10  ;;  %v6330_v41 = vld [vmem:[%s7959_s2 + $0x118] sm:$0xff]  }
  0x35   :  { %5575 = vmatpush3.bf16.msra.mxu1 %v6282_v46  ;;  %v666_v26 = vsel %vm6702_vm6, %v657_v21, %v665_v22  ;;  %v870_v46 = vld [vmem:[#allocation2 + $0x8] sm:$0x3c]  ;;  %v6327_v21 = vld [vmem:[%s7959_s2 + $0xd0] sm:$0xff]   ;;  %96 = vst [vmem:[#allocation2 + $0x10] sm:$0x3c] %v80_v16 }
  0x36   :  { %5576 = vmatprep.subr.bf16.mxu1 %v6561_v0  ;;  %v4632_v28 = vcombine.low %v648_v25, %v666_v26  ;;  %v4650_v54 = vcombine.low %v870_v46, %v870_v46  ;;  %v4651_v55 = vcombine.high %v870_v46, %v870_v46  ;;  %v598_v58 = vsel %vm6845_vm12, %v4610_v48, %v597_v49  ;;  %v6326_v22 = vld [vmem:[%s7959_s2 + $0x108] sm:$0xff]   ;;  %v6332_v49 = vld [vmem:[%s7959_s2 + $0x120] sm:$0xff]  }
  0x37   :  { %5557 = vmatpush3.bf16.msra.mxu0 %v6283_v37  ;;  %v581_v37 = vld [vmem:[#allocation2 + $0x28] sm:$0x1e]  ;;  %v1018_v25 = vshll.u32 %v4681_v15, 16  ;;  %v1033_v26 = vshrl.u32 %v4683_v20, 16 }
  0x38   :  { %5558 = vmatprep.subr.bf16.mxu0 %v6561_v0  ;;  %v4608_v42 = vcombine.low %v581_v37, %v581_v37  ;;  %v4609_v43 = vcombine.high %v581_v37, %v581_v37  ;;  %v6349_v16 = vld [vmem:[%s7960_s3 + $0x48] sm:$0xff]  }
  0x39   :  { %5577 = vmatpush3.bf16.msra.mxu1 %v6284_v3  ;;  %v4654_v3 = vrot.slane %v4650_v54, 10  ;;  %v1020_v36 = vrot.slane %v1018_v25, 7  ;;  %v1035_v37 = vrot.slane %v1033_v26, 6 }
  0x3a   :  { %5578 = vmatprep.subr.bf16.mxu1 %v6561_v0  ;;  %v4611_v50 = vrot.slane %v4608_v42, 9  ;;  %v601_v51 = vrot.slane %v4609_v43, 5  ;;  %v6333_v42 = vld [vmem:[%s7959_s2 + $0xe8] sm:$0xff]  }
  0x3b   :  { %5559 = vmatpush3.bf16.msra.mxu0 %v6285_v47  ;;  %v871_v47 = vld [vmem:[#allocation2 + $0x28] sm:$0x3c] }
  0x3c   :  { %5560 = vmatprep.subr.bf16.mxu0 %v6561_v0  ;;  %v4652_v56 = vcombine.low %v871_v47, %v871_v47  ;;  %v602_v60 = vsel %vm6845_vm12, %v4611_v50, %v601_v51  ;;  %v4653_v62 = vcombine.high %v871_v47, %v871_v47  ;;  %v6335_v50 = vld [vmem:[%s7959_s2 + $0xf0] sm:$0xff]   ;;  %v1162_v51 = vld [vmem:[#allocation2 + $0x8] sm:$0x78] }
  0x3d   :  { %5579 = vmatpush3.bf16.msra.mxu1 %v6286_v18  ;;  %v4641_v2 = vcombine.low %v598_v58, %v602_v60  ;;  %v4710_v58 = vcombine.low %v1162_v51, %v1162_v51  ;;  %v4711_v60 = vcombine.high %v1162_v51, %v1162_v51 }
  0x3e   :  { %5580 = vmatprep.subr.bf16.mxu1 %v6561_v0  ;;  %v4655_v5 = vrot.slane %v4652_v56, 10  ;;  %v888_v6 = vrot.slane %v4653_v62, 6 }
  0x3f   :  { %5561 = vmatpush3.bf16.msra.mxu0 %v6287_v4  ;;  %v884_v4 = vrot.slane %v4651_v55, 6 }
  0x40   :  { %5586 = vmatprep.subr.bf16.mxu0 %v6561_v0  ;;  %v889_v12 = vsel %vm6687_vm5, %v4655_v5, %v888_v6  ;;  %v6336_v5 = vld [vmem:[%s7959_s2 + $0x130] sm:$0xff]  }
  0x41   :  { %5581 = vmatpush3.bf16.msra.mxu1 %v6288_v24  ;;  %v885_v11 = vsel %vm6687_vm5, %v4654_v3, %v884_v4  ;;  %v1015_v24 = vshrl.u32 %v4681_v15, 16 }
  0x42   :  { %5563 = vmatmul.mubr.bf16.vlgmr.msra.gmra.mrb[4].mxu0 %v4596_v17  ;;  %5606 = vmatprep.subr.bf16.mxu1 %v6561_v0  ;;  %v84_v17 = vrot.slane %v6364_v14, 6  ;;  %v4672_v18 = vcombine.low %v885_v11, %v889_v12  ;;  %v6519_v12 = vld [vmem:[%s7961_s4 + $0x1d0] sm:$0xff]  }
  0x43   :  { %5587 = vmatpush3.bf16.msra.mxu0 %v6299_v23  ;;  %5602 = vmatprep.mubr.msk.bf16.mxu0 %vm6562_vm0, %v6561_v0  ;;  %v4682_v23 = vcombine.high %v1002_v9, %v1002_v9  ;;  %v6347_v9 = vld [vmem:[%s7960_s3 + $0x40] sm:$0xff]  }
  0x44   :  { %5588 = vmatprep.subr.bf16.mxu0 %v6561_v0  ;;  %5583 = vmatmul.mubr.bf16.vlgmr.msra.gmra.mrb[4].mxu1 %v4632_v28  ;;  %100 = vst [vmem:[#allocation2 + $0x30] sm:$0x3c] %v84_v17  ;;  %v6329_v28 = vld [vmem:[%s7959_s2 + $0xd8] sm:$0xff]  }
  0x45   :  { %5607 = vmatpush3.bf16.msra.mxu1 %v6300_v29  ;;  %5622 = vmatprep.mubr.msk.bf16.mxu1 %vm6562_vm0, %v6561_v0  ;;  %v4684_v29 = vcombine.high %v1003_v10, %v1003_v10 }
  0x46   :  { %5608 = vmatprep.subr.bf16.mxu1 %v6561_v0 }
  0x47   :  { %5589 = vmatpush3.bf16.msra.mxu0 %v6301_v27  ;;  %v1036_v27 = vshll.u32 %v4683_v20, 16  ;;  %v6350_v20 = vld [vmem:[%s7960_s3 + $0x8] sm:$0xff]  }
  0x48   :  { %5590 = vmatprep.subr.bf16.mxu0 %v6561_v0 }
  0x49   :  { %5609 = vmatpush3.bf16.msra.mxu1 %v6302_v31  ;;  %v1027_v31 = vshll.u32 %v4682_v23, 16  ;;  %v1038_v38 = vrot.slane %v1036_v27, 7 }
  0x4a   :  { %5610 = vmatprep.subr.bf16.mxu1 %v6561_v0 }
  0x4b   :  { %5591 = vmatpush3.bf16.msra.mxu0 %v6303_v30  ;;  %v1024_v30 = vshrl.u32 %v4682_v23, 16  ;;  %v1029_v46 = vrot.slane %v1027_v31, 7  ;;  %v1321_v23 = vld [vmem:[#allocation2 + $0x30] sm:$0x1f] }
  0x4c   :  { %5592 = vmatprep.subr.bf16.mxu0 %v6561_v0  ;;  %v1380_v25 = vld [vmem:[#allocation2 + $0x30] sm:$0x1e]  ;;  %v4746_v27 = vcombine.low %v1321_v23, %v1321_v23 }
  0x4d   :  { %5611 = vmatpush3.bf16.msra.mxu1 %v6304_v34  ;;  %v6331_v34 = vld [vmem:[%s7959_s2 + $0xe0] sm:$0xff]  }
  0x4e   :  { %5612 = vmatprep.subr.bf16.mxu1 %v6561_v0 }
  0x4f   :  { %5593 = vmatpush3.bf16.msra.mxu0 %v6305_v33  ;;  %v6328_v33 = vld [vmem:[%s7959_s2 + $0x110] sm:$0xff]  }
  0x50   :  { %5594 = vmatprep.subr.bf16.mxu0 %v6561_v0 }
  0x51   :  { %5613 = vmatpush3.bf16.msra.mxu1 %v6306_v39  ;;  %v1042_v39 = vshrl.u32 %v4684_v29, 16 }
  0x52   :  { %5614 = vmatprep.subr.bf16.mxu1 %v6561_v0 }
  0x53   :  { %5595 = vmatpush3.bf16.msra.mxu0 %v6307_v35  ;;  %v1017_v35 = vrot.slane %v1015_v24, 6  ;;  %v1044_v47 = vrot.slane %v1042_v39, 6  ;;  %v1379_v24 = vld [vmem:[#allocation2 + $0x10] sm:$0x1e]  ;;  %v1353_v39 = vshll.u32 %v4746_v27, 16 }
  0x54   :  { %5596 = vmatprep.subr.bf16.mxu0 %v6561_v0  ;;  %v4749_v31 = vcombine.high %v1379_v24, %v1379_v24 }
  0x55   :  { %5615 = vmatpush3.bf16.msra.mxu1 %v6308_v44  ;;  %v1021_v43 = vor.u32 %v1020_v36, %v1017_v35  ;;  %v1039_v44 = vor.u32 %v1038_v38, %v1035_v37  ;;  %v6354_v37 = vld [vmem:[%s7960_s3 + $0x18] sm:$0xff]   ;;  %v1350_v38 = vshrl.u32 %v4746_v27, 16 }
  0x56   :  { %5616 = vmatprep.subr.bf16.mxu1 %v6561_v0 }
  0x57   :  { %5597 = vmatpush3.bf16.msra.mxu0 %v6309_v40  ;;  %v1045_v40 = vshll.u32 %v4684_v29, 16  ;;  %v1022_v54 = vrot.slane %v1021_v43, 4  ;;  %v1040_v55 = vrot.slane %v1039_v44, 4  ;;  %v6355_v29 = vld [vmem:[%s7960_s3 + $0x60] sm:$0xff]   ;;  %v1352_v51 = vrot.slane %v1350_v38, 4 }
  0x58   :  { %5598 = vmatprep.subr.bf16.mxu0 %v6561_v0 }
  0x59   :  { %5617 = vmatpush3.bf16.msra.mxu1 %v6310_v53  ;;  %v1047_v48 = vrot.slane %v1045_v40, 7  ;;  %v1163_v53 = vld [vmem:[#allocation2 + $0x28] sm:$0x78] }
  0x5a   :  { %5618 = vmatprep.subr.bf16.mxu1 %v6561_v0  ;;  %v4712_v62 = vcombine.low %v1163_v53, %v1163_v53  ;;  %v4713_v4 = vcombine.high %v1163_v53, %v1163_v53  ;;  %v6357_v40 = vld [vmem:[%s7960_s3 + $0x68] sm:$0xff]   ;;  %v1355_v53 = vrot.slane %v1353_v39, 5 }
  0x5b   :  { %5599 = vmatpush3.bf16.msra.mxu0 %v6311_v45  ;;  %v1026_v45 = vrot.slane %v1024_v30, 6  ;;  %v4748_v30 = vcombine.low %v1379_v24, %v1379_v24 }
  0x5c   :  { %5600 = vmatprep.subr.bf16.mxu0 %v6561_v0  ;;  %v4715_v10 = vrot.slane %v4712_v62, 11  ;;  %v1183_v11 = vrot.slane %v4713_v4, 7 }
  0x5d   :  { %5619 = vmatpush3.bf16.msra.mxu1 %v6312_v63  ;;  %v1030_v56 = vor.u32 %v1029_v46, %v1026_v45  ;;  %v6334_v63 = vld [vmem:[%s7959_s2 + $0x128] sm:$0xff]   ;;  %v6356_v45 = vld [vmem:[%s7960_s3 + $0x20] sm:$0xff]   ;;  %v6359_v46 = vld [vmem:[%s7960_s3 + $0x70] sm:$0xff]  }
  0x5e   :  { %5620 = vmatprep.subr.bf16.mxu1 %v6561_v0  ;;  %v1184_v15 = vsel %vm6950_vm15, %v4715_v10, %v1183_v11  ;;  %v6362_v10 = vld [vmem:[%s7960_s3 + $0x38] sm:$0xff]  }
  0x5f   :  { %5601 = vmatpush3.bf16.msra.mxu0 %v6313_v57  ;;  %v1048_v57 = vor.u32 %v1047_v48, %v1044_v47  ;;  %v6442_v11 = vld [vmem:[%s7958_s0 + $0x1c] ss:$0 sps:$4 sm:$0xff]  }
  0x60   :  { %5626 = vmatprep.subr.bf16.mxu0 %v6561_v0 }
  0x61   :  { %5621 = vmatpush3.bf16.msra.mxu1 %v6314_v7  ;;  %v1049_v3 = vsel %vm6765_vm9, %v1040_v55, %v1048_v57  ;;  %v4714_v7 = vrot.slane %v4710_v58, 11  ;;  %v6361_v55 = vld [vmem:[%s7960_s3 + $0x78] sm:$0xff]  }
  0x62   :  { %5603 = vmatmul.mubr.bf16.vlgmr.msra.gmra.mrb[8].mxu0 %v4641_v2  ;;  %5646 = vmatprep.subr.bf16.mxu1 %v6561_v0  ;;  %v1031_v2 = vsel %vm6765_vm9, %v1022_v54, %v1030_v56  ;;  %v6358_v54 = vld [vmem:[%s7960_s3 + $0x28] sm:$0xff]  }
  0x63   :  { %5627 = vmatpush3.bf16.msra.mxu0 %v6323_v1  ;;  %5642 = vmatprep.mubr.msk.bf16.mxu0 %vm6562_vm0, %v6561_v0  ;;  %v6337_v1 = vld [vmem:[%s7959_s2 + $0xf8] sm:$0xff]   ;;  %v4701_v6 = vcombine.low %v1031_v2, %v1049_v3  ;;  %v6373_v2 = vld [vmem:[%s7960_s3 + $0x80] sm:$0xff]  }
  0x64   :  { %5628 = vmatprep.subr.bf16.mxu0 %v6561_v0  ;;  %5623 = vmatmul.mubr.bf16.vlgmr.msra.gmra.mrb[8].mxu1 %v4672_v18  ;;  %v6348_v18 = vld [vmem:[%s7960_s3] sm:$0xff]  }
  0x65   :  { %5647 = vmatpush3.bf16.msra.mxu1 %v6324_v19  ;;  %5662 = vmatprep.mubr.msk.bf16.mxu1 %vm6562_vm0, %v6561_v0  ;;  %v6351_v19 = vld [vmem:[%s7960_s3 + $0x50] sm:$0xff]  }
  0x66   :  { %5648 = vmatprep.subr.bf16.mxu1 %v6561_v0 }
  0x67   :  { %5629 = vmatpush3.bf16.msra.mxu0 %v6325_v8  ;;  %v1179_v8 = vrot.slane %v4711_v60, 7 }
  0x68   :  { %5630 = vmatprep.subr.bf16.mxu0 %v6561_v0 }
  0x69   :  { %5649 = vmatpush3.bf16.msra.mxu1 %v6326_v22  ;;  %v1180_v14 = vsel %vm6950_vm15, %v4714_v7, %v1179_v8  ;;  %v1320_v22 = vld [vmem:[#allocation2 + $0x10] sm:$0x1f] }
  0x6a   :  { %5650 = vmatprep.subr.bf16.mxu1 %v6561_v0  ;;  %v4732_v17 = vcombine.low %v1180_v14, %v1184_v15  ;;  %v4744_v26 = vcombine.low %v1320_v22, %v1320_v22  ;;  %v6375_v15 = vld [vmem:[%s7960_s3 + $0x88] sm:$0xff]   ;;  %v6451_v8 = vld [vmem:[%s7961_s4 + $0x10] sm:$0xff]  }
  0x6b   :  { %5631 = vmatpush3.bf16.msra.mxu0 %v6327_v21  ;;  %v6353_v21 = vld [vmem:[%s7960_s3 + $0x58] sm:$0xff]  }
  0x6c   :  { %5632 = vmatprep.subr.bf16.mxu0 %v6561_v0  ;;  %v1336_v35 = vshrl.u32 %v4744_v26, 16  ;;  %v1339_v36 = vshll.u32 %v4744_v26, 16  ;;  %v6379_v26 = vld [vmem:[%s7960_s3 + $0x98] sm:$0xff]  }
  0x6d   :  { %5651 = vmatpush3.bf16.msra.mxu1 %v6328_v33  ;;  %v4750_v33 = vcombine.low %v1380_v25, %v1380_v25 }
  0x6e   :  { %5652 = vmatprep.subr.bf16.mxu1 %v6561_v0  ;;  %v1338_v47 = vrot.slane %v1336_v35, 4  ;;  %v1341_v48 = vrot.slane %v1339_v36, 5  ;;  %v6381_v35 = vld [vmem:[%s7960_s3 + $0xa0] sm:$0xff]  }
  0x6f   :  { %5633 = vmatpush3.bf16.msra.mxu0 %v6329_v28  ;;  %v6352_v28 = vld [vmem:[%s7960_s3 + $0x10] sm:$0xff]   ;;  %v4753_v43 = vrot.slane %v4750_v33, 9 }
  0x70   :  { %5634 = vmatprep.subr.bf16.mxu0 %v6561_v0  ;;  %v1342_v62 = vor.u32 %v1341_v48, %v1338_v47 }
  0x71   :  { %5653 = vmatpush3.bf16.msra.mxu1 %v6330_v41  ;;  %v4752_v41 = vrot.slane %v4748_v30, 9 }
  0x72   :  { %5654 = vmatprep.subr.bf16.mxu1 %v6561_v0 }
  0x73   :  { %5635 = vmatpush3.bf16.msra.mxu0 %v6331_v34  ;;  %v4751_v34 = vcombine.high %v1380_v25, %v1380_v25  ;;  %v6376_v25 = vld [vmem:[%s7960_s3 + $0xc8] sm:$0xff]  }
  0x74   :  { %5636 = vmatprep.subr.bf16.mxu0 %v6561_v0 }
  0x75   :  { %5655 = vmatpush3.bf16.msra.mxu1 %v6332_v49  ;;  %v1397_v44 = vrot.slane %v4751_v34, 5  ;;  %v4745_v49 = vcombine.high %v1320_v22, %v1320_v22  ;;  %v6378_v34 = vld [vmem:[%s7960_s3 + $0xd0] sm:$0xff]  }
  0x76   :  { %5656 = vmatprep.subr.bf16.mxu1 %v6561_v0 }
  0x77   :  { %5637 = vmatpush3.bf16.msra.mxu0 %v6333_v42  ;;  %v1393_v42 = vrot.slane %v4749_v31, 5  ;;  %v1345_v57 = vshll.u32 %v4745_v49, 16  ;;  %v1398_v60 = vsel %vm6845_vm12, %v4753_v43, %v1397_v44  ;;  %v6380_v44 = vld [vmem:[%s7960_s3 + $0xd8] sm:$0xff]  }
  0x78   :  { %5638 = vmatprep.subr.bf16.mxu0 %v6561_v0 }
  0x79   :  { %5657 = vmatpush3.bf16.msra.mxu1 %v6334_v63  ;;  %v1394_v56 = vsel %vm6845_vm12, %v4752_v41, %v1393_v42  ;;  %v1356_v63 = vor.u32 %v1355_v53, %v1352_v51  ;;  %v1347_v4 = vrot.slane %v1345_v57, 5  ;;  %v6382_v53 = vld [vmem:[%s7960_s3 + $0xe0] sm:$0xff]  }
  0x7a   :  { %5658 = vmatprep.subr.bf16.mxu1 %v6561_v0  ;;  %v4770_v3 = vcombine.low %v1394_v56, %v1398_v60  ;;  %v1762_v60 = vld [vmem:[#allocation2 + $0x10] sm:$0x3c] }
  0x7b   :  { %5639 = vmatpush3.bf16.msra.mxu0 %v6335_v50  ;;  %v4747_v50 = vcombine.high %v1321_v23, %v1321_v23  ;;  %v1357_v7 = vrot.slane %v1356_v63, 4  ;;  %v6377_v23 = vld [vmem:[%s7960_s3 + $0x90] sm:$0xff]   ;;  %v4817_v63 = vcombine.low %v1762_v60, %v1762_v60 }
  0x7c   :  { %5640 = vmatprep.subr.bf16.mxu0 %v6561_v0 }
  0x7d   :  { %5659 = vmatpush3.bf16.msra.mxu1 %v6336_v5  ;;  %v1359_v58 = vshll.u32 %v4747_v50, 16 }
  0x7e   :  { %5660 = vmatprep.subr.bf16.mxu1 %v6561_v0 }
  0x7f   :  { %5641 = vmatpush3.bf16.msra.mxu0 %v6337_v1  ;;  %v6360_v1 = vld [vmem:[%s7960_s3 + $0x30] sm:$0xff]   ;;  %v1361_v5 = vrot.slane %v1359_v58, 5 }
  0x80   :  { %5666 = vmatprep.subr.bf16.mxu0 %v6561_v0 }
  0x81   :  { %5661 = vmatpush3.bf16.msra.mxu1 %v6338_v13  ;;  %v1362_v14 = vsel %vm7031_vm4, %v1357_v7, %v1361_v5 }
  0x82   :  { %5643 = vmatmul.mubr.bf16.vlgmr.msra.gmra.mrb[12].mxu0 %v4701_v6  ;;  %5686 = vmatprep.subr.bf16.mxu1 %v6561_v0  ;;  %v1343_v6 = vrot.slane %v1342_v62, 4  ;;  %v1763_v62 = vld [vmem:[#allocation2 + $0x30] sm:$0x3c] }
  0x83   :  { %5667 = vmatpush3.bf16.msra.mxu0 %v6347_v9  ;;  %5682 = vmatprep.mubr.msk.bf16.mxu0 %vm6562_vm0, %v6561_v0  ;;  %v6441_v9 = vld [vmem:[%s7958_s0 + $0xc] ss:$0 sps:$4 sm:$0xff]   ;;  %v4820_v7 = vcombine.high %v1763_v62, %v1763_v62 }
  0x84   :  { %5668 = vmatprep.subr.bf16.mxu0 %v6561_v0  ;;  %5663 = vmatmul.mubr.bf16.vlgmr.msra.gmra.mrb[12].mxu1 %v4732_v17  ;;  %v1348_v13 = vsel %vm7031_vm4, %v1343_v6, %v1347_v4  ;;  %v1603_v17 = vld [vmem:[#allocation2 + $0x30] sm:$0x3e]  ;;  %v6387_v4 = vld [vmem:[%s7960_s3 + $0xb8] sm:$0xff]  }
  0x85   :  { %5687 = vmatpush3.bf16.msra.mxu1 %v6348_v18  ;;  %5702 = vmatprep.mubr.msk.bf16.mxu1 %vm6562_vm0, %v6561_v0  ;;  %v81_v18 = vrot.slane %v6441_v9, 6  ;;  %v4790_v24 = vcombine.low %v1603_v17, %v1603_v17  ;;  %v4791_v30 = vcombine.high %v1603_v17, %v1603_v17  ;;  %v6386_v9 = vld [vmem:[%s7960_s3 + $0xf0] sm:$0xff]   ;;  %v6388_v17 = vld [vmem:[%s7960_s3 + $0xf8] sm:$0xff]  }
  0x86   :  { %5688 = vmatprep.subr.bf16.mxu1 %v6561_v0 }
  0x87   :  { %5669 = vmatpush3.bf16.msra.mxu0 %v6349_v16  ;;  %v1602_v16 = vld [vmem:[#allocation2 + $0x10] sm:$0x3e]  ;;  %97 = vst [vmem:[#allocation2 + $0x18] sm:$0x3c] %v81_v18  ;;  %v1633_v31 = vshrl.u32 %v4790_v24, 16  ;;  %v1636_v33 = vshll.u32 %v4790_v24, 16 }
  0x88   :  { %5670 = vmatprep.subr.bf16.mxu0 %v6561_v0  ;;  %v4788_v22 = vcombine.low %v1602_v16, %v1602_v16  ;;  %v4789_v27 = vcombine.high %v1602_v16, %v1602_v16  ;;  %v1642_v42 = vshrl.u32 %v4791_v30, 16  ;;  %v1645_v43 = vshll.u32 %v4791_v30, 16  ;;  %v1894_v18 = vld [vmem:[#allocation2 + $0x10] sm:$0x7c] }
  0x89   :  { %5689 = vmatpush3.bf16.msra.mxu1 %v6350_v20  ;;  %v4779_v20 = vcombine.low %v1348_v13, %v1362_v14  ;;  %v1638_v41 = vrot.slane %v1636_v33, 6  ;;  %v4821_v13 = vrot.slane %v4817_v63, 10  ;;  %v1780_v16 = vrot.slane %v4820_v7, 6  ;;  %v6400_v33 = vld [vmem:[%s7960_s3 + $0x148] sm:$0xff]   ;;  %v2055_v63 = vld [vmem:[#allocation2 + $0x30] sm:$0x78] }
  0x8a   :  { %5690 = vmatprep.subr.bf16.mxu1 %v6561_v0  ;;  %v1624_v36 = vshrl.u32 %v4789_v27, 16  ;;  %v1644_v50 = vrot.slane %v1642_v42, 5  ;;  %v1647_v51 = vrot.slane %v1645_v43, 6  ;;  %v6402_v43 = vld [vmem:[%s7960_s3 + $0x150] sm:$0xff]   ;;  %v4879_v7 = vcombine.low %v2055_v63, %v2055_v63 }
  0x8b   :  { %5671 = vmatpush3.bf16.msra.mxu0 %v6351_v19  ;;  %v85_v19 = vrot.slane %v6442_v11, 6 }
  0x8c   :  { %5672 = vmatprep.subr.bf16.mxu0 %v6561_v0  ;;  %v1648_v58 = vor.u32 %v1647_v51, %v1644_v50 }
  0x8d   :  { %5691 = vmatpush3.bf16.msra.mxu1 %v6352_v28  ;;  %101 = vst [vmem:[#allocation2 + $0x38] sm:$0x3c] %v85_v19  ;;  %v1615_v28 = vshrl.u32 %v4788_v22, 16  ;;  %v1895_v19 = vld [vmem:[#allocation2 + $0x30] sm:$0x7c] }
  0x8e   :  { %5692 = vmatprep.subr.bf16.mxu1 %v6561_v0  ;;  %v4850_v24 = vcombine.low %v1895_v19, %v1895_v19 }
  0x8f   :  { %5673 = vmatpush3.bf16.msra.mxu0 %v6353_v21  ;;  %v6374_v21 = vld [vmem:[%s7960_s3 + $0xc0] sm:$0xff]   ;;  %v1617_v38 = vrot.slane %v1615_v28, 5 }
  0x90   :  { %5674 = vmatprep.subr.bf16.mxu0 %v6561_v0  ;;  %v1925_v30 = vshrl.u32 %v4850_v24, 16 }
  0x91   :  { %5693 = vmatpush3.bf16.msra.mxu1 %v6354_v37  ;;  %v1627_v37 = vshll.u32 %v4789_v27, 16  ;;  %v6401_v27 = vld [vmem:[%s7960_s3 + $0x110] sm:$0xff]  }
  0x92   :  { %5694 = vmatprep.subr.bf16.mxu1 %v6561_v0 }
  0x93   :  { %5675 = vmatpush3.bf16.msra.mxu0 %v6355_v29  ;;  %v1618_v29 = vshll.u32 %v4788_v22, 16  ;;  %v1629_v47 = vrot.slane %v1627_v37, 6  ;;  %v6399_v22 = vld [vmem:[%s7960_s3 + $0x108] sm:$0xff]  }
  0x94   :  { %5676 = vmatprep.subr.bf16.mxu0 %v6561_v0 }
  0x95   :  { %5695 = vmatpush3.bf16.msra.mxu1 %v6356_v45  ;;  %v1620_v39 = vrot.slane %v1618_v29, 6  ;;  %v6383_v45 = vld [vmem:[%s7960_s3 + $0xa8] sm:$0xff]  }
  0x96   :  { %5696 = vmatprep.subr.bf16.mxu1 %v6561_v0 }
  0x97   :  { %5677 = vmatpush3.bf16.msra.mxu0 %v6357_v40  ;;  %v1635_v40 = vrot.slane %v1633_v31, 5  ;;  %v1621_v48 = vor.u32 %v1620_v39, %v1617_v38  ;;  %v1928_v31 = vshll.u32 %v4850_v24, 16  ;;  %v1927_v39 = vrot.slane %v1925_v30, 6  ;;  %v6422_v24 = vld [vmem:[%s7961_s4 + $0x40] sm:$0xff]   ;;  %v6427_v30 = vld [vmem:[%s7960_s3 + $0x198] sm:$0xff]  }
  0x98   :  { %5678 = vmatprep.subr.bf16.mxu0 %v6561_v0 }
  0x99   :  { %5697 = vmatpush3.bf16.msra.mxu1 %v6358_v54  ;;  %v1639_v49 = vor.u32 %v1638_v41, %v1635_v40  ;;  %v6385_v54 = vld [vmem:[%s7960_s3 + $0xb0] sm:$0xff]   ;;  %v1930_v40 = vrot.slane %v1928_v31, 7 }
  0x9a   :  { %5698 = vmatprep.subr.bf16.mxu1 %v6561_v0 }
  0x9b   :  { %5679 = vmatpush3.bf16.msra.mxu0 %v6359_v46  ;;  %v1626_v46 = vrot.slane %v1624_v36, 5  ;;  %v1640_v57 = vrot.slane %v1639_v49, 4  ;;  %v4851_v36 = vcombine.high %v1895_v19, %v1895_v19  ;;  %v1931_v50 = vor.u32 %v1930_v40, %v1927_v39  ;;  %v6426_v40 = vld [vmem:[%s7961_s4 + $0x50] sm:$0xff]  }
  0x9c   :  { %5680 = vmatprep.subr.bf16.mxu0 %v6561_v0 }
  0x9d   :  { %5699 = vmatpush3.bf16.msra.mxu1 %v6360_v1  ;;  %v1630_v56 = vor.u32 %v1629_v47, %v1626_v46  ;;  %v4818_v1 = vcombine.high %v1762_v60, %v1762_v60  ;;  %v1649_v6 = vsel %vm6702_vm6, %v1640_v57, %v1648_v58  ;;  %v1937_v46 = vshll.u32 %v4851_v36, 16  ;;  %v6404_v47 = vld [vmem:[%s7960_s3 + $0x158] sm:$0xff]   ;;  %v6409_v57 = vld [vmem:[%s7960_s3 + $0x130] sm:$0xff]  }
  0x9e   :  { %5700 = vmatprep.subr.bf16.mxu1 %v6561_v0  ;;  %v1932_v60 = vrot.slane %v1931_v50, 4  ;;  %v6428_v50 = vld [vmem:[%s7961_s4 + $0x58] sm:$0xff]  }
  0x9f   :  { %5681 = vmatpush3.bf16.msra.mxu0 %v6361_v55  ;;  %v1622_v55 = vrot.slane %v1621_v48, 4  ;;  %v1776_v14 = vrot.slane %v4818_v1, 6  ;;  %v6407_v48 = vld [vmem:[%s7960_s3 + $0x128] sm:$0xff]  }
  0xa0   :  { %5706 = vmatprep.subr.bf16.mxu0 %v6561_v0 }
  0xa1   :  { %5701 = vmatpush3.bf16.msra.mxu1 %v6362_v10  ;;  %v1631_v5 = vsel %vm6702_vm6, %v1622_v55, %v1630_v56  ;;  %v6397_v10 = vld [vmem:[%s7960_s3 + $0x100] sm:$0xff]   ;;  %v1939_v55 = vrot.slane %v1937_v46, 7 }
  0xa2   :  { %5683 = vmatmul.mubr.bf16.vlgmr.msra.gmra.mrb[16].mxu0 %v4770_v3  ;;  %5726 = vmatprep.subr.bf16.mxu1 %v6561_v0  ;;  %v6384_v3 = vld [vmem:[%s7960_s3 + $0xe8] sm:$0xff]   ;;  %v4808_v11 = vcombine.low %v1631_v5, %v1649_v6  ;;  %v6406_v56 = vld [vmem:[%s7960_s3 + $0x160] sm:$0xff]  }
  0xa3   :  { %5707 = vmatpush3.bf16.msra.mxu0 %v6373_v2  ;;  %5722 = vmatprep.mubr.msk.bf16.mxu0 %vm6562_vm0, %v6561_v0  ;;  %v4819_v2 = vcombine.low %v1763_v62, %v1763_v62  ;;  %v2054_v62 = vld [vmem:[#allocation2 + $0x10] sm:$0x78] }
  0xa4   :  { %5708 = vmatprep.subr.bf16.mxu0 %v6561_v0  ;;  %5703 = vmatmul.mubr.bf16.vlgmr.msra.gmra.mrb[16].mxu1 %v4779_v20  ;;  %v1777_v20 = vsel %vm6687_vm5, %v4821_v13, %v1776_v14  ;;  %v4877_v5 = vcombine.low %v2054_v62, %v2054_v62  ;;  %v4878_v6 = vcombine.high %v2054_v62, %v2054_v62  ;;  %v6410_v13 = vld [vmem:[%s7960_s3 + $0x170] sm:$0xff]   ;;  %v6421_v14 = vld [vmem:[%s7960_s3 + $0x180] sm:$0xff]  }
  0xa5   :  { %5727 = vmatpush3.bf16.msra.mxu1 %v6374_v21  ;;  %5742 = vmatprep.mubr.msk.bf16.mxu1 %vm6562_vm0, %v6561_v0  ;;  %v6430_v62 = vld [vmem:[%s7961_s4 + $0x60] sm:$0xff]  }
  0xa6   :  { %5728 = vmatprep.subr.bf16.mxu1 %v6561_v0 }
  0xa7   :  { %5709 = vmatpush3.bf16.msra.mxu0 %v6375_v15  ;;  %v4822_v15 = vrot.slane %v4819_v2, 10 }
  0xa8   :  { %5710 = vmatprep.subr.bf16.mxu0 %v6561_v0 }
  0xa9   :  { %5729 = vmatpush3.bf16.msra.mxu1 %v6376_v25  ;;  %v1781_v21 = vsel %vm6687_vm5, %v4822_v15, %v1780_v16  ;;  %v4881_v16 = vrot.slane %v4877_v5, 11 }
  0xaa   :  { %5730 = vmatprep.subr.bf16.mxu1 %v6561_v0  ;;  %v4839_v25 = vcombine.low %v1777_v20, %v1781_v21  ;;  %v6412_v20 = vld [vmem:[%s7960_s3 + $0x178] sm:$0xff]  }
  0xab   :  { %5711 = vmatpush3.bf16.msra.mxu0 %v6377_v23  ;;  %v4848_v23 = vcombine.low %v1894_v18, %v1894_v18 }
  0xac   :  { %5712 = vmatprep.subr.bf16.mxu0 %v6561_v0 }
  0xad   :  { %5731 = vmatpush3.bf16.msra.mxu1 %v6378_v34  ;;  %v1907_v28 = vshrl.u32 %v4848_v23, 16  ;;  %v1910_v29 = vshll.u32 %v4848_v23, 16  ;;  %v4849_v34 = vcombine.high %v1894_v18, %v1894_v18  ;;  %v4882_v18 = vrot.slane %v4879_v7, 11  ;;  %v6423_v23 = vld [vmem:[%s7960_s3 + $0x188] sm:$0xff]   ;;  %v6528_v7 = vld [vmem:[%s7961_s4 + $0x230] sm:$0xff]  }
  0xae   :  { %5732 = vmatprep.subr.bf16.mxu1 %v6561_v0 }
  0xaf   :  { %5713 = vmatpush3.bf16.msra.mxu0 %v6379_v26  ;;  %v6398_v26 = vld [vmem:[%s7960_s3 + $0x140] sm:$0xff]   ;;  %v1909_v37 = vrot.slane %v1907_v28, 6  ;;  %v1912_v38 = vrot.slane %v1910_v29, 7  ;;  %v1916_v41 = vshrl.u32 %v4849_v34, 16  ;;  %v1919_v42 = vshll.u32 %v4849_v34, 16  ;;  %v6424_v29 = vld [vmem:[%s7961_s4 + $0x48] sm:$0xff]  }
  0xb0   :  { %5714 = vmatprep.subr.bf16.mxu0 %v6561_v0  ;;  %v2187_v28 = vld [vmem:[#allocation2 + $0x30] sm:$0xf8]  ;;  %v2380_v34 = vld [vmem:[#allocation2 + $0x18] sm:$0x1f] }
  0xb1   :  { %5733 = vmatpush3.bf16.msra.mxu1 %v6380_v44  ;;  %v6405_v44 = vld [vmem:[%s7960_s3 + $0x120] sm:$0xff]   ;;  %v1913_v49 = vor.u32 %v1912_v38, %v1909_v37  ;;  %v1918_v51 = vrot.slane %v1916_v41, 6  ;;  %v4910_v37 = vcombine.low %v2187_v28, %v2187_v28 }
  0xb2   :  { %5734 = vmatprep.subr.bf16.mxu1 %v6561_v0  ;;  %v6429_v41 = vld [vmem:[%s7960_s3 + $0x1a0] sm:$0xff]  }
  0xb3   :  { %5715 = vmatpush3.bf16.msra.mxu0 %v6381_v35  ;;  %v6403_v35 = vld [vmem:[%s7960_s3 + $0x118] sm:$0xff]   ;;  %v1914_v58 = vrot.slane %v1913_v49, 4 }
  0xb4   :  { %5716 = vmatprep.subr.bf16.mxu0 %v6561_v0 }
  0xb5   :  { %5735 = vmatpush3.bf16.msra.mxu1 %v6382_v53  ;;  %v1921_v53 = vrot.slane %v1919_v42, 7  ;;  %v4942_v42 = vcombine.low %v2380_v34, %v2380_v34 }
  0xb6   :  { %5736 = vmatprep.subr.bf16.mxu1 %v6561_v0 }
  0xb7   :  { %5717 = vmatpush3.bf16.msra.mxu0 %v6383_v45  ;;  %v1934_v45 = vshrl.u32 %v4851_v36, 16  ;;  %v1922_v1 = vor.u32 %v1921_v53, %v1918_v51  ;;  %v6431_v51 = vld [vmem:[%s7960_s3 + $0x1a8] sm:$0xff]   ;;  %v2393_v53 = vshrl.u32 %v4942_v42, 16 }
  0xb8   :  { %5718 = vmatprep.subr.bf16.mxu0 %v6561_v0 }
  0xb9   :  { %5737 = vmatpush3.bf16.msra.mxu1 %v6384_v3  ;;  %v6408_v3 = vld [vmem:[%s7960_s3 + $0x168] sm:$0xff]  }
  0xba   :  { %5738 = vmatprep.subr.bf16.mxu1 %v6561_v0 }
  0xbb   :  { %5719 = vmatpush3.bf16.msra.mxu0 %v6385_v54  ;;  %v1936_v54 = vrot.slane %v1934_v45, 6  ;;  %v2215_v45 = vshrl.u32 %v4910_v37, 16  ;;  %v6436_v37 = vld [vmem:[%s7961_s4 + $0x78] sm:$0xff]  }
  0xbc   :  { %5720 = vmatprep.subr.bf16.mxu0 %v6561_v0 }
  0xbd   :  { %5739 = vmatpush3.bf16.msra.mxu1 %v6386_v9  ;;  %v1940_v2 = vor.u32 %v1939_v55, %v1936_v54  ;;  %v1923_v9 = vsel %vm6765_vm9, %v1914_v58, %v1922_v1  ;;  %v2396_v54 = vshll.u32 %v4942_v42, 16  ;;  %v6448_v42 = vld [vmem:[%s7961_s4 + $0x80] sm:$0xff]  }
  0xbe   :  { %5740 = vmatprep.subr.bf16.mxu1 %v6561_v0 }
  0xbf   :  { %5721 = vmatpush3.bf16.msra.mxu0 %v6387_v4  ;;  %v6411_v4 = vld [vmem:[%s7960_s3 + $0x138] sm:$0xff]  }
  0xc0   :  { %5746 = vmatprep.subr.bf16.mxu0 %v6561_v0 }
  0xc1   :  { %5741 = vmatpush3.bf16.msra.mxu1 %v6388_v17  ;;  %v2068_v17 = vrot.slane %v4878_v6, 7  ;;  %v6433_v6 = vld [vmem:[%s7960_s3 + $0x1b0] sm:$0xff]  }
  0xc2   :  { %5723 = vmatmul.mubr.bf16.vlgmr.msra.gmra.mrb[20].mxu0 %v4808_v11  ;;  %5766 = vmatprep.subr.bf16.mxu1 %v6561_v0  ;;  %v4880_v11 = vcombine.high %v2055_v63, %v2055_v63 }
  0xc3   :  { %5747 = vmatpush3.bf16.msra.mxu0 %v6397_v10  ;;  %5762 = vmatprep.mubr.msk.bf16.mxu0 %vm6562_vm0, %v6561_v0  ;;  %v1941_v10 = vsel %vm6765_vm9, %v1932_v60, %v1940_v2  ;;  %v2069_v21 = vsel %vm6950_vm15, %v4881_v16, %v2068_v17  ;;  %v4913_v60 = vrot.slane %v2215_v45, 11  ;;  %v6432_v17 = vld [vmem:[%s7961_s4 + $0x68] sm:$0xff]   ;;  %v6452_v45 = vld [vmem:[%s7961_s4 + $0x90] sm:$0xff]  }
  0xc4   :  { %5748 = vmatprep.subr.bf16.mxu0 %v6561_v0  ;;  %5743 = vmatmul.mubr.bf16.vlgmr.msra.gmra.mrb[20].mxu1 %v4839_v25  ;;  %v4868_v15 = vcombine.low %v1923_v9, %v1941_v10  ;;  %v2072_v19 = vrot.slane %v4880_v11, 7  ;;  %v2395_v9 = vrot.slane %v2393_v53, 4  ;;  %v2398_v10 = vrot.slane %v2396_v54, 5  ;;  %v6456_v53 = vld [vmem:[%s7961_s4 + $0xa0] sm:$0xff]  }
  0xc5   :  { %5767 = vmatpush3.bf16.msra.mxu1 %v6398_v26  ;;  %5782 = vmatprep.mubr.msk.bf16.mxu1 %vm6562_vm0, %v6561_v0  ;;  %v6425_v26 = vld [vmem:[%s7960_s3 + $0x190] sm:$0xff]  }
  0xc6   :  { %5768 = vmatprep.subr.bf16.mxu1 %v6561_v0 }
  0xc7   :  { %5749 = vmatpush3.bf16.msra.mxu0 %v6399_v22  ;;  %v2073_v22 = vsel %vm6950_vm15, %v4882_v18, %v2072_v19  ;;  %v6435_v18 = vld [vmem:[%s7960_s3 + $0x1b8] sm:$0xff]   ;;  %v2399_v19 = vor.u32 %v2398_v10, %v2395_v9 }
  0xc8   :  { %5750 = vmatprep.subr.bf16.mxu0 %v6561_v0  ;;  %v4899_v25 = vcombine.low %v2069_v21, %v2073_v22 }
  0xc9   :  { %5769 = vmatpush3.bf16.msra.mxu1 %v6400_v33  ;;  %v4911_v33 = vcombine.high %v2187_v28, %v2187_v28 }
  0xca   :  { %5770 = vmatprep.subr.bf16.mxu1 %v6561_v0 }
  0xcb   :  { %5751 = vmatpush3.bf16.msra.mxu0 %v6401_v27  ;;  %v2186_v27 = vld [vmem:[#allocation2 + $0x10] sm:$0xf8]  ;;  %v2220_v39 = vshrl.u32 %v4911_v33, 16  ;;  %v2223_v49 = vshll.u32 %v4911_v33, 16 }
  0xcc   :  { %5752 = vmatprep.subr.bf16.mxu0 %v6561_v0  ;;  %v4909_v31 = vcombine.high %v2186_v27, %v2186_v27  ;;  %v4908_v36 = vcombine.low %v2186_v27, %v2186_v27 }
  0xcd   :  { %5771 = vmatpush3.bf16.msra.mxu1 %v6402_v43 }
  0xce   :  { %5772 = vmatprep.subr.bf16.mxu1 %v6561_v0  ;;  %v2207_v38 = vshrl.u32 %v4909_v31, 16 }
  0xcf   :  { %5753 = vmatpush3.bf16.msra.mxu0 %v6403_v35  ;;  %v2381_v35 = vld [vmem:[#allocation2 + $0x38] sm:$0x1f] }
  0xd0   :  { %5754 = vmatprep.subr.bf16.mxu0 %v6561_v0  ;;  %v4944_v43 = vcombine.low %v2381_v35, %v2381_v35  ;;  %v2209_v46 = vrot.slane %v2207_v38, 7 }
  0xd1   :  { %5773 = vmatpush3.bf16.msra.mxu1 %v6404_v47  ;;  %v2210_v47 = vshll.u32 %v4909_v31, 16 }
  0xd2   :  { %5774 = vmatprep.subr.bf16.mxu1 %v6561_v0  ;;  %v2407_v55 = vshrl.u32 %v4944_v43, 16 }
  0xd3   :  { %5755 = vmatpush3.bf16.msra.mxu0 %v6405_v44  ;;  %v2202_v44 = vshrl.u32 %v4908_v36, 16  ;;  %v2212_v1 = vor.u32 %v2210_v47, %v2209_v46  ;;  %v6455_v46 = vld [vmem:[%s7961_s4 + $0x20] sm:$0xff]   ;;  %v6454_v47 = vld [vmem:[%s7961_s4 + $0x98] sm:$0xff]  }
  0xd4   :  { %5756 = vmatprep.subr.bf16.mxu0 %v6561_v0  ;;  %v2409_v11 = vrot.slane %v2407_v55, 4  ;;  %v6459_v55 = vld [vmem:[%s7961_s4 + $0x30] sm:$0xff]  }
  0xd5   :  { %5775 = vmatpush3.bf16.msra.mxu1 %v6406_v56  ;;  %v2410_v56 = vshll.u32 %v4944_v43, 16  ;;  %v4912_v58 = vrot.slane %v2202_v44, 11  ;;  %v6450_v43 = vld [vmem:[%s7961_s4 + $0x88] sm:$0xff]   ;;  %v6453_v44 = vld [vmem:[%s7961_s4 + $0x18] sm:$0xff]  }
  0xd6   :  { %5776 = vmatprep.subr.bf16.mxu1 %v6561_v0 }
  0xd7   :  { %5757 = vmatpush3.bf16.msra.mxu0 %v6407_v48  ;;  %v2222_v48 = vrot.slane %v2220_v39, 7 }
  0xd8   :  { %5758 = vmatprep.subr.bf16.mxu0 %v6561_v0 }
  0xd9   :  { %5777 = vmatpush3.bf16.msra.mxu1 %v6408_v3  ;;  %v2225_v2 = vor.u32 %v2223_v49, %v2222_v48  ;;  %v4943_v3 = vcombine.high %v2380_v34, %v2380_v34  ;;  %v6447_v34 = vld [vmem:[%s7961_s4] sm:$0xff]   ;;  %v6457_v48 = vld [vmem:[%s7961_s4 + $0x28] sm:$0xff]  }
  0xda   :  { %5778 = vmatprep.subr.bf16.mxu1 %v6561_v0 }
  0xdb   :  { %5759 = vmatpush3.bf16.msra.mxu0 %v6409_v57  ;;  %v2226_v16 = vsel %vm7249_vm10, %v4913_v60, %v2225_v2  ;;  %v2626_v60 = vld [vmem:[#allocation2 + $0x38] sm:$0x1e] }
  0xdc   :  { %5760 = vmatprep.subr.bf16.mxu0 %v6561_v0  ;;  %v2362_v2 = vld [vmem:[#allocation2 + $0x18] sm:$0xf] }
  0xdd   :  { %5779 = vmatpush3.bf16.msra.mxu1 %v6410_v13  ;;  %v2412_v13 = vrot.slane %v2410_v56, 5  ;;  %v2625_v56 = vld [vmem:[#allocation2 + $0x18] sm:$0x1e] }
  0xde   :  { %5780 = vmatprep.subr.bf16.mxu1 %v6561_v0 }
  0xdf   :  { %5761 = vmatpush3.bf16.msra.mxu0 %v6411_v4  ;;  %v4945_v4 = vcombine.high %v2381_v35, %v2381_v35  ;;  %v2413_v21 = vor.u32 %v2412_v13, %v2409_v11  ;;  %v6460_v11 = vld [vmem:[%s7961_s4 + $0xb0] sm:$0xff]  }
  0xe0   :  { %5786 = vmatprep.subr.bf16.mxu0 %v6561_v0 }
  0xe1   :  { %5781 = vmatpush3.bf16.msra.mxu1 %v6412_v20  ;;  %v2402_v20 = vshll.u32 %v4943_v3, 16  ;;  %v2416_v22 = vshll.u32 %v4945_v4, 16  ;;  %v2414_v31 = vrot.slane %v2413_v21, 4  ;;  %v2363_v3 = vld [vmem:[#allocation2 + $0x38] sm:$0xf]  ;;  %v4981_v4 = vcombine.high %v2625_v56, %v2625_v56 }
  0xe2   :  { %5763 = vmatmul.mubr.bf16.vlgmr.msra.gmra.mrb[24].mxu0 %v4868_v15  ;;  %5806 = vmatprep.subr.bf16.mxu1 %v6561_v0  ;;  %v2213_v15 = vsel %vm7249_vm10, %v4912_v58, %v2212_v1  ;;  %v6461_v1 = vld [vmem:[%s7961_s4 + $0x38] sm:$0xff]   ;;  %v4971_v13 = vcombine.low %v2362_v2, %v2363_v3 }
  0xe3   :  { %5787 = vmatpush3.bf16.msra.mxu0 %v6421_v14  ;;  %5802 = vmatprep.mubr.msk.bf16.mxu0 %vm6562_vm0, %v6561_v0  ;;  %v4930_v27 = vcombine.low %v2213_v15, %v2226_v16  ;;  %v2418_v33 = vrot.slane %v2416_v22, 5  ;;  %v2639_v16 = vrot.slane %v4981_v4, 5  ;;  %v6462_v21 = vld [vmem:[%s7961_s4 + $0xb8] sm:$0xff]  }
  0xe4   :  { %5788 = vmatprep.subr.bf16.mxu0 %v6561_v0  ;;  %5783 = vmatmul.mubr.bf16.vlgmr.msra.gmra.mrb[24].mxu1 %v4899_v25  ;;  %v2917_v3 = vld [vmem:[#allocation2 + $0x18] sm:$0x3c] }
  0xe5   :  { %5807 = vmatpush3.bf16.msra.mxu1 %v6422_v24  ;;  %5822 = vmatprep.mubr.msk.bf16.mxu1 %vm6562_vm0, %v6561_v0  ;;  %v2419_v39 = vsel %vm7031_vm4, %v2414_v31, %v2418_v33 }
  0xe6   :  { %5808 = vmatprep.subr.bf16.mxu1 %v6561_v0 }
  0xe7   :  { %5789 = vmatpush3.bf16.msra.mxu0 %v6423_v23 }
  0xe8   :  { %5790 = vmatprep.subr.bf16.mxu0 %v6561_v0 }
  0xe9   :  { %5809 = vmatpush3.bf16.msra.mxu1 %v6424_v29  ;;  %v2400_v29 = vrot.slane %v2399_v19, 4  ;;  %v6467_v19 = vld [vmem:[%s7961_s4 + $0xc0] sm:$0xff]  }
  0xea   :  { %5810 = vmatprep.subr.bf16.mxu1 %v6561_v0 }
  0xeb   :  { %5791 = vmatpush3.bf16.msra.mxu0 %v6425_v26  ;;  %v6434_v26 = vld [vmem:[%s7961_s4 + $0x70] sm:$0xff]  }
  0xec   :  { %5792 = vmatprep.subr.bf16.mxu0 %v6561_v0 }
  0xed   :  { %5811 = vmatpush3.bf16.msra.mxu1 %v6426_v40  ;;  %v6449_v40 = vld [vmem:[%s7961_s4 + $0x8] sm:$0xff]  }
  0xee   :  { %5812 = vmatprep.subr.bf16.mxu1 %v6561_v0 }
  0xef   :  { %5793 = vmatpush3.bf16.msra.mxu0 %v6427_v30  ;;  %v2404_v30 = vrot.slane %v2402_v20, 5 }
  0xf0   :  { %5794 = vmatprep.subr.bf16.mxu0 %v6561_v0 }
  0xf1   :  { %5813 = vmatpush3.bf16.msra.mxu1 %v6428_v50  ;;  %v2405_v38 = vsel %vm7031_vm4, %v2400_v29, %v2404_v30 }
  0xf2   :  { %5814 = vmatprep.subr.bf16.mxu1 %v6561_v0 }
  0xf3   :  { %5795 = vmatpush3.bf16.msra.mxu0 %v6429_v41  ;;  %v4962_v41 = vcombine.low %v2405_v38, %v2419_v39 }
  0xf4   :  { %5796 = vmatprep.subr.bf16.mxu0 %v6561_v0 }
  0xf5   :  { %v295_v57 = vpop.f32.mrb[0].mxu0  ;;  %5815 = vmatpush3.bf16.msra.mxu1 %v6430_v62  ;;  %v6458_v62 = vld [vmem:[%s7961_s4 + $0xa8] sm:$0xff]  }
  0xf6   :  { %v5524_v63 = vpop.f32.mrb[1].mxu0  ;;  %5816 = vmatprep.subr.bf16.mxu1 %v6561_v0 }
  0xf7   :  { %v298_v5 = vpop.f32.mrb[2].mxu0  ;;  %5797 = vmatpush3.bf16.msra.mxu0 %v6431_v51  ;;  %v388_v23 = vpop.f32.mrb[0].mxu1  ;;  %v4980_v63 = vcombine.low %v2625_v56, %v2625_v56 }
  0xf8   :  { %v5525_v14 = vpop.f32.mrb[3].mxu0  ;;  %5798 = vmatprep.subr.bf16.mxu0 %v6561_v0  ;;  %v389_v24 = vadd.f32 %v388_v23, %v295_v57  ;;  %v5544_v25 = vpop.f32.mrb[1].mxu1 }
  0xf9   :  { %v391_v28 = vpop.f32.mrb[2].mxu1  ;;  %5817 = vmatpush3.bf16.msra.mxu1 %v6432_v17  ;;  %v4984_v15 = vrot.slane %v4980_v63, 9  ;;  %v2757_v25 = vld [vmem:[#allocation2 + $0x18] sm:$0x3e]  ;;  %v6476_v63 = vld [vmem:[%s7961_s4 + $0x120] sm:$0xff]  }
  0xfa   :  { %v392_v35 = vadd.f32 %v391_v28, %v298_v5  ;;  %v5545_v36 = vpop.f32.mrb[3].mxu1  ;;  %5818 = vmatprep.subr.bf16.mxu1 %v6561_v0  ;;  %v4982_v5 = vcombine.low %v2626_v60, %v2626_v60  ;;  %v6471_v28 = vld [vmem:[%s7961_s4 + $0xd0] sm:$0xff]   ;;  %v5011_v29 = vcombine.low %v2757_v25, %v2757_v25  ;;  %v5012_v31 = vcombine.high %v2757_v25, %v2757_v25 }
  0xfb   :  { %5799 = vmatpush3.bf16.msra.mxu0 %v6433_v6  ;;  %v4983_v6 = vcombine.high %v2626_v60, %v2626_v60  ;;  %v2640_v22 = vsel %vm6845_vm12, %v4984_v15, %v2639_v16  ;;  %v2918_v15 = vld [vmem:[#allocation2 + $0x38] sm:$0x3c] }
  0xfc   :  { %5800 = vmatprep.subr.bf16.mxu0 %v6561_v0  ;;  %v4985_v17 = vrot.slane %v4982_v5, 9  ;;  %v2770_v36 = vshrl.u32 %v5011_v29, 16  ;;  %v6479_v5 = vld [vmem:[%s7961_s4 + $0xf0] sm:$0xff]  }
  0xfd   :  { %5819 = vmatpush3.bf16.msra.mxu1 %v6434_v26  ;;  %v2758_v26 = vld [vmem:[#allocation2 + $0x38] sm:$0x3e] }
  0xfe   :  { %5820 = vmatprep.subr.bf16.mxu1 %v6561_v0  ;;  %v5013_v30 = vcombine.low %v2758_v26, %v2758_v26  ;;  %v5014_v33 = vcombine.high %v2758_v26, %v2758_v26 }
  0xff   :  { %5801 = vmatpush3.bf16.msra.mxu0 %v6435_v18  ;;  %v2643_v18 = vrot.slane %v4983_v6, 5 }
 0x100   :  { %5826 = vmatprep.subr.bf16.mxu0 %v6561_v0  ;;  %v2788_v38 = vshrl.u32 %v5013_v30, 16  ;;  %v2791_v39 = vshll.u32 %v5013_v30, 16 }
 0x101   :  { %5821 = vmatpush3.bf16.msra.mxu1 %v6436_v37  ;;  %v2644_v23 = vsel %vm6845_vm12, %v4985_v17, %v2643_v18  ;;  %v2773_v37 = vshll.u32 %v5011_v29, 16  ;;  %v5041_v18 = vcombine.high %v2917_v3, %v2917_v3 }
 0x102   :  { %5803 = vmatmul.mubr.bf16.vlgmr.msra.gmra.mrb[28].mxu0 %v4930_v27  ;;  %5846 = vmatprep.subr.bf16.mxu1 %v6561_v0  ;;  %v5002_v27 = vcombine.low %v2640_v22, %v2644_v23  ;;  %v5043_v23 = vcombine.high %v2918_v15, %v2918_v15 }
 0x103   :  { %5827 = vmatpush3.bf16.msra.mxu0 %v6447_v34  ;;  %5842 = vmatprep.mubr.msk.bf16.mxu0 %vm6562_vm0, %v6561_v0  ;;  %v6470_v34 = vld [vmem:[%s7961_s4 + $0x108] sm:$0xff]   ;;  %v2931_v59 = vrot.slane %v5041_v18, 6  ;;  %v6500_v18 = vld [vmem:[%s7961_s4 + $0x1a0] sm:$0xff]  }
 0x104   :  { %5828 = vmatprep.subr.bf16.mxu0 %v6561_v0  ;;  %5823 = vmatmul.mubr.bf16.vlgmr.msra.gmra.mrb[28].mxu1 %v4962_v41  ;;  %v2782_v41 = vshll.u32 %v5012_v31, 16 }
 0x105   :  { %5847 = vmatpush3.bf16.msra.mxu1 %v6448_v42  ;;  %5862 = vmatprep.mubr.msk.bf16.mxu1 %vm6562_vm0, %v6561_v0  ;;  %v2797_v42 = vshrl.u32 %v5014_v33, 16 }
 0x106   :  { %5848 = vmatprep.subr.bf16.mxu1 %v6561_v0 }
 0x107   :  { %5829 = vmatpush3.bf16.msra.mxu0 %v6449_v40  ;;  %v2779_v40 = vshrl.u32 %v5012_v31, 16  ;;  %v2935_v31 = vrot.slane %v5043_v23, 6 }
 0x108   :  { %5830 = vmatprep.subr.bf16.mxu0 %v6561_v0 }
 0x109   :  { %5849 = vmatpush3.bf16.msra.mxu1 %v6450_v43  ;;  %v6472_v43 = vld [vmem:[%s7961_s4 + $0x110] sm:$0xff]  }
 0x10a   :  { %5850 = vmatprep.subr.bf16.mxu1 %v6561_v0 }
 0x10b   :  { %5831 = vmatpush3.bf16.msra.mxu0 %v6451_v8  ;;  %v2800_v8 = vshll.u32 %v5014_v33, 16  ;;  %v6491_v33 = vld [vmem:[%s7961_s4 + $0x140] sm:$0xff]  }
 0x10c   :  { %5832 = vmatprep.subr.bf16.mxu0 %v6561_v0 }
 0x10d   :  { %5851 = vmatpush3.bf16.msra.mxu1 %v6452_v45  ;;  %v2772_v45 = vrot.slane %v2770_v36, 5  ;;  %v2802_v60 = vrot.slane %v2800_v8, 6  ;;  %v6482_v36 = vld [vmem:[%s7961_s4 + $0x138] sm:$0xff]  }
 0x10e   :  { %5852 = vmatprep.subr.bf16.mxu1 %v6561_v0 }
 0x10f   :  { %5833 = vmatpush3.bf16.msra.mxu0 %v6453_v44  ;;  %v6475_v44 = vld [vmem:[%s7961_s4 + $0xe0] sm:$0xff]  }
 0x110   :  { %5834 = vmatprep.subr.bf16.mxu0 %v6561_v0 }
 0x111   :  { %5853 = vmatpush3.bf16.msra.mxu1 %v6454_v47  ;;  %v2790_v47 = vrot.slane %v2788_v38, 5 }
 0x112   :  { %5854 = vmatprep.subr.bf16.mxu1 %v6561_v0 }
 0x113   :  { %5835 = vmatpush3.bf16.msra.mxu0 %v6455_v46  ;;  %v2775_v46 = vrot.slane %v2773_v37, 6 }
 0x114   :  { %5836 = vmatprep.subr.bf16.mxu0 %v6561_v0 }
 0x115   :  { %v549_v49 = vpop.f32.mrb[4].mxu0  ;;  %5855 = vmatpush3.bf16.msra.mxu1 %v6456_v53  ;;  %v6474_v53 = vld [vmem:[%s7961_s4 + $0x118] sm:$0xff]  }
 0x116   :  { %v7323_v50 = vadd.f32 %v549_v49, %v389_v24  ;;  %v5564_v51 = vpop.f32.mrb[5].mxu0  ;;  %5856 = vmatprep.subr.bf16.mxu1 %v6561_v0  ;;  %v6469_v24 = vld [vmem:[%s7961_s4 + $0xc8] sm:$0xff]   ;;  %v2781_v49 = vrot.slane %v2779_v40, 5  ;;  %v3049_v40 = vld [vmem:[#allocation2 + $0x18] sm:$0x7c] }
 0x117   :  { %v552_v54 = vpop.f32.mrb[6].mxu0  ;;  %5837 = vmatpush3.bf16.msra.mxu0 %v6457_v48  ;;  %v7343_v9 = vpop.f32.mrb[4].mxu1  ;;  %v2793_v48 = vrot.slane %v2791_v39, 6  ;;  %v2784_v51 = vrot.slane %v2782_v41, 6  ;;  %v6493_v39 = vld [vmem:[%s7961_s4 + $0x148] sm:$0xff]   ;;  %v5071_v8 = vcombine.low %v3049_v40, %v3049_v40 }
 0x118   :  { %v7332_v57 = vadd.f32 %v552_v54, %v392_v35  ;;  %v5565_v58 = vpop.f32.mrb[7].mxu0  ;;  %5838 = vmatprep.subr.bf16.mxu0 %v6561_v0  ;;  %v5584_v10 = vpop.f32.mrb[5].mxu1  ;;  %v6473_v35 = vld [vmem:[%s7961_s4 + $0xd8] sm:$0xff]   ;;  %v6477_v54 = vld [vmem:[%s7961_s4 + $0xe8] sm:$0xff]  }
 0x119   :  { %v7348_v14 = vpop.f32.mrb[6].mxu1  ;;  %5857 = vmatpush3.bf16.msra.mxu1 %v6458_v62  ;;  %v2794_v56 = vor.u32 %v2793_v48, %v2790_v47  ;;  %v2799_v58 = vrot.slane %v2797_v42, 5  ;;  %v2785_v10 = vor.u32 %v2784_v51, %v2781_v49  ;;  %v3050_v41 = vld [vmem:[#allocation2 + $0x38] sm:$0x7c]  ;;  %v3065_v47 = vshll.u32 %v5071_v8, 16  ;;  %v6494_v48 = vld [vmem:[%s7961_s4 + $0x188] sm:$0xff]  }
 0x11a   :  { %v5585_v20 = vpop.f32.mrb[7].mxu1  ;;  %5858 = vmatprep.subr.bf16.mxu1 %v6561_v0  ;;  %v6497_v49 = vld [vmem:[%s7961_s4 + $0x158] sm:$0xff]   ;;  %v5074_v51 = vcombine.high %v3050_v41, %v3050_v41 }
 0x11b   :  { %5839 = vmatpush3.bf16.msra.mxu0 %v6459_v55  ;;  %v2776_v55 = vor.u32 %v2775_v46, %v2772_v45  ;;  %v6478_v20 = vld [vmem:[%s7961_s4 + $0x128] sm:$0xff]   ;;  %v5072_v45 = vcombine.high %v3049_v40, %v3049_v40  ;;  %v3062_v46 = vshrl.u32 %v5071_v8, 16  ;;  %v6504_v40 = vld [vmem:[%s7961_s4 + $0x1b0] sm:$0xff]  }
 0x11c   :  { %5840 = vmatprep.subr.bf16.mxu0 %v6561_v0 }
 0x11d   :  { %5859 = vmatpush3.bf16.msra.mxu1 %v6460_v11  ;;  %v2777_v6 = vrot.slane %v2776_v55, 4  ;;  %v2795_v11 = vrot.slane %v2794_v56, 4  ;;  %v3064_v55 = vrot.slane %v3062_v46, 6  ;;  %v3067_v56 = vrot.slane %v3065_v47, 7  ;;  %v6506_v47 = vld [vmem:[%s7961_s4 + $0x1b8] sm:$0xff]  }
 0x11e   :  { %5860 = vmatprep.subr.bf16.mxu1 %v6561_v0 }
 0x11f   :  { %5841 = vmatpush3.bf16.msra.mxu0 %v6461_v1  ;;  %v2786_v22 = vsel %vm6702_vm6, %v2777_v6, %v2785_v10  ;;  %v6498_v10 = vld [vmem:[%s7961_s4 + $0x198] sm:$0xff]  }
 0x120   :  { %5866 = vmatprep.subr.bf16.mxu0 %v6561_v0 }
 0x121   :  { %5861 = vmatpush3.bf16.msra.mxu1 %v6462_v21  ;;  %v6481_v21 = vld [vmem:[%s7961_s4 + $0xf8] sm:$0xff]  }
 0x122   :  { %5843 = vmatmul.mubr.bf16.vlgmr.msra.gmra.mrb[32].mxu0 %v4971_v13  ;;  %5886 = vmatprep.subr.bf16.mxu1 %v6561_v0  ;;  %v2803_v13 = vor.u32 %v2802_v60, %v2799_v58  ;;  %v3071_v58 = vshrl.u32 %v5072_v45, 16  ;;  %v3074_v60 = vshll.u32 %v5072_v45, 16 }
 0x123   :  { %5867 = vmatpush3.bf16.msra.mxu0 %v6467_v19  ;;  %5882 = vmatprep.mubr.msk.bf16.mxu0 %vm6562_vm0, %v6561_v0  ;;  %v5042_v19 = vcombine.low %v2918_v15, %v2918_v15 }
 0x124   :  { %5868 = vmatprep.subr.bf16.mxu0 %v6561_v0  ;;  %5863 = vmatmul.mubr.bf16.vlgmr.msra.gmra.mrb[32].mxu1 %v5002_v27  ;;  %v6480_v27 = vld [vmem:[%s7961_s4 + $0x130] sm:$0xff]   ;;  %v3073_v6 = vrot.slane %v3071_v58, 6 }
 0x125   :  { %5887 = vmatpush3.bf16.msra.mxu1 %v6468_v52  ;;  %5902 = vmatprep.mubr.msk.bf16.mxu1 %vm6562_vm0, %v6561_v0  ;;  %v5045_v30 = vrot.slane %v5042_v19, 10 }
 0x126   :  { %5888 = vmatprep.subr.bf16.mxu1 %v6561_v0 }
 0x127   :  { %5869 = vmatpush3.bf16.msra.mxu0 %v6469_v24  ;;  %v2936_v38 = vsel %vm6687_vm5, %v5045_v30, %v2935_v31  ;;  %v6502_v31 = vld [vmem:[%s7961_s4 + $0x1a8] sm:$0xff]  }
 0x128   :  { %5870 = vmatprep.subr.bf16.mxu0 %v6561_v0 }
 0x129   :  { %5889 = vmatpush3.bf16.msra.mxu1 %v6470_v34 }
 0x12a   :  { %5890 = vmatprep.subr.bf16.mxu1 %v6561_v0 }
 0x12b   :  { %5871 = vmatpush3.bf16.msra.mxu0 %v6471_v28 }
 0x12c   :  { %5872 = vmatprep.subr.bf16.mxu0 %v6561_v0 }
 0x12d   :  { %5891 = vmatpush3.bf16.msra.mxu1 %v6472_v43  ;;  %v6495_v43 = vld [vmem:[%s7961_s4 + $0x150] sm:$0xff]  }
 0x12e   :  { %5892 = vmatprep.subr.bf16.mxu1 %v6561_v0 }
 0x12f   :  { %5873 = vmatpush3.bf16.msra.mxu0 %v6473_v35 }
 0x130   :  { %5874 = vmatprep.subr.bf16.mxu0 %v6561_v0 }
 0x131   :  { %5893 = vmatpush3.bf16.msra.mxu1 %v6474_v53 }
 0x132   :  { %5894 = vmatprep.subr.bf16.mxu1 %v6561_v0 }
 0x133   :  { %5875 = vmatpush3.bf16.msra.mxu0 %v6475_v44  ;;  %v5073_v44 = vcombine.low %v3050_v41, %v3050_v41 }
 0x134   :  { %5876 = vmatprep.subr.bf16.mxu0 %v6561_v0 }
 0x135   :  { %v863_v62 = vpop.f32.mrb[8].mxu0  ;;  %5895 = vmatpush3.bf16.msra.mxu1 %v6476_v63  ;;  %v3080_v53 = vshrl.u32 %v5073_v44, 16  ;;  %v6499_v63 = vld [vmem:[%s7961_s4 + $0x160] sm:$0xff]  }
 0x136   :  { %v864_v1 = vadd.f32 %v863_v62, %v7343_v9  ;;  %v5604_v2 = vpop.f32.mrb[9].mxu0  ;;  %v5040_v9 = vcombine.low %v2917_v3, %v2917_v3  ;;  %5896 = vmatprep.subr.bf16.mxu1 %v6561_v0  ;;  %v6496_v62 = vld [vmem:[%s7961_s4 + $0x190] sm:$0xff]   ;;  %v3089_v3 = vshrl.u32 %v5074_v51, 16 }
 0x137   :  { %v866_v4 = vpop.f32.mrb[10].mxu0  ;;  %5877 = vmatpush3.bf16.msra.mxu0 %v6477_v54  ;;  %v993_v24 = vpop.f32.mrb[8].mxu1  ;;  %v3083_v54 = vshll.u32 %v5073_v44, 16  ;;  %v6515_v44 = vld [vmem:[%s7961_s4 + $0x1c0] sm:$0xff]  }
 0x138   :  { %v867_v16 = vadd.f32 %v866_v4, %v7348_v14  ;;  %v5605_v17 = vpop.f32.mrb[11].mxu0  ;;  %5878 = vmatprep.subr.bf16.mxu0 %v6561_v0  ;;  %v2804_v14 = vsel %vm6702_vm6, %v2795_v11, %v2803_v13  ;;  %v7425_v25 = vadd.f32 %v993_v24, %v864_v1  ;;  %v5624_v26 = vpop.f32.mrb[9].mxu1  ;;  %v5044_v29 = vrot.slane %v5040_v9, 10  ;;  %v6501_v11 = vld [vmem:[%s7961_s4 + $0x168] sm:$0xff]  }
 0x139   :  { %v5031_v52 = vcombine.low %v2786_v22, %v2804_v14  ;;  %v996_v28 = vpop.f32.mrb[10].mxu1  ;;  %5897 = vmatpush3.bf16.msra.mxu1 %v6478_v20  ;;  %v3082_v1 = vrot.slane %v3080_v53, 6  ;;  %v3085_v2 = vrot.slane %v3083_v54, 7  ;;  %v3092_v4 = vshll.u32 %v5074_v51, 16  ;;  %v6503_v14 = vld [vmem:[%s7961_s4 + $0x170] sm:$0xff]   ;;  %v6517_v51 = vld [vmem:[%s7961_s4 + $0x1c8] sm:$0xff]  }
 0x13a   :  { %v7433_v34 = vadd.f32 %v996_v28, %v867_v16  ;;  %v5625_v35 = vpop.f32.mrb[11].mxu1  ;;  %5898 = vmatprep.subr.bf16.mxu1 %v6561_v0  ;;  %v2932_v37 = vsel %vm6687_vm5, %v5044_v29, %v2931_v59  ;;  %v3076_v13 = vrot.slane %v3074_v60, 7  ;;  %v3091_v16 = vrot.slane %v3089_v3, 6  ;;  %v6516_v54 = vld [vmem:[%s7961_s4 + $0x200] sm:$0xff]   ;;  %v6518_v60 = vld [vmem:[%s7961_s4 + $0x208] sm:$0xff]   ;;  %v6520_v3 = vld [vmem:[%s7961_s4 + $0x210] sm:$0xff]  }
 0x13b   :  { %5879 = vmatpush3.bf16.msra.mxu0 %v6479_v5  ;;  %v5062_v42 = vcombine.low %v2932_v37, %v2936_v38  ;;  %v3068_v5 = vor.u32 %v3067_v56, %v3064_v55  ;;  %v3086_v15 = vor.u32 %v3085_v2, %v3082_v1  ;;  %v3094_v17 = vrot.slane %v3092_v4, 7  ;;  %v3341_v55 = vld [vmem:[#allocation2 + $0x18] sm:$0xf8]  ;;  %v6523_v4 = vld [vmem:[%s7961_s4 + $0x1e0] sm:$0xff]  }
 0x13c   :  { %5880 = vmatprep.subr.bf16.mxu0 %v6561_v0  ;;  %v3077_v24 = vor.u32 %v3076_v13, %v3073_v6  ;;  %v3342_v56 = vld [vmem:[#allocation2 + $0x38] sm:$0xf8]  ;;  %v5132_v58 = vcombine.high %v3341_v55, %v3341_v55  ;;  %v5131_v1 = vcombine.low %v3341_v55, %v3341_v55  ;;  %vm3696_vm5 = vcmask 1041409  }
 0x13d   :  { %5899 = vmatpush3.bf16.msra.mxu1 %v6480_v27  ;;  %v3069_v23 = vrot.slane %v3068_v5, 4  ;;  %v3087_v26 = vrot.slane %v3086_v15, 4  ;;  %v3095_v27 = vor.u32 %v3094_v17, %v3091_v16  ;;  %v5133_v5 = vcombine.low %v3342_v56, %v3342_v56  ;;  %v6522_v13 = vld [vmem:[%s7961_s4 + $0x218] sm:$0xff]   ;;  %v6525_v15 = vld [vmem:[%s7961_s4 + $0x1e8] sm:$0xff]  }
 0x13e   :  { %5900 = vmatprep.subr.bf16.mxu1 %v6561_v0  ;;  %v3359_v2 = vshrl.u32 %v5132_v58, 16  ;;  %v3362_v16 = vshll.u32 %v5132_v58, 16  ;;  %vm4006_vm6 = vcmask 1043456  }
 0x13f   :  { %5881 = vmatpush3.bf16.msra.mxu0 %v6481_v21  ;;  %v3209_v21 = vld [vmem:[#allocation2 + $0x18] sm:$0x78]  ;;  %v3078_v35 = vsel %vm6765_vm9, %v3069_v23, %v3077_v24  ;;  %v3367_v17 = vshrl.u32 %v5133_v5, 16 }
 0x140   :  { %5906 = vmatprep.subr.bf16.mxu0 %v6561_v0  ;;  %v5101_v59 = vcombine.high %v3209_v21, %v3209_v21 }
 0x141   :  { %5901 = vmatpush3.bf16.msra.mxu1 %v6482_v36 }
 0x142   :  { %5883 = vmatmul.mubr.bf16.vlgmr.msra.gmra.mrb[36].mxu0 %v5031_v52  ;;  %5926 = vmatprep.subr.bf16.mxu1 %v6561_v0  ;;  %v3210_v52 = vld [vmem:[#allocation2 + $0x38] sm:$0x78]  ;;  %v3223_v61 = vrot.slane %v5101_v59, 7 }
 0x143   :  { %5907 = vmatpush3.bf16.msra.mxu0 %v6491_v33  ;;  %5922 = vmatprep.mubr.msk.bf16.mxu0 %vm6562_vm0, %v6561_v0  ;;  %v5102_v30 = vcombine.low %v3210_v52, %v3210_v52  ;;  %v6505_v33 = vld [vmem:[%s7961_s4 + $0x178] sm:$0xff]   ;;  %v5103_v36 = vcombine.high %v3210_v52, %v3210_v52 }
 0x144   :  { %5908 = vmatprep.subr.bf16.mxu0 %v6561_v0  ;;  %5903 = vmatmul.mubr.bf16.vlgmr.msra.gmra.mrb[36].mxu1 %v5062_v42 }
 0x145   :  { %5927 = vmatpush3.bf16.msra.mxu1 %v6492_v32  ;;  %5942 = vmatprep.mubr.msk.bf16.mxu1 %vm6562_vm0, %v6561_v0  ;;  %v5105_v32 = vrot.slane %v5102_v30, 11  ;;  %v3629_v30 = vld [vmem:[%s7962_s6] sm:$0xff] }
 0x146   :  { %5928 = vmatprep.subr.bf16.mxu1 %v6561_v0 }
 0x147   :  { %5909 = vmatpush3.bf16.msra.mxu0 %v6493_v39 }
 0x148   :  { %5910 = vmatprep.subr.bf16.mxu0 %v6561_v0 }
 0x149   :  { %5929 = vmatpush3.bf16.msra.mxu1 %v6494_v48 }
 0x14a   :  { %5930 = vmatprep.subr.bf16.mxu1 %v6561_v0 }
 0x14b   :  { %5911 = vmatpush3.bf16.msra.mxu0 %v6495_v43  ;;  %v3227_v43 = vrot.slane %v5103_v36, 7 }
 0x14c   :  { %5912 = vmatprep.subr.bf16.mxu0 %v6561_v0 }
 0x14d   :  { %5931 = vmatpush3.bf16.msra.mxu1 %v6496_v62  ;;  %v6521_v62 = vld [vmem:[%s7961_s4 + $0x1d8] sm:$0xff]  }
 0x14e   :  { %5932 = vmatprep.subr.bf16.mxu1 %v6561_v0 }
 0x14f   :  { %5913 = vmatpush3.bf16.msra.mxu0 %v6497_v49  ;;  %v3228_v49 = vsel %vm6950_vm15, %v5105_v32, %v3227_v43  ;;  %v3632_v32 = vld [vmem:[%s7962_s6 + $0x18] sm:$0xff] }
 0x150   :  { %5914 = vmatprep.subr.bf16.mxu0 %v6561_v0 }
 0x151   :  { %5933 = vmatpush3.bf16.msra.mxu1 %v6498_v10  ;;  %v3354_v10 = vshrl.u32 %v5131_v1, 16  ;;  %v3636_v1 = vld [vmem:[%s7962_s6 + $0x38] sm:$0xff] }
 0x152   :  { %5934 = vmatprep.subr.bf16.mxu1 %v6561_v0 }
 0x153   :  { %5915 = vmatpush3.bf16.msra.mxu0 %v6499_v63  ;;  %v5134_v63 = vcombine.high %v3342_v56, %v3342_v56  ;;  %v5135_v23 = vrot.slane %v3354_v10, 11  ;;  %v4741_v56 = vld [vmem:[%s7963_s5 + $0x1] ss:$0 sm:$0xff]  ;;  %v3650_v10 = vld [vmem:[%s7962_s6 + $0xa8] sm:$0xff] }
 0x154   :  { %5916 = vmatprep.subr.bf16.mxu0 %v6561_v0 }
 0x155   :  { %v1153_v9 = vpop.f32.mrb[12].mxu0  ;;  %5935 = vmatpush3.bf16.msra.mxu1 %v6500_v18  ;;  %v3372_v6 = vshrl.u32 %v5134_v63, 16  ;;  %v3375_v18 = vshll.u32 %v5134_v63, 16  ;;  %v3648_v63 = vld [vmem:[%s7962_s6 + $0x98] sm:$0xff] }
 0x156   :  { %v1160_v19 = vadd.f32 %v1153_v9, %v7425_v25  ;;  %v5644_v20 = vpop.f32.mrb[13].mxu0  ;;  %v5100_v25 = vcombine.low %v3209_v21, %v3209_v21  ;;  %5936 = vmatprep.subr.bf16.mxu1 %v6561_v0  ;;  %v6524_v21 = vld [vmem:[%s7961_s4 + $0x220] sm:$0xff]  }
 0x157   :  { %v1156_v22 = vpop.f32.mrb[14].mxu0  ;;  %5917 = vmatpush3.bf16.msra.mxu0 %v6501_v11  ;;  %v1288_v37 = vpop.f32.mrb[12].mxu1  ;;  %v3361_v11 = vrot.slane %v3359_v2, 7  ;;  %v3374_v9 = vrot.slane %v3372_v6, 7  ;;  %v3649_v6 = vld [vmem:[%s7962_s6 + $0xa0] sm:$0xff] }
 0x158   :  { %v1161_v28 = vadd.f32 %v1156_v22, %v7433_v34  ;;  %v5645_v29 = vpop.f32.mrb[15].mxu0  ;;  %5918 = vmatprep.subr.bf16.mxu0 %v6561_v0  ;;  %v3096_v34 = vsel %vm6765_vm9, %v3087_v26, %v3095_v27  ;;  %v7507_v38 = vadd.f32 %v1288_v37, %v1160_v19  ;;  %v5664_v39 = vpop.f32.mrb[13].mxu1  ;;  %v5104_v8 = vrot.slane %v5100_v25, 11 }
 0x159   :  { %v5091_v41 = vcombine.low %v3078_v35, %v3096_v34  ;;  %v1291_v42 = vpop.f32.mrb[14].mxu1  ;;  %5937 = vmatpush3.bf16.msra.mxu1 %v6502_v31  ;;  %v3364_v24 = vor.u32 %v3362_v16, %v3361_v11  ;;  %v5136_v26 = vrot.slane %v3367_v17, 11  ;;  %v3377_v27 = vor.u32 %v3375_v18, %v3374_v9  ;;  %v6529_v29 = vld [vmem:[%s7961_s4 + $0x1f8] sm:$0xff]   ;;  %v3630_v31 = vld [vmem:[%s7962_s6 + $0x8] sm:$0xff] }
 0x15a   :  { %v7515_v45 = vadd.f32 %v1291_v42, %v1161_v28  ;;  %v5665_v46 = vpop.f32.mrb[15].mxu1  ;;  %5938 = vmatprep.subr.bf16.mxu1 %v6561_v0  ;;  %v3224_v48 = vsel %vm6950_vm15, %v5104_v8, %v3223_v61  ;;  %v6526_v28 = vld [vmem:[%s7961_s4 + $0x228] sm:$0xff]   ;;  %v6147_v39 = vpack.c.bf16 %v3630_v31, %v3629_v30  ;;  %v6564_v8 = vmov 0.0|0.0   ;;  %v3631_v61 = vld [vmem:[%s7962_s6 + $0x10] sm:$0xff] }
 0x15b   :  { %5919 = vmatpush3.bf16.msra.mxu0 %v6503_v14  ;;  %v5122_v53 = vcombine.low %v3224_v48, %v3228_v49  ;;  %v6527_v14 = vld [vmem:[%s7961_s4 + $0x1f0] sm:$0xff]   ;;  %v3365_v25 = vsel %vm7249_vm10, %v5135_v23, %v3364_v24  ;;  %v3378_v59 = vsel %vm7249_vm10, %v5136_v26, %v3377_v27  ;;  %v3491_v46 = vld [vmem:[#allocation2 + $0x18] sm:$0xf0]  ;;  %v3645_v48 = vld [vmem:[%s7962_s6 + $0x80] sm:$0xff]  ;;  %v6150_v49 = vpack.c.bf16 %v3632_v32, %v3631_v61 }
 0x15c   :  { %5920 = vmatprep.subr.bf16.mxu0 %v6561_v0  ;;  %v5153_v36 = vcombine.low %v3365_v25, %v3378_v59  ;;  %v6177_v17 = vpack.c.bf16 %v3650_v10, %v3649_v6  ;;  %v7678_v18 = vadd.f32 %v4741_v56, %v7507_v38  ;;  %v3639_v38 = vld [vmem:[%s7962_s6 + $0x50] sm:$0xff]  ;;  %v3641_v25 = vld [vmem:[%s7962_s6 + $0x60] sm:$0xff]  ;;  %v3642_v59 = vld [vmem:[%s7962_s6 + $0x68] sm:$0xff]  ;;  %vm4002_vm9 = vcmask 31744  }
 0x15d   :  { %5939 = vmatpush3.bf16.msra.mxu1 %v6504_v40  ;;  %v4605_v40 = vld [vmem:[%s7963_s5] ss:$0 sm:$0xff]  ;;  %v6165_v61 = vpack.c.bf16 %v3642_v59, %v3641_v25  ;;  %v3659_v6 = vld [vmem:[%s7962_s6 + $0xf0] sm:$0xff]  ;;  %v3670_v59 = vld [vmem:[%s7962_s6 + $0x148] sm:$0xff] }
 0x15e   :  { %5940 = vmatprep.subr.bf16.mxu1 %v6561_v0  ;;  %v7612_v43 = vadd.f32 %v4605_v40, %v7332_v57  ;;  %v3646_v57 = vld [vmem:[%s7962_s6 + $0x88] sm:$0xff]  ;;  %v7635_v55 = vadd.f32 %v4605_v40, %v7323_v50  ;;  %v3635_v50 = vld [vmem:[%s7962_s6 + $0x30] sm:$0xff]  ;;  %v1307_v26 = vrot.slane %v7678_v18, 4  ;;  %v3669_v25 = vld [vmem:[%s7962_s6 + $0x140] sm:$0xff] }
 0x15f   :  { %5921 = vmatpush3.bf16.msra.mxu0 %v6505_v33  ;;  %v6171_v58 = vpack.c.bf16 %v3646_v57, %v3645_v48  ;;  %v6156_v11 = vpack.c.bf16 %v3636_v1, %v3635_v50 }
 0x160   :  { %5946 = vmatprep.subr.bf16.mxu0 %v6561_v0 }
 0x161   :  { %5941 = vmatpush3.bf16.msra.mxu1 %v6506_v47  ;;  %v3492_v47 = vld [vmem:[#allocation2 + $0x38] sm:$0xf0] }
 0x162   :  { %5923 = vmatmul.mubr.bf16.vlgmr.msra.gmra.mrb[40].mxu0 %v5091_v41  ;;  %5966 = vmatprep.subr.bf16.mxu1 %v6561_v0 }
 0x163   :  { %5947 = vmatpush3.bf16.msra.mxu0 %v6515_v44  ;;  %5962 = vmatprep.mubr.msk.bf16.mxu0 %vm6562_vm0, %v6561_v0  ;;  %v6530_v44 = vld [vmem:[%s7961_s4 + $0x238] sm:$0xff]  }
 0x164   :  { %5948 = vmatprep.subr.bf16.mxu0 %v6561_v0  ;;  %5943 = vmatmul.mubr.bf16.vlgmr.msra.gmra.mrb[40].mxu1 %v5122_v53  ;;  %v3634_v53 = vld [vmem:[%s7962_s6 + $0x28] sm:$0xff] }
 0x165   :  { %5967 = vmatpush3.bf16.msra.mxu1 %v6516_v54  ;;  %5982 = vmatprep.mubr.msk.bf16.mxu1 %vm6562_vm0, %v6561_v0  ;;  %v573_v54 = vrot.slane %v7612_v43, 4 }
 0x166   :  { %5968 = vmatprep.subr.bf16.mxu1 %v6561_v0 }
 0x167   :  { %5949 = vmatpush3.bf16.msra.mxu0 %v6517_v51  ;;  %v3633_v51 = vld [vmem:[%s7962_s6 + $0x20] sm:$0xff]  ;;  %v574_v2 = vadd.f32 %v573_v54, %v7612_v43 }
 0x168   :  { %5950 = vmatprep.subr.bf16.mxu0 %v6561_v0 }
 0x169   :  { %5969 = vmatpush3.bf16.msra.mxu1 %v6518_v60  ;;  %v3647_v60 = vld [vmem:[%s7962_s6 + $0x90] sm:$0xff] }
 0x16a   :  { %5970 = vmatprep.subr.bf16.mxu1 %v6561_v0  ;;  %v6174_v5 = vpack.c.bf16 %v3648_v63, %v3647_v60 }
 0x16b   :  { %5951 = vmatpush3.bf16.msra.mxu0 %v6519_v12  ;;  %v5178_v12 = vcombine.high %v3491_v46, %v3492_v47  ;;  %v3643_v46 = vld [vmem:[%s7962_s6 + $0x70] sm:$0xff]  ;;  %v3644_v47 = vld [vmem:[%s7962_s6 + $0x78] sm:$0xff] }
 0x16c   :  { %5952 = vmatprep.subr.bf16.mxu0 %v6561_v0  ;;  %v6168_v54 = vpack.c.bf16 %v3644_v47, %v3643_v46  ;;  %v3676_v46 = vld [vmem:[%s7962_s6 + $0x178] sm:$0xff] }
 0x16d   :  { %5971 = vmatpush3.bf16.msra.mxu1 %v6520_v3  ;;  %v7656_v3 = vadd.f32 %v4741_v56, %v7515_v45  ;;  %v3637_v45 = vld [vmem:[%s7962_s6 + $0x40] sm:$0xff] }
 0x16e   :  { %5972 = vmatprep.subr.bf16.mxu1 %v6561_v0  ;;  %v3661_v56 = vld [vmem:[%s7962_s6 + $0x100] sm:$0xff] }
 0x16f   :  { %5953 = vmatpush3.bf16.msra.mxu0 %v6521_v62  ;;  %v6153_v62 = vpack.c.bf16 %v3634_v53, %v3633_v51  ;;  %v1313_v16 = vrot.slane %v7656_v3, 4  ;;  %v3657_v51 = vld [vmem:[%s7962_s6 + $0xe0] sm:$0xff]  ;;  %v3658_v53 = vld [vmem:[%s7962_s6 + $0xe8] sm:$0xff] }
 0x170   :  { %5954 = vmatprep.subr.bf16.mxu0 %v6561_v0 }
 0x171   :  { %5973 = vmatpush3.bf16.msra.mxu1 %v6522_v13  ;;  %v3638_v13 = vld [vmem:[%s7962_s6 + $0x48] sm:$0xff]  ;;  %v1314_v23 = vadd.f32 %v1313_v16, %v7656_v3  ;;  %v3663_v16 = vld [vmem:[%s7962_s6 + $0x110] sm:$0xff] }
 0x172   :  { %5974 = vmatprep.subr.bf16.mxu1 %v6561_v0 }
 0x173   :  { %5955 = vmatpush3.bf16.msra.mxu0 %v6523_v4  ;;  %v567_v4 = vrot.slane %v7635_v55, 4  ;;  %v1315_v30 = vrot.slane %v1314_v23, 2 }
 0x174   :  { %5956 = vmatprep.subr.bf16.mxu0 %v6561_v0 }
 0x175   :  { %v1502_v19 = vpop.f32.mrb[16].mxu0  ;;  %5975 = vmatpush3.bf16.msra.mxu1 %v6524_v21  ;;  %v568_v9 = vadd.f32 %v567_v4, %v7635_v55  ;;  %v3652_v21 = vld [vmem:[%s7962_s6 + $0xb8] sm:$0xff]  ;;  %v1316_v48 = vadd.f32 %v1315_v30, %v1314_v23  ;;  %v6207_v30 = vpack.c.bf16 %v3670_v59, %v3669_v25  ;;  %v3686_v25 = vld [vmem:[%s7962_s6 + $0x1c8] sm:$0xff] }
 0x176   :  { %v5684_v20 = vpop.f32.mrb[17].mxu0  ;;  %5976 = vmatprep.subr.bf16.mxu1 %v6561_v0 }
 0x177   :  { %v1505_v22 = vpop.f32.mrb[18].mxu0  ;;  %5957 = vmatpush3.bf16.msra.mxu0 %v6525_v15  ;;  %v1595_v33 = vpop.f32.mrb[16].mxu1  ;;  %v575_v15 = vrot.slane %v574_v2, 2  ;;  %v6159_v20 = vpack.c.bf16 %v3638_v13, %v3637_v45  ;;  %v569_v24 = vrot.slane %v568_v9, 2  ;;  %v1317_v63 = vrot.slane %v1316_v48, 1 }
 0x178   :  { %v5685_v52 = vpop.f32.mrb[19].mxu0  ;;  %5958 = vmatprep.subr.bf16.mxu0 %v6561_v0  ;;  %v7593_v35 = vadd.f32 %v1595_v33, %v1502_v19  ;;  %v5704_v34 = vpop.f32.mrb[17].mxu1  ;;  %v3651_v19 = vld [vmem:[%s7962_s6 + $0xb0] sm:$0xff] }
 0x179   :  { %v1598_v37 = vpop.f32.mrb[18].mxu1  ;;  %5977 = vmatpush3.bf16.msra.mxu1 %v6526_v28  ;;  %v6180_v27 = vpack.c.bf16 %v3652_v21, %v3651_v19  ;;  %v3653_v52 = vld [vmem:[%s7962_s6 + $0xc0] sm:$0xff]  ;;  %v3654_v28 = vld [vmem:[%s7962_s6 + $0xc8] sm:$0xff]  ;;  %v1318_v19 = vadd.f32 %v1317_v63, %v1316_v48 }
 0x17a   :  { %v7601_v41 = vadd.f32 %v1598_v37, %v1505_v22  ;;  %v5705_v42 = vpop.f32.mrb[19].mxu1  ;;  %5978 = vmatprep.subr.bf16.mxu1 %v6561_v0  ;;  %v3640_v22 = vld [vmem:[%s7962_s6 + $0x58] sm:$0xff]  ;;  %v6183_v34 = vpack.c.bf16 %v3654_v28, %v3653_v52 }
 0x17b   :  { %5959 = vmatpush3.bf16.msra.mxu0 %v6527_v14  ;;  %v576_v14 = vadd.f32 %v575_v15, %v574_v2  ;;  %v3655_v42 = vld [vmem:[%s7962_s6 + $0xd0] sm:$0xff]  ;;  %v6189_v2 = vpack.c.bf16 %v3658_v53, %v3657_v51  ;;  %v3660_v15 = vld [vmem:[%s7962_s6 + $0xf8] sm:$0xff]  ;;  %v3771_v23 = vrot.slane %v1318_v19, 7 }
 0x17c   :  { %5960 = vmatprep.subr.bf16.mxu0 %v6561_v0  ;;  %v3668_v52 = vld [vmem:[%s7962_s6 + $0x138] sm:$0xff] }
 0x17d   :  { %5979 = vmatpush3.bf16.msra.mxu1 %v6528_v7  ;;  %v577_v33 = vrot.slane %v576_v14, 1  ;;  %v570_v7 = vadd.f32 %v569_v24, %v568_v9 }
 0x17e   :  { %5980 = vmatprep.subr.bf16.mxu1 %v6561_v0 }
 0x17f   :  { %5961 = vmatpush3.bf16.msra.mxu0 %v6529_v29  ;;  %v6162_v29 = vpack.c.bf16 %v3640_v22, %v3639_v38  ;;  %v3665_v22 = vld [vmem:[%s7962_s6 + $0x120] sm:$0xff] }
 0x180   :  { %6146 = vmatprep.subr.bf16.mxu0 %v6564_v8 }
 0x181   :  { %5981 = vmatpush3.bf16.msra.mxu1 %v6530_v44 }
 0x182   :  { %5963 = vmatmul.mubr.bf16.vlgmr.msra.gmra.mrb[44].mxu0 %v5153_v36  ;;  %6170 = vmatprep.subr.bf16.mxu1 %v6564_v8 }
 0x183   :  { %6148 = vmatpush3.bf16.msra.mxu0 %v6147_v39  ;;  %6018 = vmatprep.mubr.msk.f32.mxu0 %vm6562_vm0, %v6561_v0  ;;  %v1308_v39 = vadd.f32 %v1307_v26, %v7678_v18 }
 0x184   :  { %6149 = vmatprep.subr.bf16.mxu0 %v6564_v8  ;;  %5983 = vmatmul.mubr.bf16.vlgmr.msra.gmra.mrb[44].mxu1 %v5178_v12  ;;  %v571_v12 = vrot.slane %v570_v7, 1 }
 0x185   :  { %6172 = vmatpush3.bf16.msra.mxu1 %v6171_v58  ;;  %6053 = vmatprep.mubr.msk.f32.mxu1 %vm6562_vm0, %v6561_v0  ;;  %v1309_v57 = vrot.slane %v1308_v39, 2  ;;  %v3662_v58 = vld [vmem:[%s7962_s6 + $0x108] sm:$0xff] }
 0x186   :  { %6173 = vmatprep.subr.bf16.mxu1 %v6564_v8  ;;  %v572_v10 = vadd.f32 %v571_v12, %v570_v7  ;;  %v3678_v12 = vld [vmem:[%s7962_s6 + $0x188] sm:$0xff] }
 0x187   :  { %6151 = vmatpush3.bf16.msra.mxu0 %v6150_v49  ;;  %v578_v49 = vadd.f32 %v577_v33, %v576_v14  ;;  %v1310_v4 = vadd.f32 %v1309_v57, %v1308_v39  ;;  %v3666_v14 = vld [vmem:[%s7962_s6 + $0x128] sm:$0xff]  ;;  %v3672_v33 = vld [vmem:[%s7962_s6 + $0x158] sm:$0xff] }
 0x188   :  { %6152 = vmatprep.subr.bf16.mxu0 %v6564_v8  ;;  %v6201_v26 = vpack.c.bf16 %v3666_v14, %v3665_v22  ;;  %v3683_v14 = vld [vmem:[%s7962_s6 + $0x1b0] sm:$0xff] }
 0x189   :  { %6175 = vmatpush3.bf16.msra.mxu1 %v6174_v5  ;;  %v1311_v21 = vrot.slane %v1310_v4, 1 }
 0x18a   :  { %6176 = vmatprep.subr.bf16.mxu1 %v6564_v8 }
 0x18b   :  { %6154 = vmatpush3.bf16.msra.mxu0 %v6153_v62  ;;  %v3695_v62 = vrot.slane %v578_v49, 7  ;;  %v1312_v24 = vadd.f32 %v1311_v21, %v1310_v4 }
 0x18c   :  { %6155 = vmatprep.subr.bf16.mxu0 %v6564_v8 }
 0x18d   :  { %6178 = vmatpush3.bf16.msra.mxu1 %v6177_v17  ;;  %v3664_v17 = vld [vmem:[%s7962_s6 + $0x118] sm:$0xff]  ;;  %v3697_v9 = vsel %vm3696_vm5, %v3695_v62, %v572_v10  ;;  %v3772_v28 = vsel %vm3696_vm5, %v3771_v23, %v1312_v24 }
 0x18e   :  { %6179 = vmatprep.subr.bf16.mxu1 %v6564_v8  ;;  %v6198_v38 = vpack.c.bf16 %v3664_v17, %v3663_v16  ;;  %v3684_v23 = vld [vmem:[%s7962_s6 + $0x1b8] sm:$0xff] }
 0x18f   :  { %6157 = vmatpush3.bf16.msra.mxu0 %v6156_v11  ;;  %v6195_v11 = vpack.c.bf16 %v3662_v58, %v3661_v56  ;;  %v3679_v56 = vld [vmem:[%s7962_s6 + $0x190] sm:$0xff] }
 0x190   :  { %6158 = vmatprep.subr.bf16.mxu0 %v6564_v8 }
 0x191   :  { %6181 = vmatpush3.bf16.msra.mxu1 %v6180_v27  ;;  %v3667_v27 = vld [vmem:[%s7962_s6 + $0x130] sm:$0xff] }
 0x192   :  { %6182 = vmatprep.subr.bf16.mxu1 %v6564_v8 }
 0x193   :  { %6160 = vmatpush3.bf16.msra.mxu0 %v6159_v20  ;;  %v6192_v20 = vpack.c.bf16 %v3660_v15, %v3659_v6  ;;  %v3682_v15 = vld [vmem:[%s7962_s6 + $0x1a8] sm:$0xff] }
 0x194   :  { %6161 = vmatprep.subr.bf16.mxu0 %v6564_v8 }
 0x195   :  { %v1753_v31 = vpop.f32.mrb[20].mxu0  ;;  %6184 = vmatpush3.bf16.msra.mxu1 %v6183_v34 }
 0x196   :  { %v1760_v36 = vadd.f32 %v1753_v31, %v7593_v35  ;;  %v5724_v37 = vpop.f32.mrb[21].mxu0  ;;  %v3656_v35 = vld [vmem:[%s7962_s6 + $0xd8] sm:$0xff]  ;;  %6185 = vmatprep.subr.bf16.mxu1 %v6564_v8  ;;  %v3671_v31 = vld [vmem:[%s7962_s6 + $0x150] sm:$0xff] }
 0x197   :  { %v1756_v40 = vpop.f32.mrb[22].mxu0  ;;  %6163 = vmatpush3.bf16.msra.mxu0 %v6162_v29  ;;  %v1885_v60 = vpop.f32.mrb[20].mxu1  ;;  %v6204_v29 = vpack.c.bf16 %v3668_v52, %v3667_v27  ;;  %v6210_v34 = vpack.c.bf16 %v3672_v33, %v3671_v31  ;;  %v3674_v37 = vld [vmem:[%s7962_s6 + $0x168] sm:$0xff]  ;;  %v6228_v52 = vpack.c.bf16 %v3684_v23, %v3683_v14 }
 0x198   :  { %v1761_v32 = vadd.f32 %v1756_v40, %v7601_v41  ;;  %v5725_v44 = vpop.f32.mrb[23].mxu0  ;;  %6164 = vmatprep.subr.bf16.mxu0 %v6564_v8  ;;  %v6186_v41 = vpack.c.bf16 %v3656_v35, %v3655_v42  ;;  %v1892_v50 = vadd.f32 %v1885_v60, %v1760_v36  ;;  %v5744_v1 = vpop.f32.mrb[21].mxu1  ;;  %v3673_v36 = vld [vmem:[%s7962_s6 + $0x160] sm:$0xff]  ;;  %v3680_v60 = vld [vmem:[%s7962_s6 + $0x198] sm:$0xff] }
 0x199   :  { %v1888_v5 = vpop.f32.mrb[22].mxu1  ;;  %v3675_v44 = vld [vmem:[%s7962_s6 + $0x170] sm:$0xff]  ;;  %v6222_v62 = vpack.c.bf16 %v3680_v60, %v3679_v56  ;;  %v3998_v56 = vld [vmem:[%s7964_s7] sm:$0xf] }
 0x19a   :  { %6187 = vmatpush3.bf16.msra.mxu1 %v6186_v41  ;;  %v1893_v45 = vadd.f32 %v1888_v5, %v1761_v32  ;;  %v5745_v13 = vpop.f32.mrb[23].mxu1  ;;  %v6216_v47 = vpack.c.bf16 %v3676_v46, %v3675_v44  ;;  %v3692_v44 = vld [vmem:[%s7962_s6 + $0x1f8] sm:$0xff] }
 0x19b   :  { %6166 = vmatpush3.bf16.msra.mxu0 %v6165_v61  ;;  %6188 = vmatprep.subr.bf16.mxu1 %v6564_v8  ;;  %v6213_v61 = vpack.c.bf16 %v3674_v37, %v3673_v36  ;;  %v3681_v13 = vld [vmem:[%s7962_s6 + $0x1a0] sm:$0xff]  ;;  %v3688_v36 = vld [vmem:[%s7962_s6 + $0x1d8] sm:$0xff] }
 0x19c   :  { %6167 = vmatprep.subr.bf16.mxu0 %v6564_v8 }
 0x19e   :  { %6190 = vmatpush3.bf16.msra.mxu1 %v6189_v2 }
 0x19f   :  { %6169 = vmatpush3.bf16.msra.mxu0 %v6168_v54  ;;  %6191 = vmatprep.subr.bf16.mxu1 %v6564_v8  ;;  %v3677_v54 = vld [vmem:[%s7962_s6 + $0x180] sm:$0xff] }
 0x1a0   :  { %6194 = vmatprep.subr.bf16.mxu0 %v6564_v8  ;;  %v6219_v58 = vpack.c.bf16 %v3678_v12, %v3677_v54 }
 0x1a2   :  { %6019 = vmatmul.mubr.f32.vlgmr.msra.gmra.mrb[48].mxu0 %v3697_v9  ;;  %6193 = vmatpush3.bf16.msra.mxu1 %v6192_v20  ;;  %v6225_v9 = vpack.c.bf16 %v3682_v15, %v3681_v13 }
 0x1a3   :  { %6196 = vmatpush3.bf16.msra.mxu0 %v6195_v11  ;;  %6088 = vmatprep.mubr.msk.f32.mxu0 %vm6562_vm0, %v6561_v0 }
 0x1a4   :  { %6197 = vmatprep.subr.bf16.mxu0 %v6564_v8  ;;  %6218 = vmatprep.subr.bf16.mxu1 %v6564_v8 }
 0x1a5   :  { %6054 = vmatmul.mubr.f32.vlgmr.msra.gmra.mrb[48].mxu1 %v3772_v28 }
 0x1a6   :  { %6123 = vmatprep.mubr.msk.f32.mxu1 %vm6562_vm0, %v6561_v0  ;;  %6220 = vmatpush3.bf16.msra.mxu1 %v6219_v58 }
 0x1a7   :  { %6199 = vmatpush3.bf16.msra.mxu0 %v6198_v38  ;;  %6221 = vmatprep.subr.bf16.mxu1 %v6564_v8 }
 0x1a8   :  { %6200 = vmatprep.subr.bf16.mxu0 %v6564_v8 }
 0x1aa   :  { %6223 = vmatpush3.bf16.msra.mxu1 %v6222_v62 }
 0x1ab   :  { %6202 = vmatpush3.bf16.msra.mxu0 %v6201_v26  ;;  %6224 = vmatprep.subr.bf16.mxu1 %v6564_v8 }
 0x1ac   :  { %6203 = vmatprep.subr.bf16.mxu0 %v6564_v8 }
 0x1ae   :  { %6226 = vmatpush3.bf16.msra.mxu1 %v6225_v9 }
 0x1af   :  { %6205 = vmatpush3.bf16.msra.mxu0 %v6204_v29  ;;  %6227 = vmatprep.subr.bf16.mxu1 %v6564_v8  ;;  %v3685_v29 = vld [vmem:[%s7962_s6 + $0x1c0] sm:$0xff] }
 0x1b0   :  { %6206 = vmatprep.subr.bf16.mxu0 %v6564_v8  ;;  %v6231_v31 = vpack.c.bf16 %v3686_v25, %v3685_v29 }
 0x1b2   :  { %6229 = vmatpush3.bf16.msra.mxu1 %v6228_v52 }
 0x1b3   :  { %6208 = vmatpush3.bf16.msra.mxu0 %v6207_v30  ;;  %6230 = vmatprep.subr.bf16.mxu1 %v6564_v8 }
 0x1b4   :  { %6209 = vmatprep.subr.bf16.mxu0 %v6564_v8 }
 0x1b5   :  { %v2045_v7 = vpop.f32.mrb[24].mxu0 }
 0x1b6   :  { %v2052_v39 = vadd.f32 %v2045_v7, %v1892_v50  ;;  %v5764_v40 = vpop.f32.mrb[25].mxu0  ;;  %v4939_v50 = vld [vmem:[%s7963_s5 + $0x2] ss:$0 sm:$0xff]  ;;  %6232 = vmatpush3.bf16.msra.mxu1 %v6231_v31 }
 0x1b7   :  { %v2048_v42 = vpop.f32.mrb[26].mxu0  ;;  %6211 = vmatpush3.bf16.msra.mxu0 %v6210_v34  ;;  %v2177_v48 = vpop.f32.mrb[24].mxu1  ;;  %6233 = vmatprep.subr.bf16.mxu1 %v6564_v8  ;;  %v3687_v34 = vld [vmem:[%s7962_s6 + $0x1d0] sm:$0xff] }
 0x1b8   :  { %v2053_v32 = vadd.f32 %v2048_v42, %v1893_v45  ;;  %v5765_v35 = vpop.f32.mrb[27].mxu0  ;;  %6212 = vmatprep.subr.bf16.mxu0 %v6564_v8  ;;  %v2184_v49 = vadd.f32 %v2177_v48, %v2052_v39  ;;  %v5784_v57 = vpop.f32.mrb[25].mxu1  ;;  %v6234_v39 = vpack.c.bf16 %v3688_v36, %v3687_v34  ;;  %v3689_v42 = vld [vmem:[%s7962_s6 + $0x1e0] sm:$0xff] }
 0x1b9   :  { %v2180_v41 = vpop.f32.mrb[26].mxu1  ;;  %v3691_v35 = vld [vmem:[%s7962_s6 + $0x1f0] sm:$0xff] }
 0x1ba   :  { %v2185_v51 = vadd.f32 %v2180_v41, %v2053_v32  ;;  %v5785_v53 = vpop.f32.mrb[27].mxu1  ;;  %6235 = vmatpush3.bf16.msra.mxu1 %v6234_v39  ;;  %v6240_v46 = vpack.c.bf16 %v3692_v44, %v3691_v35 }
 0x1bb   :  { %6214 = vmatpush3.bf16.msra.mxu0 %v6213_v61  ;;  %v3690_v61 = vld [vmem:[%s7962_s6 + $0x1e8] sm:$0xff]  ;;  %6236 = vmatprep.subr.bf16.mxu1 %v6564_v8 }
 0x1bc   :  { %6215 = vmatprep.subr.bf16.mxu0 %v6564_v8  ;;  %v6237_v32 = vpack.c.bf16 %v3690_v61, %v3689_v42 }
 0x1be   :  { %6238 = vmatpush3.bf16.msra.mxu1 %v6237_v32 }
 0x1bf   :  { %6217 = vmatpush3.bf16.msra.mxu0 %v6216_v47  ;;  %6239 = vmatprep.subr.bf16.mxu1 %v6564_v8 }
 0x1c0   :  { %6126 = vmatprep.subr.mxu0 %v6561_v0 }
 0x1c2   :  { %6241 = vmatpush3.bf16.msra.mxu1 %v6240_v46 }
 0x1c3   :  { %6131 = vmatprep.subr.mxu1 %v6561_v0 }
 0x1d5   :  { %v2330_v63 = vpop.f32.mrb[28].mxu0 }
 0x1d6   :  { %v2337_v1 = vadd.f32 %v2330_v63, %v2184_v49  ;;  %v5804_v2 = vpop.f32.mrb[29].mxu0 }
 0x1d7   :  { %v2333_v4 = vpop.f32.mrb[30].mxu0  ;;  %v2523_v19 = vpop.f32.mrb[28].mxu1 }
 0x1d8   :  { %v7824_v5 = vadd.f32 %v4939_v50, %v2337_v1  ;;  %v2338_v6 = vadd.f32 %v2333_v4, %v2185_v51  ;;  %v5805_v10 = vpop.f32.mrb[31].mxu0  ;;  %v5824_v21 = vpop.f32.mrb[29].mxu1 }
 0x1d9   :  { %v2526_v22 = vpop.f32.mrb[30].mxu1 }
 0x1da   :  { %v2349_v11 = vrot.slane %v7824_v5, 4  ;;  %v7827_v45 = vadd.f32 %v4939_v50, %v2338_v6  ;;  %v5825_v27 = vpop.f32.mrb[31].mxu1 }
 0x1dc   :  { %v2350_v16 = vadd.f32 %v2349_v11, %v7824_v5  ;;  %v2355_v17 = vrot.slane %v7827_v45, 4 }
 0x1de   :  { %v2351_v20 = vrot.slane %v2350_v16, 2  ;;  %v2356_v38 = vadd.f32 %v2355_v17, %v7827_v45 }
 0x1e0   :  { %v2352_v24 = vadd.f32 %v2351_v20, %v2350_v16  ;;  %v2357_v26 = vrot.slane %v2356_v38, 2 }
 0x1e2   :  { %v2358_v28 = vadd.f32 %v2357_v26, %v2356_v38  ;;  %v2353_v59 = vrot.slane %v2352_v24, 1 }
 0x1e4   :  { %v2359_v30 = vrot.slane %v2358_v28, 1  ;;  %v2354_v37 = vadd.f32 %v2353_v59, %v2352_v24 }
 0x1e6   :  { %v2360_v33 = vadd.f32 %v2359_v30, %v2358_v28 }
 0x1e8   :  { %v3846_v7 = vrot.slane %v2360_v33, 7  ;;  %v5187_v33 = vld [vmem:[%s7963_s5 + $0x3] ss:$0 sm:$0xff] }
 0x1ea   :  { %v3847_v40 = vsel %vm3696_vm5, %v3846_v7, %v2354_v37 }
 0x1eb   :  { %6089 = vmatmul.mubr.f32.vlgmr.msra.gmra.mrb[50].mxu0 %v3847_v40 }
 0x1ec   :  { %6128 = vmatprep.mubr.msk.f32.mxu0 %vm6562_vm0, %v6561_v0  ;;  %6127 = vmatpush3.msk.msra.mxu0 %vm4006_vm6, %v3998_v56 }
 0x1ed   :  { %6136 = vmatprep.subr.mxu0 %v6561_v0 }
 0x1f5   :  { %v2618_v47 = vpop.f32.mrb[32].mxu0 }
 0x1f6   :  { %v2619_v48 = vadd.f32 %v2618_v47, %v2523_v19  ;;  %v5844_v49 = vpop.f32.mrb[33].mxu0 }
 0x1f7   :  { %v2621_v57 = vpop.f32.mrb[34].mxu0  ;;  %v2748_v53 = vpop.f32.mrb[32].mxu1 }
 0x1f8   :  { %v2622_v41 = vadd.f32 %v2621_v57, %v2526_v22  ;;  %v5845_v51 = vpop.f32.mrb[35].mxu0  ;;  %v2755_v54 = vadd.f32 %v2748_v53, %v2619_v48  ;;  %v5864_v12 = vpop.f32.mrb[33].mxu1 }
 0x1f9   :  { %v2751_v58 = vpop.f32.mrb[34].mxu1  ;;  %v3999_v12 = vld [vmem:[%s7964_s7 + $0x4] sm:$0xf] }
 0x1fa   :  { %v2756_v8 = vadd.f32 %v2751_v58, %v2622_v41  ;;  %v5865_v60 = vpop.f32.mrb[35].mxu1 }
 0x215   :  { %v2908_v62 = vpop.f32.mrb[36].mxu0 }
 0x216   :  { %v2915_v63 = vadd.f32 %v2908_v62, %v2755_v54  ;;  %v5884_v50 = vpop.f32.mrb[37].mxu0  ;;  %v4000_v62 = vld [vmem:[%s7964_s7 + $0x8] sm:$0xf] }
 0x217   :  { %v2911_v1 = vpop.f32.mrb[38].mxu0  ;;  %v3040_v6 = vpop.f32.mrb[36].mxu1 }
 0x218   :  { %v2916_v2 = vadd.f32 %v2911_v1, %v2756_v8  ;;  %v5885_v4 = vpop.f32.mrb[39].mxu0  ;;  %v3047_v10 = vadd.f32 %v3040_v6, %v2915_v63  ;;  %v5904_v11 = vpop.f32.mrb[37].mxu1 }
 0x219   :  { %v3043_v13 = vpop.f32.mrb[38].mxu1 }
 0x21a   :  { %v3048_v15 = vadd.f32 %v3043_v13, %v2916_v2  ;;  %v5905_v16 = vpop.f32.mrb[39].mxu1  ;;  %v4001_v2 = vld [vmem:[%s7964_s7 + $0xc] sm:$0xf] }
 0x235   :  { %v3200_v17 = vpop.f32.mrb[40].mxu0 }
 0x236   :  { %v3207_v9 = vadd.f32 %v3200_v17, %v3047_v10  ;;  %v5924_v19 = vpop.f32.mrb[41].mxu0 }
 0x237   :  { %v3203_v20 = vpop.f32.mrb[42].mxu0  ;;  %v3332_v22 = vpop.f32.mrb[40].mxu1 }
 0x238   :  { %v3208_v21 = vadd.f32 %v3203_v20, %v3048_v15  ;;  %v5925_v38 = vpop.f32.mrb[43].mxu0  ;;  %v3339_v14 = vadd.f32 %v3332_v22, %v3207_v9  ;;  %v5944_v23 = vpop.f32.mrb[41].mxu1 }
 0x239   :  { %v3335_v24 = vpop.f32.mrb[42].mxu1 }
 0x23a   :  { %v3340_v26 = vadd.f32 %v3335_v24, %v3208_v21  ;;  %v5945_v27 = vpop.f32.mrb[43].mxu1 }
 0x255   :  { %v3482_v52 = vpop.f32.mrb[44].mxu0 }
 0x256   :  { %v3489_v28 = vadd.f32 %v3482_v52, %v3339_v14  ;;  %v5964_v29 = vpop.f32.mrb[45].mxu0 }
 0x257   :  { %v3485_v25 = vpop.f32.mrb[46].mxu0  ;;  %v3598_v31 = vpop.f32.mrb[44].mxu1 }
 0x258   :  { %v3490_v59 = vadd.f32 %v3485_v25, %v3340_v26  ;;  %v5965_v30 = vpop.f32.mrb[47].mxu0  ;;  %v3605_v34 = vadd.f32 %v3598_v31, %v3489_v28  ;;  %v5984_v36 = vpop.f32.mrb[45].mxu1 }
 0x259   :  { %v3601_v37 = vpop.f32.mrb[46].mxu1 }
 0x25a   :  { %v7885_v7 = vadd.f32 %v5187_v33, %v3605_v34  ;;  %v3606_v39 = vadd.f32 %v3601_v37, %v3490_v59  ;;  %v5985_v40 = vpop.f32.mrb[47].mxu1 }
 0x25c   :  { %v3617_v42 = vrot.slane %v7885_v7, 4  ;;  %v7888_v61 = vadd.f32 %v5187_v33, %v3606_v39 }
 0x25e   :  { %v3618_v32 = vadd.f32 %v3617_v42, %v7885_v7  ;;  %v3623_v35 = vrot.slane %v7888_v61, 4 }
 0x260   :  { %v3619_v44 = vrot.slane %v3618_v32, 2  ;;  %v3624_v46 = vadd.f32 %v3623_v35, %v7888_v61 }
 0x262   :  { %v3620_v47 = vadd.f32 %v3619_v44, %v3618_v32  ;;  %v3625_v48 = vrot.slane %v3624_v46, 2 }
 0x264   :  { %v3626_v49 = vadd.f32 %v3625_v48, %v3624_v46  ;;  %v3621_v57 = vrot.slane %v3620_v47, 1 }
 0x266   :  { %v3627_v41 = vrot.slane %v3626_v49, 1  ;;  %v3622_v53 = vadd.f32 %v3621_v57, %v3620_v47 }
 0x268   :  { %v3628_v51 = vadd.f32 %v3627_v41, %v3626_v49 }
 0x26a   :  { %v3921_v54 = vrot.slane %v3628_v51, 7 }
 0x26c   :  { %v3922_v56 = vsel %vm3696_vm5, %v3921_v54, %v3622_v53 }
 0x26d   :  { %6124 = vmatmul.mubr.f32.vlgmr.msra.gmra.mrb[50].mxu1 %v3922_v56 }
 0x26e   :  { %6132 = vmatpush3.msk.msra.mxu1 %vm4006_vm6, %v3999_v12  ;;  %6133 = vmatprep.mubr.msk.f32.mxu1 %vm6562_vm0, %v6561_v0 }
 0x26f   :  { %6141 = vmatprep.subr.mxu1 %v6561_v0 }
 0x275   :  { %v3765_v58 = vpop.f32.mrb[48].mxu0 }
 0x276   :  { %v3994_v8 = vmax.f32 %v3765_v58, 0.0  ;;  %v6020_v60 = vpop.f32.mrb[49].mxu0 }
 0x278   :  { %6129 = vmatmul.mubr.msk.f32.vlgmr.msra.gmra.mrb[52].mxu0 %vm4002_vm9, %v3994_v8  ;;  %v3840_v63 = vpop.f32.mrb[48].mxu1 }
 0x279   :  { %6137 = vmatpush3.msk.msra.mxu0 %vm4006_vm6, %v4000_v62  ;;  %6138 = vmatprep.mubr.msk.f32.mxu0 %vm6562_vm0, %v6561_v0  ;;  %v3995_v50 = vmax.f32 %v3840_v63, 0.0  ;;  %v6055_v1 = vpop.f32.mrb[49].mxu1 }
 0x27b   :  { %6134 = vmatmul.mubr.msk.f32.vlgmr.msra.gmra.mrb[52].mxu1 %vm4002_vm9, %v3995_v50 }
 0x27c   :  { %6142 = vmatpush3.msk.msra.mxu1 %vm4006_vm6, %v4001_v2  ;;  %6143 = vmatprep.mubr.msk.f32.mxu1 %vm6562_vm0, %v6561_v0 }
 0x2be   :  { %v3915_v4 = vpop.f32.mrb[50].mxu0 }
 0x2bf   :  { %v3996_v6 = vmax.f32 %v3915_v4, 0.0  ;;  %v6090_v10 = vpop.f32.mrb[51].mxu0  ;;  %v6565_v4 = vmov 1966171168  }
 0x2c0   :  { %v4370_v10 = vlaneseq }
 0x2c1   :  { %6139 = vmatmul.mubr.msk.f32.vlgmr.msra.gmra.mrb[54].mxu0 %vm4002_vm9, %v3996_v6  ;;  %v4368_v6 = vunpack.c.l.s4 %v6565_v4 }
 0x340   :  { %v3990_v11 = vpop.f32.mrb[50].mxu1 }
 0x341   :  { %v3997_v13 = vmax.f32 %v3990_v11, 0.0  ;;  %v6125_v15 = vpop.f32.mrb[51].mxu1  ;;  %v4369_v11 = vunpack.c.0.s8 %v4368_v6 }
 0x343   :  { %6144 = vmatmul.mubr.msk.f32.vlgmr.msra.gmra.mrb[54].mxu1 %vm4002_vm9, %v3997_v13  ;;  %v4371_v13 = vshrl.u32 %v4370_v10, 7 }
 0x345   :  { %v4372_v15 = vsub.s32 %v4369_v11, %v4371_v13 }
 0x34b   :  { %v4076_v16 = vpop.f32.mrb[52].mxu0 }
 0x34c   :  { %v5198_v17 = vmul.f32 -1.442695, %v4076_v16  ;;  %v6130_v9 = vpop.f32.mrb[53].mxu0 }
 0x34e   :  { %6535 = vpow2.f32 %v5198_v17  ;;  %v4152_v19 = vpop.f32.mrb[52].mxu1 }
 0x34f   :  { %v5199_v20 = vmul.f32 -1.442695, %v4152_v19  ;;  %v6135_v21 = vpop.f32.mrb[53].mxu1 }
 0x350   :  { %v4391_v21 = vsub.s32 0, %v4371_v13 }
 0x351   :  { %6537 = vpow2.f32 %v5199_v20 }
 0x358   :  { %v6536_v38 = vpop.eup %6535 }
 0x359   :  { %v4320_v0 = vadd.f32 1.0, %v6536_v38 }
 0x35b   :  { %6539 = vrcp.f32 %v4320_v0  ;;  %v6538_v22 = vpop.eup %6537 }
 0x35c   :  { %v4321_v14 = vadd.f32 1.0, %v6538_v22 }
 0x35e   :  { %6541 = vrcp.f32 %v4321_v14 }
 0x365   :  { %v6540_v23 = vpop.eup %6539 }
 0x366   :  { %v4333_v24 = vsel %vm181_vm1, %v6540_v23, -inf }
 0x368   :  { %v6542_v26 = vpop.eup %6541 }
 0x369   :  { %v4334_v27 = vsel %vm181_vm1, %v6542_v26, -inf }
 0x36a   :  { %v4337_v52 = vmax.f32 %v4333_v24, %v4334_v27 }
 0x394   :  { %v4228_v28 = vpop.f32.mrb[54].mxu0 }
 0x395   :  { %v6140_v29 = vpop.f32.mrb[55].mxu0  ;;  %v5200_v25 = vmul.f32 -1.442695, %v4228_v28 }
 0x397   :  { %6543 = vpow2.f32 %v5200_v25 }
 0x3a1   :  { %v6544_v33 = vpop.eup %6543 }
 0x3a2   :  { %v4322_v34 = vadd.f32 1.0, %v6544_v33 }
 0x416   :  { %v4304_v59 = vpop.f32.mrb[54].mxu1 }
 0x417   :  { %v5201_v30 = vmul.f32 -1.442695, %v4304_v59  ;;  %v6145_v31 = vpop.f32.mrb[55].mxu1 }
 0x419   :  { %6545 = vpow2.f32 %v5201_v30 }
 0x41a   :  { %6547 = vrcp.f32 %v4322_v34 }
 0x423   :  { %v6546_v36 = vpop.eup %6545 }
 0x424   :  { %v4323_v37 = vadd.f32 1.0, %v6546_v36  ;;  %v6548_v39 = vpop.eup %6547 }
 0x425   :  { %v4335_v42 = vsel %vm181_vm1, %v6548_v39, -inf }
 0x426   :  { %6549 = vrcp.f32 %v4323_v37 }
 0x430   :  { %v6550_v40 = vpop.eup %6549 }
 0x431   :  { %v4336_v32 = vsel %vm181_vm1, %v6550_v40, -inf }
 0x432   :  { %v4338_v35 = vmax.f32 %v4335_v42, %v4336_v32 }
 0x434   :  { %v4339_v44 = vmax.f32 %v4337_v52, %v4338_v35 }
 0x436   :  { %v4340_v46 = vsub.f32 %v6540_v23, %v4339_v44  ;;  %v4341_v47 = vsub.f32 %v6542_v26, %v4339_v44  ;;  %v4342_v48 = vsub.f32 %v6548_v39, %v4339_v44  ;;  %v4343_v49 = vsub.f32 %v6550_v40, %v4339_v44 }
 0x438   :  { %v4344_v57 = vmul.f32 1.442695, %v4340_v46  ;;  %v4346_v41 = vmul.f32 1.442695, %v4341_v47  ;;  %v4348_v51 = vmul.f32 1.442695, %v4342_v48 }
 0x439   :  { %v4350_v53 = vmul.f32 1.442695, %v4343_v49 }
 0x43a   :  { %6551 = vpow2.f32 %v4344_v57 }
 0x43b   :  { %6553 = vpow2.f32 %v4346_v41 }
 0x43c   :  { %6555 = vpow2.f32 %v4348_v51 }
 0x43d   :  { %6557 = vpow2.f32 %v4350_v53 }
 0x444   :  { %v6552_v54 = vpop.eup %6551 }
 0x445   :  { %v6554_v12 = vpop.eup %6553  ;;  %v4352_v56 = vsel %vm181_vm1, %v6552_v54, 0.0 }
 0x446   :  { %v6556_v58 = vpop.eup %6555  ;;  %v4353_v8 = vsel %vm181_vm1, %v6554_v12, 0.0 }
 0x447   :  { %v6558_v60 = vpop.eup %6557  ;;  %v4354_v62 = vadd.f32 %v4353_v8, %v4352_v56  ;;  %v4355_v63 = vsel %vm181_vm1, %v6556_v58, 0.0 }
 0x448   :  { %v4357_v1 = vsel %vm181_vm1, %v6558_v60, 0.0 }
 0x449   :  { %v4356_v50 = vadd.f32 %v4355_v63, %v4354_v62 }
 0x44b   :  { %v4358_v2 = vadd.f32 %v4357_v1, %v4356_v50 }
 0x44d   :  { %6559 = vrcp.f32 %v4358_v2 }
 0x457   :  { %v6560_v16 = vpop.eup %6559 }
 0x458   :  { %v4360_v17 = vmul.f32 %v6560_v16, %v6552_v54  ;;  %v4361_v9 = vmul.f32 %v6560_v16, %v6554_v12  ;;  %v4362_v19 = vmul.f32 %v6560_v16, %v6556_v58  ;;  %v4363_v20 = vmul.f32 %v6560_v16, %v6558_v60 }
 0x45a   :  { %v4373_v38 = vrot.slane %v4360_v17, %v4372_v15  ;;  %v4412_v0 = vrot.slane %v4361_v9, %v4372_v15  ;;  %v4451_v22 = vrot.slane %v4362_v19, %v4372_v15  ;;  %v4490_v14 = vrot.slane %v4363_v20, %v4372_v15 }
 0x45c   :  { %v4374_v23 = vcombine.high %v4373_v38, %v4373_v38  ;;  %v4381_v24 = vrot.slane %v4373_v38, %v4372_v15  ;;  %v4413_v26 = vcombine.high %v4412_v0, %v4412_v0  ;;  %v4420_v27 = vrot.slane %v4412_v0, %v4372_v15 }
 0x45d   :  { %v4452_v52 = vcombine.high %v4451_v22, %v4451_v22  ;;  %v4459_v28 = vrot.slane %v4451_v22, %v4372_v15  ;;  %v4491_v29 = vcombine.high %v4490_v14, %v4490_v14  ;;  %v4498_v25 = vrot.slane %v4490_v14, %v4372_v15 }
 0x45e   :  { %v4388_v59 = vrot.slane %v4374_v23, %v4372_v15  ;;  %v4392_v30 = vrot.slane %v4381_v24, %v4391_v21  ;;  %v4427_v31 = vrot.slane %v4413_v26, %v4372_v15  ;;  %v4431_v33 = vrot.slane %v4420_v27, %v4391_v21 }
 0x45f   :  { %v4466_v34 = vrot.slane %v4452_v52, %v4372_v15  ;;  %v4470_v36 = vrot.slane %v4459_v28, %v4391_v21  ;;  %v4505_v37 = vrot.slane %v4491_v29, %v4372_v15  ;;  %v4509_v39 = vrot.slane %v4498_v25, %v4391_v21 }
 0x460   :  { %v4396_v40 = vrot.slane %v4388_v59, %v4391_v21  ;;  %v4399_v42 = vmul.f32 %v4392_v30, %v7635_v55  ;;  %v4435_v32 = vrot.slane %v4427_v31, %v4391_v21  ;;  %v4438_v35 = vmul.f32 %v4431_v33, %v7678_v18 }
 0x461   :  { %v4474_v44 = vrot.slane %v4466_v34, %v4391_v21  ;;  %v4477_v46 = vmul.f32 %v4470_v36, %v7824_v5  ;;  %v4513_v47 = vrot.slane %v4505_v37, %v4391_v21  ;;  %v4516_v48 = vmul.f32 %v4509_v39, %v7885_v7 }
 0x462   :  { %v4400_v49 = vmul.f32 %v4396_v40, %v7612_v43  ;;  %4401 = vst [vmem:[%s7965_s8] sm:$0xff] %v4399_v42  ;;  %v4439_v57 = vmul.f32 %v4435_v32, %v7656_v3  ;;  %5204 = vst [vmem:[%s7965_s8 + $0x8] sm:$0xff] %v4438_v35 }
 0x463   :  { %v4478_v55 = vmul.f32 %v4474_v44, %v7827_v45  ;;  %5208 = vst [vmem:[%s7965_s8 + $0x10] sm:$0xff] %v4477_v46  ;;  %v4517_v18 = vmul.f32 %v4513_v47, %v7888_v61  ;;  %5212 = vst [vmem:[%s7965_s8 + $0x18] sm:$0xff] %v4516_v48 }
 0x464   :  { %4402 = vst [vmem:[%s7965_s8 + $0x20] sm:$0xff] %v4400_v49  ;;  %5205 = vst [vmem:[%s7965_s8 + $0x28] sm:$0xff] %v4439_v57 }
 0x465   :  { %5209 = vst [vmem:[%s7965_s8 + $0x30] sm:$0xff] %v4478_v55  ;;  %5213 = vst [vmem:[%s7965_s8 + $0x38] sm:$0xff] %v4517_v18 }

</bundles_post_ra>
